<compile_context>
chip_gen: v6e
topology: v6e:2x2x1
jax: 0.10.0
libtpu: 0.0.40
codegen_flags: <defaults>
</compile_context>

<pallas_src>
import jax
import jax.numpy as jnp
from jax import lax
from jax.experimental import pallas as pl
from jax.experimental.pallas import tpu as pltpu


def _round_up(x, m):
    return ((x + m - 1) // m) * m


def _chip_policy():
    """(max_tile_n, vmem_limit_bytes, target_grid_steps) per TPU generation."""
    try:
        kind = jax.devices()[0].device_kind.lower()
    except Exception:
        kind = ""
    if "v7" in kind or "7x" in kind:
        # v7x: 64 MiB VMEM per TensorCore, 2 TCs -> moderate tiles; target >= 8 grid
        # steps so each core gets several steps and double-buffering can overlap DMA.
        return 2048, 48 * 1024 * 1024, 8
    if "v6" in kind or "v5" in kind:
        # v5e / v6e: 128 MiB physical VMEM, single TensorCore -> big tiles, no split.
        return 4096, 96 * 1024 * 1024, 1
    # Unknown chip: conservative defaults (compiler default scoped-VMEM limit).
    return 1024, None, 1


# ---------------------------------------------------------------------------
# Plain-JAX glue (coordinate generation, nearest grid-sample gathers)
# ---------------------------------------------------------------------------

def make_coord(shape):
    """JAX port of make_coord (ranges=None). Returns (h, w, 2); [...,0]=y, [...,1]=x."""
    seqs = []
    for n in shape:
        r = 2.0 / (2 * n)
        seqs.append(-1.0 + r + 2.0 * r * jnp.arange(n, dtype=jnp.float32))
    mesh = jnp.meshgrid(*seqs, indexing="ij")   # torch.meshgrid default is 'ij'
    return jnp.stack(mesh, axis=-1)


def grid_sample_nearest_cm(inp, coord_yx):
    """Channel-major equivalent of
      F.grid_sample(inp, coord.flip(-1).unsqueeze(1), mode='nearest',
                    align_corners=False, padding_mode='zeros')[:, :, 0, :]
    inp: (B, C, H, W); coord_yx: (B, N, 2) with [...,0]=y, [...,1]=x. Returns (B, C, N)."""
    B, C, H, W = inp.shape
    iy = (coord_yx[..., 0] + 1.0) * H / 2.0 - 0.5      # align_corners=False unnormalize
    ix = (coord_yx[..., 1] + 1.0) * W / 2.0 - 0.5
    iy_n = jnp.round(iy)                               # round-half-even == std::nearbyint
    ix_n = jnp.round(ix)
    valid = (iy_n >= 0) & (iy_n <= H - 1) & (ix_n >= 0) & (ix_n <= W - 1)
    iy_c = jnp.clip(iy_n, 0, H - 1).astype(jnp.int32)
    ix_c = jnp.clip(ix_n, 0, W - 1).astype(jnp.int32)
    flat_idx = iy_c * W + ix_c                          # (B, N)
    flat = inp.reshape(B, C, H * W)
    vals = jax.vmap(lambda f, idx: jnp.take(f, idx, axis=1))(flat, flat_idx)   # (B, C, N)
    return vals * valid[:, None, :].astype(vals.dtype)  # zeros padding for OOB


def build_query_inputs(image, res, lr_image_feature, params):
    """Deduplicated, channel-major kernel inputs.

    Returns
      nb_t : (4, F+2, B*N) bfloat16   per-neighbour [q_feat, rel_coord]
      hr_t : (G,    B*N)   bfloat16   hi-res guide (shared by all 4 neighbours)
      res  : (1,    B*N)   float32    nearest-upsampled residual

    q_guide_lr is NOT materialized: lr_guide is lr_image_feature (== feat), so
    q_guide_lr == q_feat and its layer-0 contribution is folded into the weights.
    """
    B, _, H, W = image.shape
    N = H * W
    bf16 = jnp.bfloat16

    # F.interpolate(res, scale_factor=H/h_res, mode='nearest') then .view(bs, -1, 1)
    hr_res, wr_res = res.shape[2], res.shape[3]
    yi = jnp.floor(jnp.arange(H) * (hr_res / H)).astype(jnp.int32)
    xi = jnp.floor(jnp.arange(W) * (wr_res / W)).astype(jnp.int32)
    res_up = res[:, :, yi][:, :, :, xi]                       # (B, 1, H, W)
    res_row = res_up.reshape(1, B * N).astype(jnp.float32)    # (1, B*N)

    coord = make_coord((H, W)).reshape(-1, 2)                 # (N, 2)
    coord = jnp.broadcast_to(coord[None], (B, N, 2))          # (B, N, 2)

    # TODO(synk): make_edsr_baseline source was not provided; using a deterministic
    # single 3x3 conv (n_colors=3 -> guide_dim) in plain JAX as the image-encoder stand-in.
    hr_guide = lax.conv_general_dilated(
        image, params["enc_w"], window_strides=(1, 1), padding="SAME",
        dimension_numbers=("NCHW", "OIHW", "NCHW"),
    ) + params["enc_b"][None, :, None, None]

    feat = lr_image_feature                                   # feat == lr_guide in the module
    b, c, h, w = feat.shape

    feat_coord = jnp.transpose(make_coord((h, w)), (2, 0, 1))[None]   # (1, 2, h, w)
    feat_coord = jnp.broadcast_to(feat_coord, (b, 2, h, w))

    G = hr_guide.shape[1]
    q_guide_hr = grid_sample_nearest_cm(hr_guide, coord)              # (B, G, N)
    hr_t = jnp.transpose(q_guide_hr, (1, 0, 2)).reshape(G, B * N).astype(bf16)

    coord_cm = jnp.transpose(coord, (0, 2, 1))                        # (B, 2, N)
    scale_hw = jnp.array([h, w], dtype=jnp.float32)[None, :, None]
    rx = 1.0 / h
    ry = 1.0 / w

    nbs = []
    for vx in (-1, 1):
        for vy in (-1, 1):
            coord_ = coord.at[:, :, 0].add(vx * rx).at[:, :, 1].add(vy * ry)
            q_feat = grid_sample_nearest_cm(feat, coord_)             # (B, F, N)
            q_coord = grid_sample_nearest_cm(feat_coord, coord_)      # (B, 2, N)
            rel_coord = (coord_cm - q_coord) * scale_hw               # (B, 2, N)
            # q_guide_lr == q_feat (same tensor, same coords): deduplicated, folded
            # into the kernel weights in prepare_kernel_params().
            nb = jnp.concatenate([q_feat, rel_coord], axis=1)         # (B, F+2, N)
            nbs.append(jnp.transpose(nb, (1, 0, 2)).reshape(nb.shape[1], B * N).astype(bf16))
    nb_t = jnp.stack(nbs, axis=0)                                     # (4, F+2, B*N) bf16
    return nb_t, hr_t, res_row


def prepare_kernel_params(params, feat_dim, guide_dim, num_linears):
    """Split/fold/transpose the MLP weights for the deduplicated, channel-major kernel."""
    F_, G = feat_dim, guide_dim
    w0 = params["w0"]                         # (F + 2G + 2, h1), rows = [feat, hr, diff, rel]
    h1 = w0.shape[1]
    w0_f = w0[:F_]
    w0_hr = w0[F_:F_ + G]
    w0_diff = w0[F_ + G:F_ + 2 * G]
    w0_rel = w0[F_ + 2 * G:]
    bf16 = jnp.bfloat16
    kp = {
        # q_guide_lr == q_feat  =>  feat weights absorb -W0_diff; rel weights unchanged.
        "w0nb_t": jnp.concatenate([w0_f - w0_diff, w0_rel], axis=0).T.astype(bf16),  # (h1, F+2)
        "w0hr_t": (w0_hr + w0_diff).T.astype(bf16),                                   # (h1, G)
        "b0c": params["b0"].reshape(h1, 1).astype(jnp.float32),
        "mid": [],
    }
    for l in range(1, num_linears - 1):
        w = params[f"w{l}"]
        b = params[f"b{l}"]
        kp["mid"].append((w.T.astype(bf16), b.reshape(-1, 1).astype(jnp.float32)))
    w_out = params[f"w{num_linears - 1}"]
    b_out = params[f"b{num_linears - 1}"]
    kp["wout_t"] = w_out.T.astype(bf16)                            # (2, h_last)
    kp["bout_c"] = b_out.reshape(-1, 1).astype(jnp.float32)        # (2, 1)
    return kp


# ---------------------------------------------------------------------------
# Pallas kernel: shared hr-guide contribution + 4x imnet MLP -> online softmax -> residual
# ---------------------------------------------------------------------------

def _make_jiif_kernel(num_mid):
    """num_mid = number of hidden->hidden linears (len(hidden_list) - 1)."""

    def kernel(nb_ref, hr_ref, res_ref, w0nb_ref, w0hr_ref, b0_ref, *rest):
        out_ref = rest[-1]
        mids = rest[:2 * num_mid]
        wout_ref = rest[2 * num_mid]
        bout_ref = rest[2 * num_mid + 1]
        f32 = jnp.float32

        # Shared hi-res-guide layer-0 contribution, with b0 folded in: once per tile.
        hr_h0 = jnp.dot(w0hr_ref[...], hr_ref[...], preferred_element_type=f32) + b0_ref[...]

        def mlp(k):
            x = nb_ref[k]                                                 # (F+2, TN) bf16
            h = jnp.dot(w0nb_ref[...], x, preferred_element_type=f32)     # (h1, TN)
            h = jnp.maximum(h + hr_h0, 0.0).astype(jnp.bfloat16)
            for l in range(num_mid):
                w_ref, b_ref = mids[2 * l], mids[2 * l + 1]
                h = jnp.dot(w_ref[...], h, preferred_element_type=f32)
                h = jnp.maximum(h + b_ref[...], 0.0).astype(jnp.bfloat16)
            p = jnp.dot(wout_ref[...], h, preferred_element_type=f32) + bout_ref[...]  # (2, TN)
            return p[0:1, :], p[1:2, :]          # value channel, weight logit (lane-dense rows)

        # Online softmax over the 4 neighbours: only three (1, TN) f32 rows are carried
        # across iterations; per-neighbour (h, TN) activations die inside each iteration.
        p0, p1 = mlp(0)
        m = p1
        num = p0
        den = jnp.ones_like(p1)
        for k in range(1, 4):
            p0, p1 = mlp(k)
            m_new = jnp.maximum(m, p1)
            a = jnp.exp(m - m_new)
            e = jnp.exp(p1 - m_new)
            num = num * a + p0 * e
            den = den * a + e
            m = m_new

        out_ref[...] = res_ref[...] + num * pl.reciprocal(den, approx=True)

    return kernel


def jiif_query_pallas(nb_t, hr_t, res_row, kp, tile_n=None):
    _, c_nb, BN = nb_t.shape
    G = hr_t.shape[0]

    # Per-chip tile / VMEM policy (see _chip_policy); no host-side padding of BN:
    # the ragged last tile (if any) is masked by Pallas on store.
    max_tile, vmem_bytes, target_steps = _chip_policy()
    if tile_n is None:
        tile_n = max_tile
    tile_n = max(128, (min(int(tile_n), max_tile) // 128) * 128)
    bn_r = _round_up(BN, 128)
    tile_n = min(tile_n, bn_r)
    if target_steps > 1 and bn_r >= target_steps * 128:
        tile_n = min(tile_n, max(128, (bn_r // target_steps // 128) * 128))
    grid = (pl.cdiv(BN, tile_n),)

    nb = nb_t.astype(jnp.bfloat16)      # no-op: materialized in bf16 by build_query_inputs
    hr = hr_t.astype(jnp.bfloat16)
    rr = res_row.astype(jnp.float32)

    num_mid = len(kp["mid"])
    kernel = _make_jiif_kernel(num_mid)

    def _const_spec(arr):
        nd = arr.ndim
        return pl.BlockSpec(arr.shape, lambda i, _nd=nd: (0,) * _nd)

    in_specs = [
        pl.BlockSpec((4, c_nb, tile_n), lambda i: (0, 0, i)),   # nb_t
        pl.BlockSpec((G, tile_n), lambda i: (0, i)),            # hr_t
        pl.BlockSpec((1, tile_n), lambda i: (0, i)),            # res row
        _const_spec(kp["w0nb_t"]),
        _const_spec(kp["w0hr_t"]),
        _const_spec(kp["b0c"]),
    ]
    operands = [nb, hr, rr, kp["w0nb_t"], kp["w0hr_t"], kp["b0c"]]
    for w, b in kp["mid"]:
        in_specs += [_const_spec(w), _const_spec(b)]
        operands += [w, b]
    in_specs += [_const_spec(kp["wout_t"]), _const_spec(kp["bout_c"])]
    operands += [kp["wout_t"], kp["bout_c"]]

    out = pl.pallas_call(
        kernel,
        out_shape=jax.ShapeDtypeStruct((1, BN), jnp.float32),
        grid_spec=pltpu.PrefetchScalarGridSpec(
            num_scalar_prefetch=0,
            grid=grid,
            in_specs=in_specs,
            out_specs=pl.BlockSpec((1, tile_n), lambda i: (0, i)),
        ),
        compiler_params=pltpu.CompilerParams(
            dimension_semantics=("parallel",),
            vmem_limit_bytes=vmem_bytes,
        ),
    )(*operands)
    return out                                      # (1, BN)


def jiif_forward(image, res, lr_image_feature, params, hidden_list, tile_n=None):
    guide_dim = params["enc_w"].shape[0]
    feat_dim = lr_image_feature.shape[1]
    # The module subtracts q_guide_hr - q_guide_lr with lr_guide = lr_image_feature,
    # which requires guide_dim == feat_dim (true for the module defaults 128/128).
    # The q_guide_lr == q_feat dedup additionally relies on lr_guide being literally the
    # low-res feature map, exactly as in the module's forward().
    assert feat_dim == guide_dim, (feat_dim, guide_dim)
    B, _, H, W = image.shape
    nb_t, hr_t, res_row = build_query_inputs(image, res, lr_image_feature, params)
    kp = prepare_kernel_params(params, feat_dim, guide_dim, len(hidden_list) + 1)
    out_row = jiif_query_pallas(nb_t, hr_t, res_row, kp, tile_n=tile_n)
    return out_row.reshape(B, 1, H, W)


# ---------------------------------------------------------------------------
# Pure-JAX references (sanity checks for the kernel portion)
# ---------------------------------------------------------------------------

def _reference_query_f32(nb_t, hr_t, res_row, params, feat_dim, num_linears):
    """Exact f32 module math (original non-decomposed weights, exact softmax)."""
    F_ = feat_dim
    nb = nb_t.astype(jnp.float32)
    hr = hr_t.astype(jnp.float32)
    p0s, p1s = [], []
    for k in range(4):
        q_feat, rel = nb[k, :F_], nb[k, F_:]
        # q_guide_lr == q_feat in this module.
        x = jnp.concatenate([q_feat, hr, hr - q_feat, rel], axis=0).T     # (BN, C_in)
        a = x
        for l in range(num_linears - 1):
            a = jnp.maximum(a @ params[f"w{l}"] + params[f"b{l}"], 0.0)
        p = a @ params[f"w{num_linears - 1}"] + params[f"b{num_linears - 1}"]   # (BN, 2)
        p0s.append(p[:, 0])
        p1s.append(p[:, 1])
    p0 = jnp.stack(p0s, axis=-1)
    p1 = jnp.stack(p1s, axis=-1)
    wgt = jax.nn.softmax(p1, axis=-1)
    return res_row[0] + jnp.sum(p0 * wgt, axis=-1)                          # (BN,)


def _reference_query_matched(nb_t, hr_t, res_row, kp):
    """Mirrors the kernel math (bf16 operands, f32 accumulation, folded weights)."""
    f32 = jnp.float32
    nb = nb_t.astype(jnp.bfloat16)
    hr = hr_t.astype(jnp.bfloat16)
    hr_h0 = jnp.dot(kp["w0hr_t"], hr, preferred_element_type=f32) + kp["b0c"]
    p0s, p1s = [], []
    for k in range(4):
        h = jnp.dot(kp["w0nb_t"], nb[k], preferred_element_type=f32)
        h = jnp.maximum(h + hr_h0, 0.0).astype(jnp.bfloat16)
        for w, b in kp["mid"]:
            h = jnp.dot(w, h, preferred_element_type=f32)
            h = jnp.maximum(h + b, 0.0).astype(jnp.bfloat16)
        p = jnp.dot(kp["wout_t"], h, preferred_element_type=f32) + kp["bout_c"]
        p0s.append(p[0])
        p1s.append(p[1])
    p1 = jnp.stack(p1s)
    m = p1.max(axis=0)
    e = jnp.exp(p1 - m)
    den = e.sum(axis=0)
    num = sum(p0 * ek for p0, ek in zip(p0s, e))
    return res_row[0] + num / den                                           # (BN,)


# ---------------------------------------------------------------------------
# Main
# ---------------------------------------------------------------------------

if __name__ == "__main__":
    key = jax.random.PRNGKey(0)
    B = 2
    H = W = 16          # hi-res spatial
    h = w = 8           # lo-res spatial
    feat_dim = 32       # must equal guide_dim (module subtracts hr-guide - lr-feature)
    guide_dim = 32
    hidden = [128, 64]  # mlp_dim (scaled-down)
    in_dim = feat_dim + 2 + 2 * guide_dim   # = 98
    num_linears = len(hidden) + 1

    ks = jax.random.split(key, 12)
    params = {
        "enc_w": 0.1 * jax.random.normal(ks[0], (guide_dim, 3, 3, 3), jnp.float32),
        "enc_b": 0.1 * jax.random.normal(ks[1], (guide_dim,), jnp.float32),
        "w0": jax.random.normal(ks[2], (in_dim, hidden[0]), jnp.float32) / jnp.sqrt(in_dim),
        "b0": 0.01 * jax.random.normal(ks[3], (1, hidden[0]), jnp.float32),
        "w1": jax.random.normal(ks[4], (hidden[0], hidden[1]), jnp.float32) / jnp.sqrt(hidden[0]),
        "b1": 0.01 * jax.random.normal(ks[5], (1, hidden[1]), jnp.float32),
        "w2": jax.random.normal(ks[6], (hidden[1], 2), jnp.float32) / jnp.sqrt(hidden[1]),
        "b2": 0.01 * jax.random.normal(ks[7], (1, 2), jnp.float32),
    }

    image = jax.random.normal(ks[8], (B, 3, H, W), jnp.float32)
    res = jax.random.normal(ks[9], (B, 1, h, w), jnp.float32)
    lr_feat = jax.random.normal(ks[10], (B, feat_dim, h, w), jnp.float32)

    # Full forward (glue + Pallas kernel)
    out = jax.block_until_ready(jiif_forward(image, res, lr_feat, params, hidden))
    assert out.shape == (B, 1, H, W), out.shape

    # Check kernel output against pure-JAX references of the same math
    nb_t, hr_t, res_row = build_query_inputs(image, res, lr_feat, params)
    kp = prepare_kernel_params(params, feat_dim, guide_dim, num_linears)
    out_k = jax.block_until_ready(jiif_query_pallas(nb_t, hr_t, res_row, kp))[0]   # (BN,)

    ref_matched = _reference_query_matched(nb_t, hr_t, res_row, kp)
    ref_exact = _reference_query_f32(nb_t, hr_t, res_row, params, feat_dim, num_linears)

    err_matched = float(jnp.max(jnp.abs(out_k - ref_matched)))
    err_exact = float(jnp.max(jnp.abs(out_k - ref_exact)))
    assert err_matched < 1e-2, err_matched   # same bf16 math; online vs exact softmax + approx recip
    assert err_exact < 1.5e-1, err_exact     # f32 module semantics vs bf16 kernel

    print("KERNEL_OK")
</pallas_src>

<mosaic_0001>
module attributes {stable_mosaic.version = 11 : i64} {
  func.func @kernel(%arg0: i32, %arg1: memref<4x34x512xbf16, #tpu.memory_space<vmem>>, %arg2: memref<32x512xbf16, #tpu.memory_space<vmem>>, %arg3: memref<1x512xf32, #tpu.memory_space<vmem>>, %arg4: memref<128x34xbf16, #tpu.memory_space<vmem>>, %arg5: memref<128x32xbf16, #tpu.memory_space<vmem>>, %arg6: memref<128x1xf32, #tpu.memory_space<vmem>>, %arg7: memref<64x128xbf16, #tpu.memory_space<vmem>>, %arg8: memref<64x1xf32, #tpu.memory_space<vmem>>, %arg9: memref<2x64xbf16, #tpu.memory_space<vmem>>, %arg10: memref<2x1xf32, #tpu.memory_space<vmem>>, %arg11: memref<1x512xf32, #tpu.memory_space<vmem>>) attributes {dimension_semantics = [#tpu.dimension_semantics<parallel>], iteration_bounds = array<i64: 1>, scalar_prefetch = 0 : i64, scratch_operands = 0 : i64, tpu.core_type = #tpu.core_type<tc>, window_params = [{transform_indices = @transform_0, window_bounds = array<i64: 4, 34, 512>}, {transform_indices = @transform_1, window_bounds = array<i64: 32, 512>}, {transform_indices = @transform_2, window_bounds = array<i64: 1, 512>}, {pipeline_mode = #tpu.pipeline_mode<synchronous>, transform_indices = @transform_3, window_bounds = array<i64: 128, 34>}, {pipeline_mode = #tpu.pipeline_mode<synchronous>, transform_indices = @transform_4, window_bounds = array<i64: 128, 32>}, {pipeline_mode = #tpu.pipeline_mode<synchronous>, transform_indices = @transform_5, window_bounds = array<i64: 128, 1>}, {pipeline_mode = #tpu.pipeline_mode<synchronous>, transform_indices = @transform_6, window_bounds = array<i64: 64, 128>}, {pipeline_mode = #tpu.pipeline_mode<synchronous>, transform_indices = @transform_7, window_bounds = array<i64: 64, 1>}, {pipeline_mode = #tpu.pipeline_mode<synchronous>, transform_indices = @transform_8, window_bounds = array<i64: 2, 64>}, {pipeline_mode = #tpu.pipeline_mode<synchronous>, transform_indices = @transform_9, window_bounds = array<i64: 2, 1>}, {transform_indices = @transform_10, window_bounds = array<i64: 1, 512>}]} {
    %c0 = arith.constant 0 : index
    %c0_0 = arith.constant 0 : index
    %0 = vector.load %arg5[%c0, %c0_0] : memref<128x32xbf16, #tpu.memory_space<vmem>>, vector<128x32xbf16>
    %c0_1 = arith.constant 0 : index
    %c0_2 = arith.constant 0 : index
    %1 = vector.load %arg2[%c0_1, %c0_2] : memref<32x512xbf16, #tpu.memory_space<vmem>>, vector<32x512xbf16>
    %cst = arith.constant dense<0.000000e+00> : vector<128x512xf32>
    %2 = tpu.matmul %0, %1, %cst {dimension_numbers = #tpu.dot_dimension_numbers<[1], [0], [0], [1], [0, 0, 1, 1], [], []>} : vector<128x32xbf16>, vector<32x512xbf16>, vector<128x512xf32> -> vector<128x512xf32>
    %c0_3 = arith.constant 0 : index
    %c0_4 = arith.constant 0 : index
    %3 = vector.load %arg6[%c0_3, %c0_4] : memref<128x1xf32, #tpu.memory_space<vmem>>, vector<128x1xf32>
    %4 = vector.broadcast %3 : vector<128x1xf32> to vector<128x512xf32>
    %5 = arith.addf %2, %4 : vector<128x512xf32>
    %c0_5 = arith.constant 0 : index
    %c0_6 = arith.constant 0 : index
    %c0_7 = arith.constant 0 : index
    %6 = vector.load %arg1[%c0_5, %c0_6, %c0_7] : memref<4x34x512xbf16, #tpu.memory_space<vmem>>, vector<1x34x512xbf16>
    %7 = vector.shape_cast %6 : vector<1x34x512xbf16> to vector<34x512xbf16>
    %c0_8 = arith.constant 0 : index
    %c0_9 = arith.constant 0 : index
    %8 = vector.load %arg4[%c0_8, %c0_9] : memref<128x34xbf16, #tpu.memory_space<vmem>>, vector<128x34xbf16>
    %cst_10 = arith.constant dense<0.000000e+00> : vector<128x512xf32>
    %9 = tpu.matmul %8, %7, %cst_10 {dimension_numbers = #tpu.dot_dimension_numbers<[1], [0], [0], [1], [0, 0, 1, 1], [], []>} : vector<128x34xbf16>, vector<34x512xbf16>, vector<128x512xf32> -> vector<128x512xf32>
    %10 = arith.addf %9, %5 : vector<128x512xf32>
    %cst_11 = arith.constant 0.000000e+00 : f32
    %11 = vector.broadcast %cst_11 : f32 to vector<128x512xf32>
    %12 = arith.maximumf %10, %11 : vector<128x512xf32>
    %13 = arith.truncf %12 : vector<128x512xf32> to vector<128x512xbf16>
    %c0_12 = arith.constant 0 : index
    %c0_13 = arith.constant 0 : index
    %14 = vector.load %arg7[%c0_12, %c0_13] : memref<64x128xbf16, #tpu.memory_space<vmem>>, vector<64x128xbf16>
    %cst_14 = arith.constant dense<0.000000e+00> : vector<64x512xf32>
    %15 = tpu.matmul %14, %13, %cst_14 {dimension_numbers = #tpu.dot_dimension_numbers<[1], [0], [0], [1], [0, 0, 1, 1], [], []>} : vector<64x128xbf16>, vector<128x512xbf16>, vector<64x512xf32> -> vector<64x512xf32>
    %c0_15 = arith.constant 0 : index
    %c0_16 = arith.constant 0 : index
    %16 = vector.load %arg8[%c0_15, %c0_16] : memref<64x1xf32, #tpu.memory_space<vmem>>, vector<64x1xf32>
    %17 = vector.broadcast %16 : vector<64x1xf32> to vector<64x512xf32>
    %18 = arith.addf %15, %17 : vector<64x512xf32>
    %cst_17 = arith.constant 0.000000e+00 : f32
    %19 = vector.broadcast %cst_17 : f32 to vector<64x512xf32>
    %20 = arith.maximumf %18, %19 : vector<64x512xf32>
    %21 = arith.truncf %20 : vector<64x512xf32> to vector<64x512xbf16>
    %c0_18 = arith.constant 0 : index
    %c0_19 = arith.constant 0 : index
    %22 = vector.load %arg9[%c0_18, %c0_19] : memref<2x64xbf16, #tpu.memory_space<vmem>>, vector<2x64xbf16>
    %cst_20 = arith.constant dense<0.000000e+00> : vector<2x512xf32>
    %23 = tpu.matmul %22, %21, %cst_20 {dimension_numbers = #tpu.dot_dimension_numbers<[1], [0], [0], [1], [0, 0, 1, 1], [], []>} : vector<2x64xbf16>, vector<64x512xbf16>, vector<2x512xf32> -> vector<2x512xf32>
    %c0_21 = arith.constant 0 : index
    %c0_22 = arith.constant 0 : index
    %24 = vector.load %arg10[%c0_21, %c0_22] : memref<2x1xf32, #tpu.memory_space<vmem>>, vector<2x1xf32>
    %25 = vector.broadcast %24 : vector<2x1xf32> to vector<2x512xf32>
    %26 = arith.addf %23, %25 : vector<2x512xf32>
    %27 = vector.extract_strided_slice %26 {offsets = [0, 0], sizes = [1, 512], strides = [1, 1]} : vector<2x512xf32> to vector<1x512xf32>
    %28 = vector.extract_strided_slice %26 {offsets = [1, 0], sizes = [1, 512], strides = [1, 1]} : vector<2x512xf32> to vector<1x512xf32>
    %cst_23 = arith.constant 1.000000e+00 : f32
    %29 = vector.broadcast %cst_23 : f32 to vector<1x512xf32>
    %c1 = arith.constant 1 : index
    %c0_24 = arith.constant 0 : index
    %c0_25 = arith.constant 0 : index
    %30 = vector.load %arg1[%c1, %c0_24, %c0_25] : memref<4x34x512xbf16, #tpu.memory_space<vmem>>, vector<1x34x512xbf16>
    %31 = vector.shape_cast %30 : vector<1x34x512xbf16> to vector<34x512xbf16>
    %c0_26 = arith.constant 0 : index
    %c0_27 = arith.constant 0 : index
    %32 = vector.load %arg4[%c0_26, %c0_27] : memref<128x34xbf16, #tpu.memory_space<vmem>>, vector<128x34xbf16>
    %cst_28 = arith.constant dense<0.000000e+00> : vector<128x512xf32>
    %33 = tpu.matmul %32, %31, %cst_28 {dimension_numbers = #tpu.dot_dimension_numbers<[1], [0], [0], [1], [0, 0, 1, 1], [], []>} : vector<128x34xbf16>, vector<34x512xbf16>, vector<128x512xf32> -> vector<128x512xf32>
    %34 = arith.addf %33, %5 : vector<128x512xf32>
    %cst_29 = arith.constant 0.000000e+00 : f32
    %35 = vector.broadcast %cst_29 : f32 to vector<128x512xf32>
    %36 = arith.maximumf %34, %35 : vector<128x512xf32>
    %37 = arith.truncf %36 : vector<128x512xf32> to vector<128x512xbf16>
    %c0_30 = arith.constant 0 : index
    %c0_31 = arith.constant 0 : index
    %38 = vector.load %arg7[%c0_30, %c0_31] : memref<64x128xbf16, #tpu.memory_space<vmem>>, vector<64x128xbf16>
    %cst_32 = arith.constant dense<0.000000e+00> : vector<64x512xf32>
    %39 = tpu.matmul %38, %37, %cst_32 {dimension_numbers = #tpu.dot_dimension_numbers<[1], [0], [0], [1], [0, 0, 1, 1], [], []>} : vector<64x128xbf16>, vector<128x512xbf16>, vector<64x512xf32> -> vector<64x512xf32>
    %c0_33 = arith.constant 0 : index
    %c0_34 = arith.constant 0 : index
    %40 = vector.load %arg8[%c0_33, %c0_34] : memref<64x1xf32, #tpu.memory_space<vmem>>, vector<64x1xf32>
    %41 = vector.broadcast %40 : vector<64x1xf32> to vector<64x512xf32>
    %42 = arith.addf %39, %41 : vector<64x512xf32>
    %cst_35 = arith.constant 0.000000e+00 : f32
    %43 = vector.broadcast %cst_35 : f32 to vector<64x512xf32>
    %44 = arith.maximumf %42, %43 : vector<64x512xf32>
    %45 = arith.truncf %44 : vector<64x512xf32> to vector<64x512xbf16>
    %c0_36 = arith.constant 0 : index
    %c0_37 = arith.constant 0 : index
    %46 = vector.load %arg9[%c0_36, %c0_37] : memref<2x64xbf16, #tpu.memory_space<vmem>>, vector<2x64xbf16>
    %cst_38 = arith.constant dense<0.000000e+00> : vector<2x512xf32>
    %47 = tpu.matmul %46, %45, %cst_38 {dimension_numbers = #tpu.dot_dimension_numbers<[1], [0], [0], [1], [0, 0, 1, 1], [], []>} : vector<2x64xbf16>, vector<64x512xbf16>, vector<2x512xf32> -> vector<2x512xf32>
    %c0_39 = arith.constant 0 : index
    %c0_40 = arith.constant 0 : index
    %48 = vector.load %arg10[%c0_39, %c0_40] : memref<2x1xf32, #tpu.memory_space<vmem>>, vector<2x1xf32>
    %49 = vector.broadcast %48 : vector<2x1xf32> to vector<2x512xf32>
    %50 = arith.addf %47, %49 : vector<2x512xf32>
    %51 = vector.extract_strided_slice %50 {offsets = [0, 0], sizes = [1, 512], strides = [1, 1]} : vector<2x512xf32> to vector<1x512xf32>
    %52 = vector.extract_strided_slice %50 {offsets = [1, 0], sizes = [1, 512], strides = [1, 1]} : vector<2x512xf32> to vector<1x512xf32>
    %53 = arith.maximumf %28, %52 : vector<1x512xf32>
    %54 = arith.subf %28, %53 : vector<1x512xf32>
    %55 = math.exp %54 : vector<1x512xf32>
    %56 = arith.subf %52, %53 : vector<1x512xf32>
    %57 = math.exp %56 : vector<1x512xf32>
    %58 = arith.mulf %27, %55 : vector<1x512xf32>
    %59 = arith.mulf %51, %57 : vector<1x512xf32>
    %60 = arith.addf %58, %59 : vector<1x512xf32>
    %61 = arith.mulf %29, %55 : vector<1x512xf32>
    %62 = arith.addf %61, %57 : vector<1x512xf32>
    %c2 = arith.constant 2 : index
    %c0_41 = arith.constant 0 : index
    %c0_42 = arith.constant 0 : index
    %63 = vector.load %arg1[%c2, %c0_41, %c0_42] : memref<4x34x512xbf16, #tpu.memory_space<vmem>>, vector<1x34x512xbf16>
    %64 = vector.shape_cast %63 : vector<1x34x512xbf16> to vector<34x512xbf16>
    %c0_43 = arith.constant 0 : index
    %c0_44 = arith.constant 0 : index
    %65 = vector.load %arg4[%c0_43, %c0_44] : memref<128x34xbf16, #tpu.memory_space<vmem>>, vector<128x34xbf16>
    %cst_45 = arith.constant dense<0.000000e+00> : vector<128x512xf32>
    %66 = tpu.matmul %65, %64, %cst_45 {dimension_numbers = #tpu.dot_dimension_numbers<[1], [0], [0], [1], [0, 0, 1, 1], [], []>} : vector<128x34xbf16>, vector<34x512xbf16>, vector<128x512xf32> -> vector<128x512xf32>
    %67 = arith.addf %66, %5 : vector<128x512xf32>
    %cst_46 = arith.constant 0.000000e+00 : f32
    %68 = vector.broadcast %cst_46 : f32 to vector<128x512xf32>
    %69 = arith.maximumf %67, %68 : vector<128x512xf32>
    %70 = arith.truncf %69 : vector<128x512xf32> to vector<128x512xbf16>
    %c0_47 = arith.constant 0 : index
    %c0_48 = arith.constant 0 : index
    %71 = vector.load %arg7[%c0_47, %c0_48] : memref<64x128xbf16, #tpu.memory_space<vmem>>, vector<64x128xbf16>
    %cst_49 = arith.constant dense<0.000000e+00> : vector<64x512xf32>
    %72 = tpu.matmul %71, %70, %cst_49 {dimension_numbers = #tpu.dot_dimension_numbers<[1], [0], [0], [1], [0, 0, 1, 1], [], []>} : vector<64x128xbf16>, vector<128x512xbf16>, vector<64x512xf32> -> vector<64x512xf32>
    %c0_50 = arith.constant 0 : index
    %c0_51 = arith.constant 0 : index
    %73 = vector.load %arg8[%c0_50, %c0_51] : memref<64x1xf32, #tpu.memory_space<vmem>>, vector<64x1xf32>
    %74 = vector.broadcast %73 : vector<64x1xf32> to vector<64x512xf32>
    %75 = arith.addf %72, %74 : vector<64x512xf32>
    %cst_52 = arith.constant 0.000000e+00 : f32
    %76 = vector.broadcast %cst_52 : f32 to vector<64x512xf32>
    %77 = arith.maximumf %75, %76 : vector<64x512xf32>
    %78 = arith.truncf %77 : vector<64x512xf32> to vector<64x512xbf16>
    %c0_53 = arith.constant 0 : index
    %c0_54 = arith.constant 0 : index
    %79 = vector.load %arg9[%c0_53, %c0_54] : memref<2x64xbf16, #tpu.memory_space<vmem>>, vector<2x64xbf16>
    %cst_55 = arith.constant dense<0.000000e+00> : vector<2x512xf32>
    %80 = tpu.matmul %79, %78, %cst_55 {dimension_numbers = #tpu.dot_dimension_numbers<[1], [0], [0], [1], [0, 0, 1, 1], [], []>} : vector<2x64xbf16>, vector<64x512xbf16>, vector<2x512xf32> -> vector<2x512xf32>
    %c0_56 = arith.constant 0 : index
    %c0_57 = arith.constant 0 : index
    %81 = vector.load %arg10[%c0_56, %c0_57] : memref<2x1xf32, #tpu.memory_space<vmem>>, vector<2x1xf32>
    %82 = vector.broadcast %81 : vector<2x1xf32> to vector<2x512xf32>
    %83 = arith.addf %80, %82 : vector<2x512xf32>
    %84 = vector.extract_strided_slice %83 {offsets = [0, 0], sizes = [1, 512], strides = [1, 1]} : vector<2x512xf32> to vector<1x512xf32>
    %85 = vector.extract_strided_slice %83 {offsets = [1, 0], sizes = [1, 512], strides = [1, 1]} : vector<2x512xf32> to vector<1x512xf32>
    %86 = arith.maximumf %53, %85 : vector<1x512xf32>
    %87 = arith.subf %53, %86 : vector<1x512xf32>
    %88 = math.exp %87 : vector<1x512xf32>
    %89 = arith.subf %85, %86 : vector<1x512xf32>
    %90 = math.exp %89 : vector<1x512xf32>
    %91 = arith.mulf %60, %88 : vector<1x512xf32>
    %92 = arith.mulf %84, %90 : vector<1x512xf32>
    %93 = arith.addf %91, %92 : vector<1x512xf32>
    %94 = arith.mulf %62, %88 : vector<1x512xf32>
    %95 = arith.addf %94, %90 : vector<1x512xf32>
    %c3 = arith.constant 3 : index
    %c0_58 = arith.constant 0 : index
    %c0_59 = arith.constant 0 : index
    %96 = vector.load %arg1[%c3, %c0_58, %c0_59] : memref<4x34x512xbf16, #tpu.memory_space<vmem>>, vector<1x34x512xbf16>
    %97 = vector.shape_cast %96 : vector<1x34x512xbf16> to vector<34x512xbf16>
    %c0_60 = arith.constant 0 : index
    %c0_61 = arith.constant 0 : index
    %98 = vector.load %arg4[%c0_60, %c0_61] : memref<128x34xbf16, #tpu.memory_space<vmem>>, vector<128x34xbf16>
    %cst_62 = arith.constant dense<0.000000e+00> : vector<128x512xf32>
    %99 = tpu.matmul %98, %97, %cst_62 {dimension_numbers = #tpu.dot_dimension_numbers<[1], [0], [0], [1], [0, 0, 1, 1], [], []>} : vector<128x34xbf16>, vector<34x512xbf16>, vector<128x512xf32> -> vector<128x512xf32>
    %100 = arith.addf %99, %5 : vector<128x512xf32>
    %cst_63 = arith.constant 0.000000e+00 : f32
    %101 = vector.broadcast %cst_63 : f32 to vector<128x512xf32>
    %102 = arith.maximumf %100, %101 : vector<128x512xf32>
    %103 = arith.truncf %102 : vector<128x512xf32> to vector<128x512xbf16>
    %c0_64 = arith.constant 0 : index
    %c0_65 = arith.constant 0 : index
    %104 = vector.load %arg7[%c0_64, %c0_65] : memref<64x128xbf16, #tpu.memory_space<vmem>>, vector<64x128xbf16>
    %cst_66 = arith.constant dense<0.000000e+00> : vector<64x512xf32>
    %105 = tpu.matmul %104, %103, %cst_66 {dimension_numbers = #tpu.dot_dimension_numbers<[1], [0], [0], [1], [0, 0, 1, 1], [], []>} : vector<64x128xbf16>, vector<128x512xbf16>, vector<64x512xf32> -> vector<64x512xf32>
    %c0_67 = arith.constant 0 : index
    %c0_68 = arith.constant 0 : index
    %106 = vector.load %arg8[%c0_67, %c0_68] : memref<64x1xf32, #tpu.memory_space<vmem>>, vector<64x1xf32>
    %107 = vector.broadcast %106 : vector<64x1xf32> to vector<64x512xf32>
    %108 = arith.addf %105, %107 : vector<64x512xf32>
    %cst_69 = arith.constant 0.000000e+00 : f32
    %109 = vector.broadcast %cst_69 : f32 to vector<64x512xf32>
    %110 = arith.maximumf %108, %109 : vector<64x512xf32>
    %111 = arith.truncf %110 : vector<64x512xf32> to vector<64x512xbf16>
    %c0_70 = arith.constant 0 : index
    %c0_71 = arith.constant 0 : index
    %112 = vector.load %arg9[%c0_70, %c0_71] : memref<2x64xbf16, #tpu.memory_space<vmem>>, vector<2x64xbf16>
    %cst_72 = arith.constant dense<0.000000e+00> : vector<2x512xf32>
    %113 = tpu.matmul %112, %111, %cst_72 {dimension_numbers = #tpu.dot_dimension_numbers<[1], [0], [0], [1], [0, 0, 1, 1], [], []>} : vector<2x64xbf16>, vector<64x512xbf16>, vector<2x512xf32> -> vector<2x512xf32>
    %c0_73 = arith.constant 0 : index
    %c0_74 = arith.constant 0 : index
    %114 = vector.load %arg10[%c0_73, %c0_74] : memref<2x1xf32, #tpu.memory_space<vmem>>, vector<2x1xf32>
    %115 = vector.broadcast %114 : vector<2x1xf32> to vector<2x512xf32>
    %116 = arith.addf %113, %115 : vector<2x512xf32>
    %117 = vector.extract_strided_slice %116 {offsets = [0, 0], sizes = [1, 512], strides = [1, 1]} : vector<2x512xf32> to vector<1x512xf32>
    %118 = vector.extract_strided_slice %116 {offsets = [1, 0], sizes = [1, 512], strides = [1, 1]} : vector<2x512xf32> to vector<1x512xf32>
    %119 = arith.maximumf %86, %118 : vector<1x512xf32>
    %120 = arith.subf %86, %119 : vector<1x512xf32>
    %121 = math.exp %120 : vector<1x512xf32>
    %122 = arith.subf %118, %119 : vector<1x512xf32>
    %123 = math.exp %122 : vector<1x512xf32>
    %124 = arith.mulf %93, %121 : vector<1x512xf32>
    %125 = arith.mulf %117, %123 : vector<1x512xf32>
    %126 = arith.addf %124, %125 : vector<1x512xf32>
    %127 = arith.mulf %95, %121 : vector<1x512xf32>
    %128 = arith.addf %127, %123 : vector<1x512xf32>
    %c0_75 = arith.constant 0 : index
    %c0_76 = arith.constant 0 : index
    %129 = vector.load %arg3[%c0_75, %c0_76] : memref<1x512xf32, #tpu.memory_space<vmem>>, vector<1x512xf32>
    %130 = tpu.reciprocal %128 {approx = true} : vector<1x512xf32> -> vector<1x512xf32>
    %131 = arith.mulf %126, %130 : vector<1x512xf32>
    %132 = arith.addf %129, %131 : vector<1x512xf32>
    %c0_77 = arith.constant 0 : index
    %c0_78 = arith.constant 0 : index
    %133 = vector.load %arg11[%c0_77, %c0_78] : memref<1x512xf32, #tpu.memory_space<vmem>>, vector<1x512xf32>
    tpu.vector_store %arg11[%c0_77, %c0_78], %132 {strides = array<i32>} : memref<1x512xf32, #tpu.memory_space<vmem>>, vector<1x512xf32>,
    return
  }
  func.func @transform_0(%arg0: i32) -> (i32, i32, i32) {
    %c0_i32 = arith.constant 0 : i32
    %c0_i32_0 = arith.constant 0 : i32
    %c0_i32_1 = arith.constant 0 : i32
    return %c0_i32, %c0_i32_0, %arg0 : i32, i32, i32
  }
  func.func @transform_1(%arg0: i32) -> (i32, i32) {
    %c0_i32 = arith.constant 0 : i32
    %c0_i32_0 = arith.constant 0 : i32
    return %c0_i32, %arg0 : i32, i32
  }
  func.func @transform_2(%arg0: i32) -> (i32, i32) {
    %c0_i32 = arith.constant 0 : i32
    %c0_i32_0 = arith.constant 0 : i32
    return %c0_i32, %arg0 : i32, i32
  }
  func.func @transform_3(%arg0: i32) -> (i32, i32) {
    %c0_i32 = arith.constant 0 : i32
    %c0_i32_0 = arith.constant 0 : i32
    %c0_i32_1 = arith.constant 0 : i32
    return %c0_i32, %c0_i32_0 : i32, i32
  }
  func.func @transform_4(%arg0: i32) -> (i32, i32) {
    %c0_i32 = arith.constant 0 : i32
    %c0_i32_0 = arith.constant 0 : i32
    %c0_i32_1 = arith.constant 0 : i32
    return %c0_i32, %c0_i32_0 : i32, i32
  }
  func.func @transform_5(%arg0: i32) -> (i32, i32) {
    %c0_i32 = arith.constant 0 : i32
    %c0_i32_0 = arith.constant 0 : i32
    %c0_i32_1 = arith.constant 0 : i32
    return %c0_i32, %c0_i32_0 : i32, i32
  }
  func.func @transform_6(%arg0: i32) -> (i32, i32) {
    %c0_i32 = arith.constant 0 : i32
    %c0_i32_0 = arith.constant 0 : i32
    %c0_i32_1 = arith.constant 0 : i32
    return %c0_i32, %c0_i32_0 : i32, i32
  }
  func.func @transform_7(%arg0: i32) -> (i32, i32) {
    %c0_i32 = arith.constant 0 : i32
    %c0_i32_0 = arith.constant 0 : i32
    %c0_i32_1 = arith.constant 0 : i32
    return %c0_i32, %c0_i32_0 : i32, i32
  }
  func.func @transform_8(%arg0: i32) -> (i32, i32) {
    %c0_i32 = arith.constant 0 : i32
    %c0_i32_0 = arith.constant 0 : i32
    %c0_i32_1 = arith.constant 0 : i32
    return %c0_i32, %c0_i32_0 : i32, i32
  }
  func.func @transform_9(%arg0: i32) -> (i32, i32) {
    %c0_i32 = arith.constant 0 : i32
    %c0_i32_0 = arith.constant 0 : i32
    %c0_i32_1 = arith.constant 0 : i32
    return %c0_i32, %c0_i32_0 : i32, i32
  }
  func.func @transform_10(%arg0: i32) -> (i32, i32) {
    %c0_i32 = arith.constant 0 : i32
    %c0_i32_0 = arith.constant 0 : i32
    return %c0_i32, %arg0 : i32, i32
  }
}

</mosaic_0001>

<bundles_post_ra>
// kernel: tpu_custom_call.1
= control target key start
LH: loop header
LB: loop body
LE: loop exit
PB: predicated region body
PF: predicated region fallthrough
CT: control target
= control target key end

     0   :  { %v6561_v2 = vmov 0   ;;  %vm237_vm0 = vcmask 261120   ;;  %vm629_vm1 = vcmask 1040384   ;;  %s6550_s0 = inlined_call_operand.vmem [shape: bf16[4,34,512], index: 0, kind: input, shape index: {}]   ;;  %s6551_s1 = inlined_call_operand.vmem [shape: bf16[32,512], index: 1, kind: input, shape index: {}]   ;;  %s6552_s2 = inlined_call_operand.vmem [shape: f32[1,512], index: 2, kind: input, shape index: {}]   ;;  %s6553_s3 = inlined_call_operand.vmem [shape: bf16[128,34], index: 3, kind: input, shape index: {}]   ;;  %s6554_s4 = inlined_call_operand.vmem [shape: bf16[128,32], index: 4, kind: input, shape index: {}]   ;;  %s6555_s5 = inlined_call_operand.vmem [shape: f32[128,1], index: 5, kind: input, shape index: {}]   ;;  %s6556_s6 = inlined_call_operand.vmem [shape: bf16[64,128], index: 6, kind: input, shape index: {}]   ;;  %s6557_s7 = inlined_call_operand.vmem [shape: f32[64,1], index: 7, kind: input, shape index: {}]   ;;  %s6558_s8 = inlined_call_operand.vmem [shape: bf16[2,64], index: 8, kind: input, shape index: {}]   ;;  %s6559_s9 = inlined_call_operand.vmem [shape: f32[2,1], index: 9, kind: input, shape index: {}]   ;;  %s6560_s10 = inlined_call_operand.hbm [shape: f32[1,512], index: 10, kind: output, shape index: {}]  }
   0x1   :  { %v3833_v0 = vld [vmem:[%s6551_s1 + $0x24] ss:$16 sps:$4 sm:$0xff]   ;;  %v3835_v1 = vld [vmem:[%s6551_s1 + $0x2c] ss:$16 sps:$4 sm:$0xff]   ;;  %294 = vmatprep.mubr.bf16.mxu0 %v6561_v2  ;;  %407 = vmatprep.mubr.bf16.mxu1 %v6561_v2  ;;  %v3837_v3 = vld [vmem:[%s6551_s1 + $0x20] ss:$16 sps:$4 sm:$0xff]  }
   0x2   :  { %274 = vmatprep.subr.bf16.mxu0 %v3833_v0  ;;  %v3838_v4 = vld [vmem:[%s6551_s1 + $0x28] ss:$16 sps:$4 sm:$0xff]   ;;  %3831 = vset.pattern.permute.xlu0 %v6561_v2  ;;  %v3839_v5 = vld [vmem:[%s6551_s1 + $0x4] ss:$16 sps:$4 sm:$0xff]   ;;  %v3841_v6 = vld [vmem:[%s6551_s1 + $0xc] ss:$16 sps:$4 sm:$0xff]  }
   0x3   :  { %387 = vmatprep.subr.bf16.mxu1 %v3835_v1  ;;  %3832 = vset.pattern.permute.xlu1 %v6561_v2  ;;  %v3843_v7 = vld [vmem:[%s6551_s1] ss:$16 sps:$4 sm:$0xff]   ;;  %v3844_v8 = vld [vmem:[%s6551_s1 + $0x8] ss:$16 sps:$4 sm:$0xff]   ;;  %v3858_v22 = vld [vmem:[%s6550_s0 + $0x24] ss:$16 sps:$4 sm:$0xff]  }
   0x4   :  { %275 = vmatpush1.bf16.msra.mxu0 %v3837_v3  ;;  %388 = vmatpush1.bf16.msra.mxu1 %v3838_v4  ;;  %v3845_v9 = vld [vmem:[%s6554_s4] sm:$0xff]   ;;  %v497_v11 = vld [vmem:[%s6550_s0 + $0x48] sm:$0x11]  ;;  %v75_v16 = vld [vmem:[%s6555_s5 + $0x70] sm:$0xff] }
   0x5   :  { %276 = vmatprep.subr.bf16.mxu0 %v3839_v5  ;;  %389 = vmatprep.subr.bf16.mxu1 %v3841_v6  ;;  %v496_v10 = vld [vmem:[%s6550_s0 + $0x40] sm:$0x11]  ;;  %v3677_v13 = vcombine.high %v497_v11, %v497_v11  ;;  %v3676_v15 = vcombine.low %v497_v11, %v497_v11  ;;  %v3846_v19 = vld [vmem:[%s6554_s4 + $0x8] sm:$0xff]   ;;  %v76_v21 = vld [vmem:[%s6555_s5 + $0x78] sm:$0xff] }
   0x6   :  { %v3675_v12 = vcombine.high %v496_v10, %v496_v10  ;;  %v3674_v14 = vcombine.low %v496_v10, %v496_v10  ;;  %v73_v17 = vld [vmem:[%s6555_s5 + $0x60] sm:$0xff]  ;;  %149 = vperm.xlu0 %3831, %v75_v16   ;;  %v74_v23 = vld [vmem:[%s6555_s5 + $0x68] sm:$0xff]  ;;  %v71_v26 = vld [vmem:[%s6555_s5 + $0x50] sm:$0xff] }
   0x7   :  { %v637_v20 = vsel %vm629_vm1, %v3676_v15, 0  ;;  %139 = vperm.xlu1 %3832, %v73_v17   ;;  %v3861_v24 = vld [vmem:[%s6550_s0 + $0x2c] ss:$16 sps:$4 sm:$0xff]   ;;  %v3856_v25 = vld [vmem:[%s6550_s0 + $0x20] ss:$16 sps:$4 sm:$0xff]  }
   0x8   :  { %277 = vmatpush1.bf16.msra.mxu0 %v3843_v7  ;;  %390 = vmatpush1.bf16.msra.mxu1 %v3844_v8  ;;  %v631_v18 = vsel %vm629_vm1, %v3674_v14, 0  ;;  %v3859_v27 = vld [vmem:[%s6550_s0 + $0x28] ss:$16 sps:$4 sm:$0xff]   ;;  %v3865_v28 = vld [vmem:[%s6550_s0 + $0x4] ss:$16 sps:$4 sm:$0xff]  }
   0x9   :  { %3678 = vmatprep.subr.msk.bf16.mxu0 %vm629_vm1, %v3675_v12  ;;  %3687 = vmatprep.subr.msk.bf16.mxu1 %vm629_vm1, %v3677_v13  ;;  %v3847_v29 = vld [vmem:[%s6554_s4 + $0x10] sm:$0xff]   ;;  %v72_v30 = vld [vmem:[%s6555_s5 + $0x58] sm:$0xff]  ;;  %v69_v33 = vld [vmem:[%s6555_s5 + $0x40] sm:$0xff] }
   0xa   :  { %154 = vperm.xlu0 %3831, %v76_v21   ;;  %v3863_v31 = vld [vmem:[%s6550_s0] ss:$16 sps:$4 sm:$0xff]   ;;  %v3868_v32 = vld [vmem:[%s6550_s0 + $0xc] ss:$16 sps:$4 sm:$0xff]   ;;  %v3866_v34 = vld [vmem:[%s6550_s0 + $0x8] ss:$16 sps:$4 sm:$0xff]  }
   0xb   :  { %3642 = vmatmul.mubr.msk.bf16.vlgmr.msra.gmra.mxu0 %vm237_vm0, %v3845_v9  ;;  %3650 = vmatmul.mubr.msk.bf16.vlgmr.msra.gmra.mxu1 %vm237_vm0, %v3845_v9  ;;  %v70_v35 = vld [vmem:[%s6555_s5 + $0x48] sm:$0xff]  ;;  %v67_v36 = vld [vmem:[%s6555_s5 + $0x30] sm:$0xff]  ;;  %v3848_v37 = vld [vmem:[%s6554_s4 + $0x18] sm:$0xff]  }
   0xc   :  { %304 = vmatprep.mubr.bf16.mxu0 %v6561_v2  ;;  %417 = vmatprep.mubr.bf16.mxu1 %v6561_v2  ;;  %v68_v38 = vld [vmem:[%s6555_s5 + $0x38] sm:$0xff]  ;;  %v65_v39 = vld [vmem:[%s6555_s5 + $0x20] sm:$0xff]  ;;  %v66_v40 = vld [vmem:[%s6555_s5 + $0x28] sm:$0xff] }
   0xd   :  { %653 = vmatpush1.bf16.msra.mxu0 %v631_v18  ;;  %766 = vmatpush1.bf16.msra.mxu1 %v637_v20  ;;  %v63_v41 = vld [vmem:[%s6555_s5 + $0x10] sm:$0xff]  ;;  %v64_v42 = vld [vmem:[%s6555_s5 + $0x18] sm:$0xff]  ;;  %v3849_v43 = vld [vmem:[%s6554_s4 + $0x20] sm:$0xff]  }
   0xe   :  { %654 = vmatprep.subr.bf16.mxu0 %v3858_v22  ;;  %144 = vperm.xlu1 %3832, %v74_v23   ;;  %v61_v44 = vld [vmem:[%s6555_s5] sm:$0xff]  ;;  %v62_v45 = vld [vmem:[%s6555_s5 + $0x8] sm:$0xff]  ;;  %v978_v46 = vld [vmem:[%s6557_s7 + $0x30] sm:$0xff] }
   0xf   :  { %767 = vmatprep.subr.bf16.mxu1 %v3861_v24  ;;  %129 = vperm.xlu0 %3831, %v71_v26   ;;  %v979_v47 = vld [vmem:[%s6557_s7 + $0x38] sm:$0xff] }
  0x11   :  { %655 = vmatpush1.bf16.msra.mxu0 %v3856_v25  ;;  %768 = vmatpush1.bf16.msra.mxu1 %v3859_v27 }
  0x12   :  { %656 = vmatprep.subr.bf16.mxu0 %v3865_v28  ;;  %769 = vmatprep.subr.bf16.mxu1 %v3868_v32 }
  0x13   :  { %3643 = vmatmul.mubr.msk.bf16.gmra.mxu0 %vm237_vm0, %v3846_v19  ;;  %3651 = vmatmul.mubr.msk.bf16.gmra.mxu1 %vm237_vm0, %v3846_v19 }
  0x14   :  { %314 = vmatprep.mubr.bf16.mxu0 %v6561_v2  ;;  %427 = vmatprep.mubr.bf16.mxu1 %v6561_v2 }
  0x15   :  { %134 = vperm.xlu1 %3832, %v72_v30   ;;  %119 = vperm.xlu0 %3831, %v69_v33  }
  0x16   :  { %657 = vmatpush1.bf16.msra.mxu0 %v3863_v31  ;;  %770 = vmatpush1.bf16.msra.mxu1 %v3866_v34 }
  0x19   :  { %124 = vperm.xlu1 %3832, %v70_v35   ;;  %109 = vperm.xlu0 %3831, %v67_v36  }
  0x1b   :  { %3644 = vmatmul.mubr.msk.bf16.gmra.mxu0 %vm237_vm0, %v3847_v29  ;;  %3652 = vmatmul.mubr.msk.bf16.gmra.mxu1 %vm237_vm0, %v3847_v29 }
  0x1c   :  { %324 = vmatprep.mubr.bf16.mxu0 %v6561_v2  ;;  %437 = vmatprep.mubr.bf16.mxu1 %v6561_v2 }
  0x1d   :  { %114 = vperm.xlu1 %3832, %v68_v38   ;;  %99 = vperm.xlu0 %3831, %v65_v39  }
  0x21   :  { %104 = vperm.xlu1 %3832, %v66_v40   ;;  %89 = vperm.xlu0 %3831, %v63_v41  }
  0x23   :  { %3645 = vmatmul.mubr.msk.bf16.gmra.mxu0 %vm237_vm0, %v3848_v37  ;;  %3653 = vmatmul.mubr.msk.bf16.gmra.mxu1 %vm237_vm0, %v3848_v37 }
  0x24   :  { %334 = vmatprep.mubr.bf16.mxu0 %v6561_v2  ;;  %447 = vmatprep.mubr.bf16.mxu1 %v6561_v2 }
  0x25   :  { %94 = vperm.xlu1 %3832, %v64_v42   ;;  %79 = vperm.xlu0 %3831, %v61_v44  }
  0x29   :  { %84 = vperm.xlu1 %3832, %v62_v45   ;;  %1012 = vperm.xlu0 %3831, %v978_v46  }
  0x2b   :  { %3646 = vmatmul.mubr.msk.bf16.gmra.mxu0 %vm237_vm0, %v3849_v43  ;;  %3654 = vmatmul.mubr.msk.bf16.gmra.mxu1 %vm237_vm0, %v3849_v43 }
  0x2c   :  { %344 = vmatprep.mubr.bf16.mxu0 %v6561_v2  ;;  %457 = vmatprep.mubr.bf16.mxu1 %v6561_v2 }
  0x2d   :  { %15 = vsyncpa [#allocation3], 0  ;;  %v3854_v48 = vld [vmem:[%s6554_s4 + $0x28] sm:$0xff]   ;;  %v976_v49 = vld [vmem:[%s6557_s7 + $0x20] sm:$0xff]  ;;  %1017 = vperm.xlu1 %3832, %v979_v47   ;;  %vm604_vm2 = vcmask 277504   ;;  %vm1245_vm3 = vcmask 523264  }
  0x2e   :  { %1002 = vperm.xlu0 %3831, %v976_v49   ;;  %v977_v50 = vld [vmem:[%s6557_s7 + $0x28] sm:$0xff]  ;;  %v974_v51 = vld [vmem:[%s6557_s7 + $0x10] sm:$0xff]  ;;  %v975_v52 = vld [vmem:[%s6557_s7 + $0x18] sm:$0xff]  ;;  %s4035_s16 = smov [#allocation2]  }
  0x2f   :  { %v3855_v53 = vld [vmem:[%s6554_s4 + $0x30] sm:$0xff]   ;;  %v972_v54 = vld [vmem:[%s6557_s7] sm:$0xff]  ;;  %v3862_v56 = vld [vmem:[%s6554_s4 + $0x38] sm:$0xff]   ;;  %s3618_s17 = sshll.u32 %s4035_s16, 4  ;;  %s3619_s17 = int_to_ptr.vmem [resolvable:$true] %s3618_s17 }
  0x30   :  { %v1239_v55 = vld [vmem:[%s6559_s9] sm:$0x3]  ;;  %v973_v58 = vld [vmem:[%s6557_s7 + $0x8] sm:$0xff]  ;;  %v3871_v60 = vld [vmem:[%s6553_s3 + $0x10] sm:$0xff]   ;;  %s4011_s18 = scalar_lea.vmem %s3619_s17, 64  ;;  %p4016_p1 = scmp.lt.s32.totalorder %s3619_s17, %s3619_s17 }
  0x31   :  { %1007 = vperm.xlu1 %3832, %v977_v50   ;;  %v3869_v57 = vld [vmem:[%s6553_s3] sm:$0xff]   ;;  %v3870_v59 = vld [vmem:[%s6553_s3 + $0x8] sm:$0xff]   ;;  %v3872_v61 = vld [vmem:[%s6553_s3 + $0x18] sm:$0xff]   ;;  %p4012_p0 = scmp.ne.s32.totalorder %s3619_s17, %s4011_s18  ;;  %p4017_p2 = scmp.lt.s32.totalorder %s4011_s18, %s4011_s18 }
  0x32   :  { %992 = vperm.xlu0 %3831, %v974_v51   ;;  %v3873_v62 = vld [vmem:[%s6553_s3 + $0x20] sm:$0xff]   ;;  %v3874_v63 = vld [vmem:[%s6553_s3 + $0x28] sm:$0xff]   ;;  %v3875_v0 = vld [vmem:[%s6553_s3 + $0x30] sm:$0xff]  }
  0x33   :  { %3647 = vmatmul.mubr.msk.bf16.gmra.mxu0 %vm237_vm0, %v3854_v48  ;;  %3655 = vmatmul.mubr.msk.bf16.gmra.mxu1 %vm237_vm0, %v3854_v48  ;;  %v3876_v1 = vld [vmem:[%s6553_s3 + $0x38] sm:$0xff]   ;;  %p4018_p3 = por %p4017_p2, %p4016_p1 }
  0x34   :  { %354 = vmatprep.mubr.bf16.mxu0 %v6561_v2  ;;  %467 = vmatprep.mubr.bf16.mxu1 %v6561_v2 }
  0x35   :  { %997 = vperm.xlu1 %3832, %v975_v52   ;;  %p4019_p4 = pnand %p4018_p3, %p4012_p0 }
  0x36   :  { %982 = vperm.xlu0 %3831, %v972_v54  }
  0x39   :  { %987 = vperm.xlu1 %3832, %v973_v58  }
  0x3a   :  { %1242 = vperm.xlu0 %3831, %v1239_v55  }
  0x3b   :  { %3648 = vmatmul.mubr.msk.bf16.gmra.mxu0 %vm237_vm0, %v3855_v53  ;;  %3656 = vmatmul.mubr.msk.bf16.gmra.mxu1 %vm237_vm0, %v3855_v53 }
  0x3c   :  { %364 = vmatprep.mubr.bf16.mxu0 %v6561_v2  ;;  %477 = vmatprep.mubr.bf16.mxu1 %v6561_v2 }
  0x43   :  { %3649 = vmatmul.mubr.msk.bf16.gmra.mxu0 %vm237_vm0, %v3862_v56  ;;  %3657 = vmatmul.mubr.msk.bf16.gmra.mxu1 %vm237_vm0, %v3862_v56 }
  0x44   :  { %674 = vmatprep.mubr.bf16.mxu0 %v6561_v2  ;;  %787 = vmatprep.mubr.bf16.mxu1 %v6561_v2 }
  0x4b   :  { %3679 = vmatmul.mubr.msk.bf16.vlgmr.msra.gmra.mxu0 %vm604_vm2, %v3869_v57  ;;  %3688 = vmatmul.mubr.msk.bf16.vlgmr.msra.gmra.mxu1 %vm604_vm2, %v3869_v57 }
  0x4c   :  { %684 = vmatprep.mubr.bf16.mxu0 %v6561_v2  ;;  %797 = vmatprep.mubr.bf16.mxu1 %v6561_v2 }
  0x53   :  { %3680 = vmatmul.mubr.msk.bf16.gmra.mxu0 %vm604_vm2, %v3870_v59  ;;  %3689 = vmatmul.mubr.msk.bf16.gmra.mxu1 %vm604_vm2, %v3870_v59 }
  0x54   :  { %694 = vmatprep.mubr.bf16.mxu0 %v6561_v2  ;;  %807 = vmatprep.mubr.bf16.mxu1 %v6561_v2 }
  0x5b   :  { %3681 = vmatmul.mubr.msk.bf16.gmra.mxu0 %vm604_vm2, %v3871_v60  ;;  %3690 = vmatmul.mubr.msk.bf16.gmra.mxu1 %vm604_vm2, %v3871_v60 }
  0x5c   :  { %704 = vmatprep.mubr.bf16.mxu0 %v6561_v2  ;;  %817 = vmatprep.mubr.bf16.mxu1 %v6561_v2 }
  0x63   :  { %3682 = vmatmul.mubr.msk.bf16.gmra.mxu0 %vm604_vm2, %v3872_v61  ;;  %3691 = vmatmul.mubr.msk.bf16.gmra.mxu1 %vm604_vm2, %v3872_v61 }
  0x64   :  { %714 = vmatprep.mubr.bf16.mxu0 %v6561_v2  ;;  %827 = vmatprep.mubr.bf16.mxu1 %v6561_v2 }
  0x6b   :  { %3683 = vmatmul.mubr.msk.bf16.gmra.mxu0 %vm604_vm2, %v3873_v62  ;;  %3692 = vmatmul.mubr.msk.bf16.gmra.mxu1 %vm604_vm2, %v3873_v62 }
  0x6c   :  { %724 = vmatprep.mubr.bf16.mxu0 %v6561_v2  ;;  %837 = vmatprep.mubr.bf16.mxu1 %v6561_v2 }
  0x73   :  { %3684 = vmatmul.mubr.msk.bf16.gmra.mxu0 %vm604_vm2, %v3874_v63  ;;  %3693 = vmatmul.mubr.msk.bf16.gmra.mxu1 %vm604_vm2, %v3874_v63 }
  0x74   :  { %734 = vmatprep.mubr.bf16.mxu0 %v6561_v2  ;;  %847 = vmatprep.mubr.bf16.mxu1 %v6561_v2 }
  0x7b   :  { %3685 = vmatmul.mubr.msk.bf16.gmra.mxu0 %vm604_vm2, %v3875_v0  ;;  %3694 = vmatmul.mubr.msk.bf16.gmra.mxu1 %vm604_vm2, %v3875_v0 }
  0x7c   :  { %744 = vmatprep.mubr.bf16.mxu0 %v6561_v2  ;;  %857 = vmatprep.mubr.bf16.mxu1 %v6561_v2 }
  0x81   :  { %v4380_v23 = vpop.permute.xlu0 %149 }
  0x82   :  { %6752 = vst [vmem:[#allocation5_spill] sm:$0xff] %v4380_v23  ;;  %v4386_v26 = vpop.permute.xlu1 %139 }
  0x83   :  { %3686 = vmatmul.mubr.msk.bf16.gmra.mxu0 %vm604_vm2, %v3876_v1  ;;  %3695 = vmatmul.mubr.msk.bf16.gmra.mxu1 %vm604_vm2, %v3876_v1  ;;  %6753 = vst [vmem:[#allocation6_spill] sm:$0xff] %v4386_v26 }
  0x84   :  { %1076 = vmatprep.mubr.bf16.mxu0 %v6561_v2  ;;  %1149 = vmatprep.mubr.bf16.mxu1 %v6561_v2 }
  0x85   :  { %v4396_v31 = vpop.permute.xlu0 %154 }
  0x86   :  { %6754 = vst [vmem:[#allocation7_spill] sm:$0xff] %v4396_v31 }
  0x89   :  { %v4402_v34 = vpop.permute.xlu1 %144 }
  0x8a   :  { %6755 = vst [vmem:[#allocation8_spill] sm:$0xff] %v4402_v34  ;;  %v4412_v39 = vpop.permute.xlu0 %129 }
  0x8b   :  { %6756 = vst [vmem:[#allocation9_spill] sm:$0xff] %v4412_v39 }
  0x90   :  { %v4418_v42 = vpop.permute.xlu1 %134  ;;  %v4428_v47 = vpop.permute.xlu0 %119 }
  0x91   :  { %6757 = vst [vmem:[#allocation10_spill] sm:$0xff] %v4418_v42 }
  0x94   :  { %v4434_v50 = vpop.permute.xlu1 %124  ;;  %v4444_v55 = vpop.permute.xlu0 %109 }
  0x98   :  { %v4450_v58 = vpop.permute.xlu1 %114  ;;  %v4460_v63 = vpop.permute.xlu0 %99 }
  0x9c   :  { %v4466_v2 = vpop.permute.xlu1 %104 }
  0xcb   :  { %v4340_v3 = vpop.f32.mrf.mxu0  ;;  %v4342_v4 = vpop.f32.mrf.mxu1 }
  0xcd   :  { %v4344_v5 = vpop.f32.mrf.mxu0  ;;  %v4346_v6 = vpop.f32.mrf.mxu1 }
  0xcf   :  { %v4348_v7 = vpop.f32.mrf.mxu0  ;;  %v4350_v8 = vpop.f32.mrf.mxu1 }
  0xd1   :  { %v4352_v9 = vpop.f32.mrf.mxu0  ;;  %v4354_v10 = vpop.f32.mrf.mxu1 }
  0xd3   :  { %v4356_v11 = vpop.f32.mrf.mxu0  ;;  %v4358_v12 = vpop.f32.mrf.mxu1 }
  0xd5   :  { %v4360_v13 = vpop.f32.mrf.mxu0  ;;  %v4362_v14 = vpop.f32.mrf.mxu1 }
  0xd7   :  { %v4364_v15 = vpop.f32.mrf.mxu0  ;;  %v4366_v16 = vpop.f32.mrf.mxu1 }
  0xd9   :  { %v4368_v17 = vpop.f32.mrf.mxu0  ;;  %v4370_v18 = vpop.f32.mrf.mxu1 }
  0xdb   :  { %v4372_v19 = vpop.f32.mrf.mxu0  ;;  %v4374_v20 = vpop.f32.mrf.mxu1 }
  0xdd   :  { %v4376_v21 = vpop.f32.mrf.mxu0  ;;  %v4378_v22 = vpop.f32.mrf.mxu1 }
  0xdf   :  { %v4382_v24 = vpop.f32.mrf.mxu0  ;;  %v4384_v25 = vpop.f32.mrf.mxu1 }
  0xe1   :  { %v4388_v27 = vpop.f32.mrf.mxu0  ;;  %v4390_v28 = vpop.f32.mrf.mxu1 }
  0xe3   :  { %v4392_v29 = vpop.f32.mrf.mxu0  ;;  %v4394_v30 = vpop.f32.mrf.mxu1 }
  0xe5   :  { %v4398_v32 = vpop.f32.mrf.mxu0  ;;  %v4400_v33 = vpop.f32.mrf.mxu1 }
  0xe7   :  { %v4404_v35 = vpop.f32.mrf.mxu0  ;;  %v4406_v36 = vpop.f32.mrf.mxu1 }
  0xe9   :  { %v4408_v37 = vpop.f32.mrf.mxu0  ;;  %v4410_v38 = vpop.f32.mrf.mxu1 }
  0xeb   :  { %v4414_v40 = vpop.f32.mrf.mxu0  ;;  %v4416_v41 = vpop.f32.mrf.mxu1 }
  0xed   :  { %v4420_v43 = vpop.f32.mrf.mxu0  ;;  %v4422_v44 = vpop.f32.mrf.mxu1 }
  0xef   :  { %v4424_v45 = vpop.f32.mrf.mxu0  ;;  %v4426_v46 = vpop.f32.mrf.mxu1 }
  0xf1   :  { %v4430_v48 = vpop.f32.mrf.mxu0  ;;  %v4432_v49 = vpop.f32.mrf.mxu1 }
  0xf2   :  { %6758 = vst [vmem:[#allocation11_spill] sm:$0xff] %v4430_v48  ;;  %6759 = vst [vmem:[#allocation12_spill] sm:$0xff] %v4432_v49 }
  0xf3   :  { %v4436_v51 = vpop.f32.mrf.mxu0  ;;  %v4438_v52 = vpop.f32.mrf.mxu1 }
  0xf4   :  { %6760 = vst [vmem:[#allocation13_spill] sm:$0xff] %v4436_v51  ;;  %6761 = vst [vmem:[#allocation14_spill] sm:$0xff] %v4438_v52 }
  0xf5   :  { %v4440_v53 = vpop.f32.mrf.mxu0  ;;  %v4442_v54 = vpop.f32.mrf.mxu1 }
  0xf6   :  { %6762 = vst [vmem:[#allocation15_spill] sm:$0xff] %v4440_v53  ;;  %6763 = vst [vmem:[#allocation16_spill] sm:$0xff] %v4442_v54 }
  0xf7   :  { %v4446_v56 = vpop.f32.mrf.mxu0  ;;  %v4448_v57 = vpop.f32.mrf.mxu1 }
  0xf8   :  { %6764 = vst [vmem:[#allocation17_spill] sm:$0xff] %v4446_v56  ;;  %6765 = vst [vmem:[#allocation18_spill] sm:$0xff] %v4448_v57 }
  0xf9   :  { %v4452_v59 = vpop.f32.mrf.mxu0  ;;  %v4454_v60 = vpop.f32.mrf.mxu1 }
  0xfa   :  { %6766 = vst [vmem:[#allocation19_spill] sm:$0xff] %v4452_v59  ;;  %6767 = vst [vmem:[#allocation20_spill] sm:$0xff] %v4454_v60  ;;  %v4476_v60 = vpop.permute.xlu0 %89  ;;  %v4482_v59 = vpop.permute.xlu1 %94 }
  0xfb   :  { %v4456_v61 = vpop.f32.mrf.mxu0  ;;  %v4458_v62 = vpop.f32.mrf.mxu1 }
  0xfc   :  { %6768 = vst [vmem:[#allocation21_spill] sm:$0xff] %v4456_v61  ;;  %6769 = vst [vmem:[#allocation22_spill] sm:$0xff] %v4458_v62 }
  0xfd   :  { %v4462_v0 = vpop.f32.mrf.mxu0  ;;  %v4464_v1 = vpop.f32.mrf.mxu1 }
  0xfe   :  { %6770 = vst [vmem:[#allocation23_spill] sm:$0xff] %v4462_v0  ;;  %6771 = vst [vmem:[#allocation24_spill] sm:$0xff] %v4464_v1  ;;  %v4498_v56 = vpop.permute.xlu1 %84 }
  0xff   :  { %v4468_v31 = vpop.f32.mrf.mxu0  ;;  %v4470_v23 = vpop.f32.mrf.mxu1 }
 0x100   :  { %6772 = vst [vmem:[#allocation25_spill] sm:$0xff] %v4468_v31  ;;  %6773 = vst [vmem:[#allocation26_spill] sm:$0xff] %v4470_v23  ;;  %v4492_v23 = vpop.permute.xlu0 %79 }
 0x101   :  { %v4472_v34 = vpop.f32.mrf.mxu0  ;;  %v4474_v26 = vpop.f32.mrf.mxu1  ;;  %v4502_v42 = vadd.f32 %v4340_v3, %v4492_v23 }
 0x102   :  { %6774 = vst [vmem:[#allocation27_spill] sm:$0xff] %v4472_v34  ;;  %6775 = vst [vmem:[#allocation28_spill] sm:$0xff] %v4474_v26 }
 0x103   :  { %v4478_v61 = vpop.f32.mrf.mxu0  ;;  %v4480_v62 = vpop.f32.mrf.mxu1  ;;  %6784 = vst [vmem:[#allocation37_spill] sm:$0xff] %v4502_v42 }
 0x104   :  { %6776 = vst [vmem:[#allocation29_spill] sm:$0xff] %v4478_v61  ;;  %6777 = vst [vmem:[#allocation30_spill] sm:$0xff] %v4480_v62 }
 0x105   :  { %v4484_v0 = vpop.f32.mrf.mxu0  ;;  %v4486_v1 = vpop.f32.mrf.mxu1 }
 0x106   :  { %6778 = vst [vmem:[#allocation31_spill] sm:$0xff] %v4484_v0  ;;  %6779 = vst [vmem:[#allocation32_spill] sm:$0xff] %v4486_v1  ;;  %v4506_v1 = vadd.f32 %v4342_v4, %v4492_v23 }
 0x107   :  { %v4488_v57 = vpop.f32.mrf.mxu0  ;;  %v4490_v31 = vpop.f32.mrf.mxu1 }
 0x108   :  { %6780 = vst [vmem:[#allocation33_spill] sm:$0xff] %v4488_v57  ;;  %6781 = vst [vmem:[#allocation34_spill] sm:$0xff] %v4490_v31 }
 0x109   :  { %v4494_v34 = vpop.f32.mrf.mxu0  ;;  %v4496_v26 = vpop.f32.mrf.mxu1  ;;  %6785 = vst [vmem:[#allocation38_spill] sm:$0xff] %v4506_v1 }
 0x10a   :  { %6782 = vst [vmem:[#allocation35_spill] sm:$0xff] %v4494_v34  ;;  %6783 = vst [vmem:[#allocation36_spill] sm:$0xff] %v4496_v26  ;;  %v4514_v34 = vadd.f32 %v4348_v7, %v4498_v56  ;;  %v4518_v26 = vadd.f32 %v4350_v8, %v4498_v56 }
 0x10b   :  { %v676_v61 = vpop.f32.mrf.mxu0  ;;  %v789_v62 = vpop.f32.mrf.mxu1 }
 0x10c   :  { %6788 = vst [vmem:[#allocation41_spill] sm:$0xff] %v4514_v34  ;;  %6789 = vst [vmem:[#allocation42_spill] sm:$0xff] %v4518_v26  ;;  %v677_v0 = vadd.f32 %v676_v61, %v4502_v42  ;;  %v790_v3 = vadd.f32 %v789_v62, %v4506_v1  ;;  %v4530_v61 = vadd.f32 %v4356_v11, %v4476_v60 }
 0x10d   :  { %v4508_v57 = vpop.f32.mrf.mxu0  ;;  %v4510_v31 = vpop.f32.mrf.mxu1  ;;  %v4534_v62 = vadd.f32 %v4358_v12, %v4476_v60  ;;  %v4550_v11 = vadd.f32 %v4366_v16, %v4482_v59 }
 0x10e   :  { %6786 = vst [vmem:[#allocation39_spill] sm:$0xff] %v4508_v57  ;;  %6787 = vst [vmem:[#allocation40_spill] sm:$0xff] %v4510_v31  ;;  %v868_v7 = vmax.f32 %v677_v0, 0.0  ;;  %v870_v51 = vmax.f32 %v790_v3, 0.0 }
 0x10f   :  { %v680_v54 = vpop.f32.mrf.mxu0  ;;  %v793_v53 = vpop.f32.mrf.mxu1  ;;  %6790 = vst [vmem:[#allocation43_spill] sm:$0xff] %v4530_v61  ;;  %6791 = vst [vmem:[#allocation44_spill] sm:$0xff] %v4534_v62 }
 0x110   :  { %v681_v4 = vadd.f32 %v680_v54, %v4514_v34  ;;  %v794_v57 = vadd.f32 %v793_v53, %v4518_v26  ;;  %6797 = vst [vmem:[#allocation50_spill] sm:$0xff] %v4550_v11 }
 0x111   :  { %v4524_v52 = vpop.f32.mrf.mxu0  ;;  %v4526_v31 = vpop.f32.mrf.mxu1 }
 0x112   :  { %v872_v39 = vmax.f32 %v681_v4, 0.0  ;;  %v874_v49 = vmax.f32 %v794_v57, 0.0  ;;  %v4546_v57 = vadd.f32 %v4364_v15, %v4482_v59 }
 0x113   :  { %v686_v8 = vpop.f32.mrf.mxu0  ;;  %v799_v48 = vpop.f32.mrf.mxu1 }
 0x114   :  { %v4536_v54 = vpack.c.bf16 %v872_v39, %v868_v7  ;;  %v4538_v53 = vpack.c.bf16 %v874_v49, %v870_v51  ;;  %6796 = vst [vmem:[#allocation49_spill] sm:$0xff] %v4546_v57  ;;  %v687_v3 = vadd.f32 %v686_v8, %v4530_v61  ;;  %v800_v12 = vadd.f32 %v799_v48, %v4534_v62 }
 0x115   :  { %v4540_v26 = vpop.f32.mrf.mxu0  ;;  %v4542_v0 = vpop.f32.mrf.mxu1 }
 0x116   :  { %6792 = vst [vmem:[#allocation45_spill] sm:$0xff] %v4536_v54  ;;  %6793 = vst [vmem:[#allocation46_spill] sm:$0xff] %v4538_v53  ;;  %v876_v15 = vmax.f32 %v687_v3, 0.0  ;;  %v878_v1 = vmax.f32 %v800_v12, 0.0 }
 0x117   :  { %6794 = vst [vmem:[#allocation47_spill] sm:$0xff] %v4540_v26  ;;  %6795 = vst [vmem:[#allocation48_spill] sm:$0xff] %v4542_v0  ;;  %v690_v39 = vpop.f32.mrf.mxu0  ;;  %v803_v4 = vpop.f32.mrf.mxu1 }
 0x118   :  { %v691_v49 = vadd.f32 %v690_v39, %v4546_v57  ;;  %v804_v51 = vadd.f32 %v803_v4, %v4550_v11 }
 0x119   :  { %v4556_v7 = vpop.f32.mrf.mxu0  ;;  %v4558_v34 = vpop.f32.mrf.mxu1 }
 0x11a   :  { %v880_v42 = vmax.f32 %v691_v49, 0.0  ;;  %v882_v53 = vmax.f32 %v804_v51, 0.0 }
 0x11b   :  { %v4560_v16 = vpop.f32.mrf.mxu0  ;;  %v4562_v54 = vpop.f32.mrf.mxu1 }
 0x11c   :  { %6798 = vst [vmem:[#allocation51_spill] sm:$0xff] %v4560_v16  ;;  %6799 = vst [vmem:[#allocation52_spill] sm:$0xff] %v4562_v54  ;;  %v4564_v8 = vpack.c.bf16 %v880_v42, %v876_v15  ;;  %v4566_v48 = vpack.c.bf16 %v882_v53, %v878_v1 }
 0x11d   :  { %v4568_v62 = vpop.f32.mrf.mxu0  ;;  %v4570_v39 = vpop.f32.mrf.mxu1 }
 0x11e   :  { %6800 = vst [vmem:[#allocation53_spill] sm:$0xff] %v4564_v8  ;;  %6801 = vst [vmem:[#allocation54_spill] sm:$0xff] %v4566_v48 }
 0x11f   :  { %v4572_v4 = vpop.f32.mrf.mxu0  ;;  %v4574_v11 = vpop.f32.mrf.mxu1 }
 0x120   :  { %6802 = vst [vmem:[#allocation55_spill] sm:$0xff] %v4572_v4  ;;  %6803 = vst [vmem:[#allocation56_spill] sm:$0xff] %v4574_v11 }
 0x121   :  { %v4576_v3 = vpop.f32.mrf.mxu0  ;;  %v4578_v12 = vpop.f32.mrf.mxu1 }
 0x123   :  { %v4580_v49 = vpop.f32.mrf.mxu0  ;;  %v4582_v51 = vpop.f32.mrf.mxu1 }
 0x124   :  { %6804 = vst [vmem:[#allocation57_spill] sm:$0xff] %v4580_v49  ;;  %6805 = vst [vmem:[#allocation58_spill] sm:$0xff] %v4582_v51 }
 0x125   :  { %v4584_v42 = vpop.f32.mrf.mxu0  ;;  %v4586_v1 = vpop.f32.mrf.mxu1 }
 0x127   :  { %v4588_v53 = vpop.f32.mrf.mxu0  ;;  %v4590_v15 = vpop.f32.mrf.mxu1 }
 0x128   :  { %6806 = vst [vmem:[#allocation59_spill] sm:$0xff] %v4588_v53  ;;  %6807 = vst [vmem:[#allocation60_spill] sm:$0xff] %v4590_v15  ;;  %v4618_v15 = vadd.f32 %v4344_v5, %v4492_v23  ;;  %v4622_v53 = vadd.f32 %v4346_v6, %v4492_v23  ;;  %v4638_v5 = vadd.f32 %v4362_v14, %v4476_v60 }
 0x129   :  { %v4592_v57 = vpop.f32.mrf.mxu0  ;;  %v4594_v61 = vpop.f32.mrf.mxu1  ;;  %v4642_v6 = vadd.f32 %v4368_v17, %v4482_v59  ;;  %v4658_v14 = vadd.f32 %v4374_v20, %v4460_v63  ;;  %v4662_v17 = vadd.f32 %v4376_v21, %v4460_v63  ;;  %v4678_v20 = vadd.f32 %v4388_v27, %v4466_v2 }
 0x12a   :  { %6814 = vst [vmem:[#allocation67_spill] sm:$0xff] %v4618_v15  ;;  %6815 = vst [vmem:[#allocation68_spill] sm:$0xff] %v4622_v53  ;;  %v4682_v21 = vadd.f32 %v4390_v28, %v4466_v2  ;;  %v4698_v27 = vadd.f32 %v4398_v32, %v4444_v55  ;;  %v4706_v28 = vadd.f32 %v4404_v35, %v4450_v58  ;;  %v6851_v15 = vld [vmem:[#allocation13_spill] sm:$0xff] }
 0x12b   :  { %v4596_v48 = vpop.f32.mrf.mxu0  ;;  %v4598_v8 = vpop.f32.mrf.mxu1  ;;  %6819 = vst [vmem:[#allocation72_spill] sm:$0xff] %v4638_v5  ;;  %6820 = vst [vmem:[#allocation73_spill] sm:$0xff] %v4642_v6  ;;  %v4718_v32 = vadd.f32 %v4410_v38, %v4450_v58  ;;  %v4726_v35 = vadd.f32 %v4414_v40, %v4428_v47  ;;  %v4738_v38 = vadd.f32 %v4422_v44, %v4428_v47  ;;  %v6853_v5 = vld [vmem:[#allocation14_spill] sm:$0xff] }
 0x12c   :  { %6808 = vst [vmem:[#allocation61_spill] sm:$0xff] %v4596_v48  ;;  %6809 = vst [vmem:[#allocation62_spill] sm:$0xff] %v4598_v8  ;;  %v4626_v8 = vadd.f32 %v4352_v9, %v4498_v56  ;;  %v4630_v48 = vadd.f32 %v4354_v10, %v4498_v56  ;;  %v4646_v9 = vadd.f32 %v4370_v18, %v4482_v59 }
 0x12d   :  { %v4600_v0 = vpop.f32.mrf.mxu0  ;;  %v4602_v26 = vpop.f32.mrf.mxu1  ;;  %6823 = vst [vmem:[#allocation76_spill] sm:$0xff] %v4658_v14  ;;  %6824 = vst [vmem:[#allocation77_spill] sm:$0xff] %v4662_v17  ;;  %v4666_v18 = vadd.f32 %v4378_v22, %v4460_v63  ;;  %v4670_v56 = vadd.f32 %v4382_v24, %v4466_v2  ;;  %v4690_v24 = vadd.f32 %v4392_v29, %v4444_v55  ;;  %v6857_v14 = vld [vmem:[#allocation16_spill] sm:$0xff] }
 0x12e   :  { %6816 = vst [vmem:[#allocation69_spill] sm:$0xff] %v4626_v8  ;;  %6817 = vst [vmem:[#allocation70_spill] sm:$0xff] %v4630_v48  ;;  %v4710_v29 = vadd.f32 %v4406_v36, %v4450_v58  ;;  %v4730_v36 = vadd.f32 %v4416_v41, %v4428_v47  ;;  %v4746_v40 = vadd.f32 %v4426_v46, %v4434_v50 }
 0x12f   :  { %v4604_v54 = vpop.f32.mrf.mxu0  ;;  %v4606_v16 = vpop.f32.mrf.mxu1  ;;  %6821 = vst [vmem:[#allocation74_spill] sm:$0xff] %v4646_v9  ;;  %6825 = vst [vmem:[#allocation78_spill] sm:$0xff] %v4666_v18 }
 0x130   :  { %6810 = vst [vmem:[#allocation63_spill] sm:$0xff] %v4604_v54  ;;  %6811 = vst [vmem:[#allocation64_spill] sm:$0xff] %v4606_v16  ;;  %v4634_v16 = vadd.f32 %v4360_v13, %v4476_v60  ;;  %v4654_v13 = vadd.f32 %v4372_v19, %v4460_v63  ;;  %v4674_v19 = vadd.f32 %v4384_v25, %v4466_v2  ;;  %v6846_v63 = vld [vmem:[#allocation12_spill] sm:$0xff] }
 0x131   :  { %v4608_v11 = vpop.f32.mrf.mxu0  ;;  %v4610_v4 = vpop.f32.mrf.mxu1  ;;  %6826 = vst [vmem:[#allocation79_spill] sm:$0xff] %v4670_v56  ;;  %6828 = vst [vmem:[#allocation81_spill] sm:$0xff] %v4678_v20  ;;  %v4694_v25 = vadd.f32 %v4394_v30, %v4444_v55  ;;  %v4702_v2 = vadd.f32 %v4400_v33, %v4444_v55  ;;  %v4714_v30 = vadd.f32 %v4408_v37, %v4450_v58  ;;  %v6844_v58 = vld [vmem:[#allocation11_spill] sm:$0xff]  ;;  %v6862_v56 = vld [vmem:[#allocation18_spill] sm:$0xff] }
 0x132   :  { %6818 = vst [vmem:[#allocation71_spill] sm:$0xff] %v4634_v16  ;;  %6822 = vst [vmem:[#allocation75_spill] sm:$0xff] %v4654_v13  ;;  %v4734_v37 = vadd.f32 %v4420_v43, %v4428_v47  ;;  %v4742_v55 = vadd.f32 %v4424_v45, %v4434_v50  ;;  %v4750_v41 = vadd.f32 %v6844_v58, %v4434_v50  ;;  %v6850_v47 = vld [vmem:[#allocation9_spill] sm:$0xff]  ;;  %v6855_v16 = vld [vmem:[#allocation15_spill] sm:$0xff] }
 0x133   :  { %v4612_v51 = vpop.f32.mrf.mxu0  ;;  %v4614_v49 = vpop.f32.mrf.mxu1  ;;  %6827 = vst [vmem:[#allocation80_spill] sm:$0xff] %v4674_v19  ;;  %6829 = vst [vmem:[#allocation82_spill] sm:$0xff] %v4682_v21  ;;  %v4754_v43 = vadd.f32 %v6846_v63, %v4434_v50  ;;  %v4762_v45 = vadd.f32 %v6851_v15, %v6850_v47  ;;  %v4766_v46 = vadd.f32 %v6853_v5, %v6850_v47  ;;  %v6859_v63 = vld [vmem:[#allocation10_spill] sm:$0xff]  ;;  %v6860_v13 = vld [vmem:[#allocation17_spill] sm:$0xff] }
 0x134   :  { %6812 = vst [vmem:[#allocation65_spill] sm:$0xff] %v4612_v51  ;;  %6813 = vst [vmem:[#allocation66_spill] sm:$0xff] %v4614_v49  ;;  %v4770_v58 = vadd.f32 %v6855_v16, %v6850_v47  ;;  %v4774_v50 = vadd.f32 %v6857_v14, %v6850_v47  ;;  %v4778_v19 = vadd.f32 %v6860_v13, %v6859_v63  ;;  %v6868_v14 = vld [vmem:[#allocation6_spill] sm:$0xff]  ;;  %v6869_v47 = vld [vmem:[#allocation21_spill] sm:$0xff] }
 0x135   :  { %v4648_v23 = vpop.f32.mrf.mxu0  ;;  %v4650_v10 = vpop.f32.mrf.mxu1  ;;  %6830 = vst [vmem:[#allocation83_spill] sm:$0xff] %v4690_v24  ;;  %6831 = vst [vmem:[#allocation84_spill] sm:$0xff] %v4694_v25  ;;  %v4782_v15 = vadd.f32 %v6862_v56, %v6859_v63  ;;  %v6864_v25 = vld [vmem:[#allocation19_spill] sm:$0xff]  ;;  %v6866_v24 = vld [vmem:[#allocation20_spill] sm:$0xff] }
 0x136   :  { %6832 = vst [vmem:[#allocation85_spill] sm:$0xff] %v4698_v27  ;;  %6833 = vst [vmem:[#allocation86_spill] sm:$0xff] %v4702_v2  ;;  %v4786_v5 = vadd.f32 %v6864_v25, %v6859_v63  ;;  %v4790_v16 = vadd.f32 %v6866_v24, %v6859_v63  ;;  %v6871_v13 = vld [vmem:[#allocation22_spill] sm:$0xff]  ;;  %v6873_v56 = vld [vmem:[#allocation23_spill] sm:$0xff] }
 0x137   :  { %v4684_v59 = vpop.f32.mrf.mxu0  ;;  %v4686_v22 = vpop.f32.mrf.mxu1  ;;  %6834 = vst [vmem:[#allocation87_spill] sm:$0xff] %v4706_v28  ;;  %6835 = vst [vmem:[#allocation88_spill] sm:$0xff] %v4710_v29  ;;  %v6875_v25 = vld [vmem:[#allocation24_spill] sm:$0xff]  ;;  %v6878_v63 = vld [vmem:[#allocation25_spill] sm:$0xff] }
 0x138   :  { %6836 = vst [vmem:[#allocation89_spill] sm:$0xff] %v4714_v30  ;;  %6837 = vst [vmem:[#allocation90_spill] sm:$0xff] %v4718_v32  ;;  %v4806_v54 = vadd.f32 %v6875_v25, %v6868_v14  ;;  %v6877_v24 = vld [vmem:[#allocation8_spill] sm:$0xff]  ;;  %v6880_v49 = vld [vmem:[#allocation26_spill] sm:$0xff] }
 0x139   :  { %v4720_v60 = vpop.f32.mrf.mxu0  ;;  %v4722_v33 = vpop.f32.mrf.mxu1  ;;  %6838 = vst [vmem:[#allocation91_spill] sm:$0xff] %v4726_v35  ;;  %6839 = vst [vmem:[#allocation92_spill] sm:$0xff] %v4730_v36  ;;  %v4794_v36 = vadd.f32 %v6869_v47, %v6868_v14  ;;  %v4798_v35 = vadd.f32 %v6871_v13, %v6868_v14  ;;  %v4814_v47 = vadd.f32 %v6880_v49, %v6877_v24  ;;  %v6884_v51 = vld [vmem:[#allocation28_spill] sm:$0xff]  ;;  %v6887_v25 = vld [vmem:[#allocation29_spill] sm:$0xff] }
 0x13a   :  { %6840 = vst [vmem:[#allocation93_spill] sm:$0xff] %v4734_v37  ;;  %6841 = vst [vmem:[#allocation94_spill] sm:$0xff] %v4738_v38  ;;  %v6891_v49 = vld [vmem:[#allocation31_spill] sm:$0xff] }
 0x13b   :  { %6842 = vst [vmem:[#allocation95_spill] sm:$0xff] %v4742_v55  ;;  %6843 = vst [vmem:[#allocation96_spill] sm:$0xff] %v4746_v40  ;;  %v4756_v53 = vpop.f32.mrf.mxu0  ;;  %v4758_v44 = vpop.f32.mrf.mxu1  ;;  %v4802_v40 = vadd.f32 %v6873_v56, %v6868_v14  ;;  %v4810_v55 = vadd.f32 %v6878_v63, %v6877_v24  ;;  %v4822_v56 = vadd.f32 %v6884_v51, %v6877_v24  ;;  %v6886_v14 = vld [vmem:[#allocation5_spill] sm:$0xff]  ;;  %v6889_v63 = vld [vmem:[#allocation30_spill] sm:$0xff] }
 0x13c   :  { %6845 = vst [vmem:[#allocation11_spill] sm:$0xff] %v4750_v41  ;;  %6847 = vst [vmem:[#allocation12_spill] sm:$0xff] %v4754_v43  ;;  %v6895_v51 = vld [vmem:[#allocation7_spill] sm:$0xff] }
 0x13d   :  { %6848 = vst [vmem:[#allocation97_spill] sm:$0xff] %v4756_v53  ;;  %6849 = vst [vmem:[#allocation98_spill] sm:$0xff] %v4758_v44  ;;  %v738_v29 = vpop.f32.mrf.mxu0  ;;  %v851_v28 = vpop.f32.mrf.mxu1  ;;  %v4830_v53 = vadd.f32 %v6889_v63, %v6886_v14 }
 0x13e   :  { %6852 = vst [vmem:[#allocation9_spill] sm:$0xff] %v4762_v45  ;;  %6854 = vst [vmem:[#allocation13_spill] sm:$0xff] %v4766_v46  ;;  %v6882_v46 = vld [vmem:[#allocation27_spill] sm:$0xff] }
 0x13f   :  { %6856 = vst [vmem:[#allocation14_spill] sm:$0xff] %v4770_v58  ;;  %6858 = vst [vmem:[#allocation15_spill] sm:$0xff] %v4774_v50  ;;  %v4818_v13 = vadd.f32 %v6882_v46, %v6877_v24  ;;  %v740_v45 = vpop.f32.mrf.mxu0  ;;  %v853_v44 = vpop.f32.mrf.mxu1  ;;  %v6893_v46 = vld [vmem:[#allocation32_spill] sm:$0xff]  ;;  %v6896_v24 = vld [vmem:[#allocation33_spill] sm:$0xff] }
 0x140   :  { %6861 = vst [vmem:[#allocation16_spill] sm:$0xff] %v4778_v19  ;;  %6863 = vst [vmem:[#allocation10_spill] sm:$0xff] %v4782_v15 }
 0x141   :  { %6865 = vst [vmem:[#allocation17_spill] sm:$0xff] %v4786_v5  ;;  %6867 = vst [vmem:[#allocation18_spill] sm:$0xff] %v4790_v16 }
 0x142   :  { %6870 = vst [vmem:[#allocation19_spill] sm:$0xff] %v4794_v36  ;;  %6872 = vst [vmem:[#allocation20_spill] sm:$0xff] %v4798_v35  ;;  %v4826_v35 = vadd.f32 %v6887_v25, %v6886_v14  ;;  %v4834_v36 = vadd.f32 %v6891_v49, %v6886_v14 }
 0x143   :  { %6874 = vst [vmem:[#allocation6_spill] sm:$0xff] %v4802_v40  ;;  %6876 = vst [vmem:[#allocation21_spill] sm:$0xff] %v4806_v54  ;;  %v6898_v54 = vld [vmem:[#allocation34_spill] sm:$0xff]  ;;  %v742_v40 = vpop.f32.mrf.mxu0 }
 0x144   :  { %6879 = vst [vmem:[#allocation22_spill] sm:$0xff] %v4810_v55  ;;  %6881 = vst [vmem:[#allocation23_spill] sm:$0xff] %v4814_v47  ;;  %v4838_v47 = vadd.f32 %v6893_v46, %v6886_v14  ;;  %v4842_v55 = vadd.f32 %v6896_v24, %v6895_v51  ;;  %v4846_v25 = vadd.f32 %v6898_v54, %v6895_v51 }
 0x145   :  { %6883 = vst [vmem:[#allocation24_spill] sm:$0xff] %v4818_v13  ;;  %6885 = vst [vmem:[#allocation8_spill] sm:$0xff] %v4822_v56  ;;  %v4858_v14 = vadd.f32 %v4524_v52, %v4626_v8  ;;  %v4862_v46 = vadd.f32 %v4526_v31, %v4630_v48  ;;  %v4866_v54 = vadd.f32 %v4556_v7, %v4642_v6 }
 0x146   :  { %6888 = vst [vmem:[#allocation25_spill] sm:$0xff] %v4826_v35  ;;  %6890 = vst [vmem:[#allocation26_spill] sm:$0xff] %v4830_v53  ;;  %v6900_v35 = vld [vmem:[#allocation35_spill] sm:$0xff]  ;;  %v6902_v53 = vld [vmem:[#allocation36_spill] sm:$0xff]  ;;  %v4878_v52 = vadd.f32 %v4570_v39, %v4666_v18  ;;  %v4882_v31 = vadd.f32 %v4576_v3, %v4678_v20  ;;  %v4886_v7 = vadd.f32 %v4578_v12, %v4682_v21 }
 0x147   :  { %6892 = vst [vmem:[#allocation27_spill] sm:$0xff] %v4834_v36  ;;  %6894 = vst [vmem:[#allocation28_spill] sm:$0xff] %v4838_v47  ;;  %v4850_v63 = vadd.f32 %v6900_v35, %v6895_v51  ;;  %v4854_v49 = vadd.f32 %v6902_v53, %v6895_v51  ;;  %v855_v36 = vpop.f32.mrf.mxu1  ;;  %v4870_v35 = vadd.f32 %v4558_v34, %v4646_v9  ;;  %v746_v51 = vpop.f32.mrf.mxu0 }
 0x148   :  { %6897 = vst [vmem:[#allocation5_spill] sm:$0xff] %v4842_v55  ;;  %6899 = vst [vmem:[#allocation29_spill] sm:$0xff] %v4846_v25  ;;  %v4874_v53 = vadd.f32 %v4568_v62, %v4662_v17  ;;  %v4890_v34 = vadd.f32 %v4584_v42, %v4698_v27  ;;  %v4894_v62 = vadd.f32 %v4586_v1, %v4702_v2 }
 0x149   :  { %6901 = vst [vmem:[#allocation30_spill] sm:$0xff] %v4850_v63  ;;  %v859_v24 = vpop.f32.mrf.mxu1  ;;  %v4898_v39 = vadd.f32 %v4592_v57, %v4714_v30  ;;  %v4902_v3 = vadd.f32 %v4594_v61, %v4718_v32  ;;  %v4906_v12 = vadd.f32 %v4600_v0, %v4734_v37  ;;  %v4910_v42 = vadd.f32 %v4602_v26, %v4738_v38  ;;  %v748_v30 = vpop.f32.mrf.mxu0 }
 0x14a   :  { %v4914_v1 = vadd.f32 %v4608_v11, %v4750_v41  ;;  %v4918_v57 = vadd.f32 %v4610_v4, %v4754_v43  ;;  %v4922_v61 = vadd.f32 %v4648_v23, %v4770_v58  ;;  %v4926_v0 = vadd.f32 %v4650_v10, %v4774_v50  ;;  %v6905_v38 = vld [vmem:[#allocation21_spill] sm:$0xff] }
 0x14b   :  { %v861_v2 = vpop.f32.mrf.mxu1  ;;  %v4930_v26 = vadd.f32 %v4684_v59, %v4778_v19  ;;  %v4934_v11 = vadd.f32 %v4686_v22, %v4782_v15  ;;  %v4938_v4 = vadd.f32 %v4720_v60, %v4786_v5  ;;  %v4942_v23 = vadd.f32 %v4722_v33, %v4790_v16  ;;  %v750_v50 = vpop.f32.mrf.mxu0  ;;  %v6904_v60 = vld [vmem:[#allocation6_spill] sm:$0xff]  ;;  %v6909_v21 = vld [vmem:[#allocation23_spill] sm:$0xff] }
 0x14c   :  { %v743_v58 = vadd.f32 %v742_v40, %v4818_v13  ;;  %v856_v10 = vadd.f32 %v855_v36, %v4822_v56  ;;  %v862_v41 = vadd.f32 %v861_v2, %v4838_v47  ;;  %v751_v22 = vadd.f32 %v750_v50, %v4842_v55  ;;  %v6908_v56 = vld [vmem:[#allocation22_spill] sm:$0xff]  ;;  %v6912_v47 = vld [vmem:[#allocation20_spill] sm:$0xff] }
 0x14d   :  { %v863_v43 = vpop.f32.mrf.mxu1  ;;  %v739_v5 = vadd.f32 %v738_v29, %v6904_v60  ;;  %v852_v37 = vadd.f32 %v851_v28, %v6905_v38  ;;  %v6906_v33 = vld [vmem:[#allocation25_spill] sm:$0xff]  ;;  %v6907_v32 = vld [vmem:[#allocation26_spill] sm:$0xff]  ;;  %v752_v13 = vpop.f32.mrf.mxu0  ;;  %v741_v27 = vadd.f32 %v740_v45, %v6908_v56 }
 0x14e   :  { %v6903_v59 = vld [vmem:[#allocation27_spill] sm:$0xff]  ;;  %v864_v15 = vadd.f32 %v863_v43, %v4846_v25  ;;  %v747_v16 = vadd.f32 %v746_v51, %v6906_v33  ;;  %v860_v40 = vadd.f32 %v859_v24, %v6907_v32  ;;  %v753_v2 = vadd.f32 %v752_v13, %v4850_v63  ;;  %v6911_v24 = vld [vmem:[#allocation97_spill] sm:$0xff] }
 0x14f   :  { %v749_v19 = vadd.f32 %v748_v30, %v6903_v59  ;;  %v865_v36 = vpop.f32.mrf.mxu1  ;;  %v854_v30 = vadd.f32 %v853_v44, %v6909_v21  ;;  %v921_v55 = vmax.f32 %v743_v58, 0.0  ;;  %v923_v43 = vmax.f32 %v856_v10, 0.0  ;;  %v6910_v33 = vld [vmem:[#allocation19_spill] sm:$0xff]  ;;  %v6913_v59 = vld [vmem:[#allocation98_spill] sm:$0xff] }
 0x150   :  { %v866_v50 = vadd.f32 %v865_v36, %v4854_v49  ;;  %v928_v25 = vmax.f32 %v751_v22, 0.0  ;;  %v930_v29 = vmax.f32 %v864_v15, 0.0  ;;  %v927_v28 = vmax.f32 %v862_v41, 0.0 }
 0x151   :  { %v925_v60 = vmax.f32 %v749_v19, 0.0  ;;  %v929_v38 = vmax.f32 %v753_v2, 0.0  ;;  %v737_v32 = vadd.f32 %v6911_v24, %v6910_v33  ;;  %v850_v45 = vadd.f32 %v6913_v59, %v6912_v47  ;;  %v6914_v24 = vld [vmem:[#allocation9_spill] sm:$0xff] }
 0x152   :  { %v931_v51 = vmax.f32 %v866_v50, 0.0  ;;  %v924_v56 = vmax.f32 %v747_v16, 0.0  ;;  %v926_v44 = vmax.f32 %v860_v40, 0.0  ;;  %v917_v21 = vmax.f32 %v739_v5, 0.0  ;;  %v6915_v59 = vld [vmem:[#allocation65_spill] sm:$0xff]  ;;  %v6917_v5 = vld [vmem:[#allocation66_spill] sm:$0xff] }
 0x153   :  { %v919_v13 = vmax.f32 %v852_v37, 0.0  ;;  %v961_v63 = vpack.c.bf16 %v929_v38, %v925_v60  ;;  %v920_v58 = vmax.f32 %v741_v27, 0.0  ;;  %v922_v10 = vmax.f32 %v854_v30, 0.0  ;;  %v6916_v40 = vld [vmem:[#allocation13_spill] sm:$0xff]  ;;  %v6918_v27 = vld [vmem:[#allocation95_spill] sm:$0xff]  ;;  %v6921_v30 = vld [vmem:[#allocation64_spill] sm:$0xff] }
 0x154   :  { %v963_v36 = vpack.c.bf16 %v931_v51, %v927_v28  ;;  %v960_v22 = vpack.c.bf16 %v928_v25, %v924_v56  ;;  %v962_v15 = vpack.c.bf16 %v930_v29, %v926_v44  ;;  %v913_v19 = vmax.f32 %v4938_v4, 0.0  ;;  %v6919_v56 = vld [vmem:[#allocation63_spill] sm:$0xff]  ;;  %v6920_v4 = vld [vmem:[#allocation96_spill] sm:$0xff] }
 0x155   :  { %v915_v41 = vmax.f32 %v4942_v23, 0.0  ;;  %1044 = vmatprep.subr.bf16.mxu0 %v961_v63  ;;  %v957_v2 = vpack.c.bf16 %v921_v55, %v917_v21  ;;  %v959_v50 = vpack.c.bf16 %v923_v43, %v919_v13  ;;  %v727_v16 = vadd.f32 %v6915_v59, %v6914_v24  ;;  %v6922_v13 = vld [vmem:[#allocation91_spill] sm:$0xff]  ;;  %v6929_v59 = vld [vmem:[#allocation60_spill] sm:$0xff] }
 0x156   :  { %1117 = vmatprep.subr.bf16.mxu1 %v963_v36  ;;  %v840_v37 = vadd.f32 %v6917_v5, %v6916_v40  ;;  %v916_v38 = vmax.f32 %v737_v32, 0.0  ;;  %v918_v60 = vmax.f32 %v850_v45, 0.0  ;;  %1045 = vmatpush1.bf16.msra.mxu0 %v960_v22  ;;  %v721_v25 = vadd.f32 %v6919_v56, %v6918_v27  ;;  %v6923_v36 = vld [vmem:[#allocation61_spill] sm:$0xff] }
 0x157   :  { %1118 = vmatpush1.bf16.msra.mxu1 %v962_v15  ;;  %v834_v23 = vadd.f32 %v6921_v30, %v6920_v4  ;;  %v909_v63 = vmax.f32 %v4922_v61, 0.0  ;;  %v911_v21 = vmax.f32 %v4926_v0, 0.0  ;;  %1046 = vmatprep.subr.bf16.mxu0 %v957_v2  ;;  %v912_v55 = vmax.f32 %v4930_v26, 0.0  ;;  %v6924_v61 = vld [vmem:[#allocation92_spill] sm:$0xff]  ;;  %v6925_v15 = vld [vmem:[#allocation62_spill] sm:$0xff]  ;;  %v6926_v26 = vld [vmem:[#allocation87_spill] sm:$0xff] }
 0x158   :  { %1119 = vmatprep.subr.bf16.mxu1 %v959_v50  ;;  %v914_v43 = vmax.f32 %v4934_v11, 0.0  ;;  %v956_v32 = vpack.c.bf16 %v920_v58, %v916_v38  ;;  %v958_v29 = vpack.c.bf16 %v922_v10, %v918_v60  ;;  %v905_v28 = vmax.f32 %v4914_v1, 0.0  ;;  %v6927_v11 = vld [vmem:[#allocation59_spill] sm:$0xff]  ;;  %v6928_v10 = vld [vmem:[#allocation88_spill] sm:$0xff] }
 0x159   :  { %v907_v51 = vmax.f32 %v4918_v57, 0.0  ;;  %v953_v45 = vpack.c.bf16 %v913_v19, %v909_v63  ;;  %v955_v44 = vpack.c.bf16 %v915_v41, %v911_v21  ;;  %v717_v22 = vadd.f32 %v6923_v36, %v6922_v13  ;;  %v6930_v63 = vld [vmem:[#allocation83_spill] sm:$0xff]  ;;  %v6931_v21 = vld [vmem:[#allocation57_spill] sm:$0xff]  ;;  %v6933_v36 = vld [vmem:[#allocation58_spill] sm:$0xff] }
 0x15a   :  { %v830_v0 = vadd.f32 %v6925_v15, %v6924_v61  ;;  %v908_v2 = vmax.f32 %v727_v16, 0.0  ;;  %v910_v50 = vmax.f32 %v840_v37, 0.0  ;;  %1047 = vmatpush1.bf16.msra.mxu0 %v956_v32  ;;  %v711_v58 = vadd.f32 %v6927_v11, %v6926_v26 }
 0x15b   :  { %1120 = vmatpush1.bf16.msra.mxu1 %v958_v29  ;;  %v824_v1 = vadd.f32 %v6929_v59, %v6928_v10  ;;  %v901_v57 = vmax.f32 %v4906_v12, 0.0  ;;  %v903_v19 = vmax.f32 %v4910_v42, 0.0  ;;  %1048 = vmatprep.subr.bf16.mxu0 %v953_v45  ;;  %v904_v41 = vmax.f32 %v721_v25, 0.0  ;;  %v6932_v29 = vld [vmem:[#allocation84_spill] sm:$0xff]  ;;  %v6934_v25 = vld [vmem:[#allocation79_spill] sm:$0xff] }
 0x15c   :  { %1121 = vmatprep.subr.bf16.mxu1 %v955_v44  ;;  %v906_v5 = vmax.f32 %v834_v23, 0.0  ;;  %v952_v38 = vpack.c.bf16 %v912_v55, %v908_v2  ;;  %v954_v60 = vpack.c.bf16 %v914_v43, %v910_v50  ;;  %v897_v16 = vmax.f32 %v4898_v39, 0.0  ;;  %v6935_v23 = vld [vmem:[#allocation55_spill] sm:$0xff]  ;;  %v6936_v43 = vld [vmem:[#allocation80_spill] sm:$0xff] }
 0x15d   :  { %v899_v37 = vmax.f32 %v4902_v3, 0.0  ;;  %v949_v56 = vpack.c.bf16 %v905_v28, %v901_v57  ;;  %v951_v30 = vpack.c.bf16 %v907_v51, %v903_v19  ;;  %v707_v32 = vadd.f32 %v6931_v21, %v6930_v63  ;;  %v6937_v45 = vld [vmem:[#allocation56_spill] sm:$0xff]  ;;  %v6938_v57 = vld [vmem:[#allocation75_spill] sm:$0xff] }
 0x15e   :  { %v820_v12 = vadd.f32 %v6933_v36, %v6932_v29  ;;  %v900_v15 = vmax.f32 %v717_v22, 0.0  ;;  %v902_v42 = vmax.f32 %v830_v0, 0.0  ;;  %1049 = vmatpush1.bf16.msra.mxu0 %v952_v38  ;;  %v701_v55 = vadd.f32 %v6935_v23, %v6934_v25  ;;  %v6939_v19 = vld [vmem:[#allocation51_spill] sm:$0xff]  ;;  %v6941_v21 = vld [vmem:[#allocation52_spill] sm:$0xff] }
 0x15f   :  { %1122 = vmatpush1.bf16.msra.mxu1 %v954_v60  ;;  %v814_v39 = vadd.f32 %v6937_v45, %v6936_v43  ;;  %v893_v3 = vmax.f32 %v4890_v34, 0.0  ;;  %v895_v28 = vmax.f32 %v4894_v62, 0.0  ;;  %1050 = vmatprep.subr.bf16.mxu0 %v949_v56  ;;  %v896_v51 = vmax.f32 %v711_v58, 0.0  ;;  %v6940_v60 = vld [vmem:[#allocation76_spill] sm:$0xff]  ;;  %v6942_v58 = vld [vmem:[#allocation71_spill] sm:$0xff] }
 0x160   :  { %1123 = vmatprep.subr.bf16.mxu1 %v951_v30  ;;  %v898_v44 = vmax.f32 %v824_v1, 0.0  ;;  %v948_v2 = vpack.c.bf16 %v904_v41, %v900_v15  ;;  %v950_v50 = vpack.c.bf16 %v906_v5, %v902_v42  ;;  %v889_v22 = vmax.f32 %v4882_v31, 0.0  ;;  %v6943_v1 = vld [vmem:[#allocation47_spill] sm:$0xff]  ;;  %v6944_v5 = vld [vmem:[#allocation72_spill] sm:$0xff] }
 0x161   :  { %v891_v0 = vmax.f32 %v4886_v7, 0.0  ;;  %v945_v11 = vpack.c.bf16 %v897_v16, %v893_v3  ;;  %v947_v59 = vpack.c.bf16 %v899_v37, %v895_v28  ;;  %v697_v38 = vadd.f32 %v6939_v19, %v6938_v57  ;;  %v6945_v56 = vld [vmem:[#allocation48_spill] sm:$0xff] }
 0x162   :  { %v810_v34 = vadd.f32 %v6941_v21, %v6940_v60  ;;  %v892_v36 = vmax.f32 %v707_v32, 0.0  ;;  %v894_v62 = vmax.f32 %v820_v12, 0.0  ;;  %1051 = vmatpush1.bf16.msra.mxu0 %v948_v2  ;;  %v689_v41 = vadd.f32 %v6943_v1, %v6942_v58  ;;  %v6946_v2 = vld [vmem:[#allocation67_spill] sm:$0xff]  ;;  %v6954_v1 = vld [vmem:[#allocation46_spill] sm:$0xff] }
 0x163   :  { %1124 = vmatpush1.bf16.msra.mxu1 %v950_v50  ;;  %v802_v31 = vadd.f32 %v6945_v56, %v6944_v5  ;;  %v885_v7 = vmax.f32 %v4874_v53, 0.0  ;;  %v887_v16 = vmax.f32 %v4878_v52, 0.0  ;;  %1052 = vmatprep.subr.bf16.mxu0 %v945_v11  ;;  %v888_v37 = vmax.f32 %v701_v55, 0.0  ;;  %v6947_v53 = vld [vmem:[#allocation39_spill] sm:$0xff]  ;;  %v6948_v52 = vld [vmem:[#allocation68_spill] sm:$0xff]  ;;  %v5036_v56 = vld [vmem:[%s6556_s6 + $0x8] sm:$0xff]  }
 0x164   :  { %1125 = vmatprep.subr.bf16.mxu1 %v947_v59  ;;  %v890_v30 = vmax.f32 %v814_v39, 0.0  ;;  %v944_v15 = vpack.c.bf16 %v896_v51, %v892_v36  ;;  %v946_v42 = vpack.c.bf16 %v898_v44, %v894_v62  ;;  %v881_v32 = vmax.f32 %v4866_v54, 0.0  ;;  %v6949_v11 = vld [vmem:[#allocation40_spill] sm:$0xff]  ;;  %v6950_v36 = vld [vmem:[#allocation53_spill] sm:$0xff]  ;;  %v6951_v62 = vld [vmem:[#allocation54_spill] sm:$0xff]  ;;  %6956 = vst [vmem:[#allocation32_spill] sm:$0xff] %v5036_v56 }
 0x165   :  { %v883_v12 = vmax.f32 %v4870_v35, 0.0  ;;  %v941_v23 = vpack.c.bf16 %v889_v22, %v885_v7  ;;  %v943_v45 = vpack.c.bf16 %v891_v0, %v887_v16  ;;  %v884_v3 = vmax.f32 %v697_v38, 0.0  ;;  %v5054_v7 = vld [vmem:[%s6556_s6 + $0x18] sm:$0xff]  }
 0x166   :  { %v886_v28 = vmax.f32 %v810_v34, 0.0  ;;  %1053 = vmatpush1.bf16.msra.mxu0 %v944_v15  ;;  %v679_v50 = vadd.f32 %v6947_v53, %v6946_v2  ;;  %v792_v59 = vadd.f32 %v6949_v11, %v6948_v52  ;;  %v877_v55 = vmax.f32 %v689_v41, 0.0  ;;  %6958 = vst [vmem:[#allocation33_spill] sm:$0xff] %v5054_v7 }
 0x167   :  { %1126 = vmatpush1.bf16.msra.mxu1 %v946_v42  ;;  %v879_v39 = vmax.f32 %v802_v31, 0.0  ;;  %1054 = vmatprep.subr.bf16.mxu0 %v941_v23  ;;  %v940_v51 = vpack.c.bf16 %v888_v37, %v884_v3  ;;  %v873_v35 = vmax.f32 %v4858_v14, 0.0  ;;  %v875_v44 = vmax.f32 %v4862_v46, 0.0  ;;  %v5025_v14 = vld [vmem:[%s6556_s6] sm:$0xff]   ;;  %v5045_v31 = vld [vmem:[%s6556_s6 + $0x10] sm:$0xff]   ;;  %v5070_v3 = vpop.permute.xlu1 %1017 }
 0x168   :  { %1127 = vmatprep.subr.bf16.mxu1 %v943_v45  ;;  %v942_v54 = vpack.c.bf16 %v890_v30, %v886_v28  ;;  %v937_v22 = vpack.c.bf16 %v881_v32, %v877_v55  ;;  %v869_v19 = vmax.f32 %v679_v50, 0.0  ;;  %v871_v38 = vmax.f32 %v792_v59, 0.0  ;;  %6952 = vst [vmem:[#allocation31_spill] sm:$0xff] %v5025_v14  ;;  %v6953_v46 = vld [vmem:[#allocation45_spill] sm:$0xff]  ;;  %6957 = vst [vmem:[#allocation7_spill] sm:$0xff] %v5045_v31  ;;  %v5068_v45 = vpop.permute.xlu0 %1012 }
 0x169   :  { %v939_v0 = vpack.c.bf16 %v883_v12, %v879_v39  ;;  %v6955_v41 = vmov 0   ;;  %6959 = vst [vmem:[#allocation34_spill] sm:$0xff] %v5068_v45  ;;  %6960 = vst [vmem:[#allocation35_spill] sm:$0xff] %v5070_v3 }
 0x16a   :  { %1055 = vmatpush1.bf16.msra.mxu0 %v940_v51  ;;  %v933_v21 = vpack.c.bf16 %v873_v35, %v869_v19  ;;  %v935_v34 = vpack.c.bf16 %v875_v44, %v871_v38 }
 0x16b   :  { %1128 = vmatpush1.bf16.msra.mxu1 %v942_v54  ;;  %1056 = vmatprep.subr.bf16.mxu0 %v937_v22  ;;  %v5078_v51 = vpop.permute.xlu1 %1007 }
 0x16c   :  { %1129 = vmatprep.subr.bf16.mxu1 %v939_v0  ;;  %v5076_v39 = vpop.permute.xlu0 %1002  ;;  %6962 = vst [vmem:[#allocation97_spill] sm:$0xff] %v5078_v51 }
 0x16d   :  { %6961 = vst [vmem:[#allocation36_spill] sm:$0xff] %v5076_v39 }
 0x16e   :  { %1057 = vmatpush1.bf16.msra.mxu0 %v6950_v36 }
 0x16f   :  { %1130 = vmatpush1.bf16.msra.mxu1 %v6951_v62  ;;  %1058 = vmatprep.subr.bf16.mxu0 %v933_v21  ;;  %v5082_v21 = vpop.permute.xlu1 %997 }
 0x170   :  { %1131 = vmatprep.subr.bf16.mxu1 %v935_v34  ;;  %v5080_v38 = vpop.permute.xlu0 %992  ;;  %6964 = vst [vmem:[#allocation65_spill] sm:$0xff] %v5082_v21 }
 0x171   :  { %6963 = vst [vmem:[#allocation98_spill] sm:$0xff] %v5080_v38 }
 0x172   :  { %1059 = vmatpush1.bf16.msra.mxu0 %v6953_v46 }
 0x173   :  { %1132 = vmatpush1.bf16.msra.mxu1 %v6954_v1 }
 0x175   :  { %1077 = vmatmul.mubr.bf16.vlgmr.msra.gmra.mxu0 %v5025_v14 }
 0x176   :  { %1150 = vmatmul.mubr.bf16.vlgmr.msra.gmra.mxu1 %v5025_v14  ;;  %1086 = vmatprep.mubr.bf16.mxu0 %v6955_v41 }
 0x177   :  { %1159 = vmatprep.mubr.bf16.mxu1 %v6955_v41 }
 0x17d   :  { %1087 = vmatmul.mubr.bf16.gmra.mxu0 %v5036_v56 }
 0x17e   :  { %1160 = vmatmul.mubr.bf16.gmra.mxu1 %v5036_v56  ;;  %1096 = vmatprep.mubr.bf16.mxu0 %v6955_v41  ;;  %v5086_v56 = vpop.permute.xlu1 %987 }
 0x17f   :  { %1169 = vmatprep.mubr.bf16.mxu1 %v6955_v41  ;;  %6966 = vst [vmem:[#allocation63_spill] sm:$0xff] %v5086_v56 }
 0x185   :  { %1097 = vmatmul.mubr.bf16.gmra.mxu0 %v5045_v31 }
 0x186   :  { %1170 = vmatmul.mubr.bf16.gmra.mxu1 %v5045_v31  ;;  %1106 = vmatprep.mubr.bf16.mxu0 %v6955_v41  ;;  %v5084_v31 = vpop.permute.xlu0 %982 }
 0x187   :  { %1179 = vmatprep.mubr.bf16.mxu1 %v6955_v41  ;;  %6965 = vst [vmem:[#allocation66_spill] sm:$0xff] %v5084_v31 }
 0x18d   :  { %1107 = vmatmul.mubr.bf16.gmra.mxu0 %v5054_v7 }
 0x18e   :  { %1180 = vmatmul.mubr.bf16.gmra.mxu1 %v5054_v7  ;;  %1281 = vmatprep.mubr.bf16.mxu0 %v6955_v41 }
 0x18f   :  { %1322 = vmatprep.mubr.bf16.mxu1 %v6955_v41 }
 0x235   :  { %v5060_v16 = vpop.f32.mrf.mxu0 }
 0x236   :  { %v5062_v37 = vpop.f32.mrf.mxu1 }
 0x237   :  { %v1080_v30 = vpop.f32.mrf.mxu0 }
 0x238   :  { %v1153_v15 = vpop.f32.mrf.mxu1  ;;  %v5089_v14 = vadd.f32 %v1080_v30, %v5084_v31 }
 0x239   :  { %v5064_v42 = vpop.f32.mrf.mxu0  ;;  %v5092_v52 = vadd.f32 %v1153_v15, %v5084_v31 }
 0x23a   :  { %v5066_v32 = vpop.f32.mrf.mxu1 }
 0x23b   :  { %v1084_v12 = vpop.f32.mrf.mxu0 }
 0x23c   :  { %v1157_v23 = vpop.f32.mrf.mxu1  ;;  %v5095_v2 = vadd.f32 %v1084_v12, %v5086_v56 }
 0x23d   :  { %v5072_v28 = vpop.f32.mrf.mxu0  ;;  %v5098_v5 = vadd.f32 %v1157_v23, %v5086_v56 }
 0x23e   :  { %v5074_v53 = vpop.f32.mrf.mxu1 }
 0x23f   :  { %v1090_v50 = vpop.f32.mrf.mxu0 }
 0x240   :  { %v1163_v11 = vpop.f32.mrf.mxu1  ;;  %v5101_v57 = vadd.f32 %v1090_v50, %v5080_v38 }
 0x241   :  { %v1092_v59 = vpop.f32.mrf.mxu0  ;;  %v5104_v43 = vadd.f32 %v1163_v11, %v5080_v38 }
 0x242   :  { %v1165_v55 = vpop.f32.mrf.mxu1  ;;  %v5107_v30 = vadd.f32 %v1092_v59, %v5082_v21 }
 0x243   :  { %v1094_v54 = vpop.f32.mrf.mxu0  ;;  %v5110_v15 = vadd.f32 %v1165_v55, %v5082_v21 }
 0x244   :  { %v1167_v35 = vpop.f32.mrf.mxu1  ;;  %v5113_v12 = vadd.f32 %v1094_v54, %v5082_v21 }
 0x245   :  { %v1098_v44 = vpop.f32.mrf.mxu0  ;;  %v5116_v23 = vadd.f32 %v1167_v35, %v5082_v21 }
 0x246   :  { %v1171_v22 = vpop.f32.mrf.mxu1 }
 0x247   :  { %v1100_v0 = vpop.f32.mrf.mxu0 }
 0x248   :  { %v1173_v19 = vpop.f32.mrf.mxu1  ;;  %v1101_v54 = vadd.f32 %v1100_v0, %v5076_v39 }
 0x249   :  { %v1102_v34 = vpop.f32.mrf.mxu0  ;;  %v1174_v26 = vadd.f32 %v1173_v19, %v5076_v39 }
 0x24a   :  { %v1175_v36 = vpop.f32.mrf.mxu1  ;;  %v1103_v61 = vadd.f32 %v1102_v34, %v5078_v51  ;;  %v1207_v47 = vmax.f32 %v1101_v54, 0.0 }
 0x24b   :  { %v1104_v62 = vpop.f32.mrf.mxu0 }
 0x24c   :  { %v1177_v46 = vpop.f32.mrf.mxu1  ;;  %v1105_v25 = vadd.f32 %v1104_v62, %v5078_v51  ;;  %v1210_v33 = vmax.f32 %v1103_v61, 0.0  ;;  %v1199_v61 = vmax.f32 %v5101_v57, 0.0 }
 0x24d   :  { %v1108_v1 = vpop.f32.mrf.mxu0  ;;  %v1178_v50 = vadd.f32 %v1177_v46, %v5078_v51 }
 0x24e   :  { %v1181_v7 = vpop.f32.mrf.mxu1  ;;  %v1109_v35 = vadd.f32 %v1108_v1, %v5068_v45  ;;  %v1211_v13 = vmax.f32 %v1105_v25, 0.0 }
 0x24f   :  { %v1110_v58 = vpop.f32.mrf.mxu0  ;;  %v1182_v62 = vadd.f32 %v1181_v7, %v5068_v45  ;;  %v1099_v7 = vadd.f32 %v1098_v44, %v5076_v39 }
 0x250   :  { %v1183_v60 = vpop.f32.mrf.mxu1  ;;  %v1111_v11 = vadd.f32 %v1110_v58, %v5068_v45  ;;  %v1176_v58 = vadd.f32 %v1175_v36, %v5078_v51  ;;  %v1214_v24 = vmax.f32 %v1109_v35, 0.0  ;;  %v1209_v36 = vmax.f32 %v1174_v26, 0.0 }
 0x251   :  { %v1112_v29 = vpop.f32.mrf.mxu0  ;;  %v1184_v59 = vadd.f32 %v1183_v60, %v5068_v45  ;;  %v1172_v45 = vadd.f32 %v1171_v22, %v5076_v39  ;;  %v1216_v34 = vmax.f32 %v1182_v62, 0.0  ;;  %v1089_v22 = vadd.f32 %v5072_v28, %v5080_v38 }
 0x252   :  { %v1185_v63 = vpop.f32.mrf.mxu1  ;;  %v1113_v10 = vadd.f32 %v1112_v29, %v5070_v3  ;;  %v1215_v27 = vmax.f32 %v1111_v11, 0.0  ;;  %v1205_v11 = vmax.f32 %v5116_v23, 0.0  ;;  %v1162_v26 = vadd.f32 %v5074_v53, %v5080_v38 }
 0x253   :  { %v1186_v55 = vadd.f32 %v1185_v63, %v5070_v3  ;;  %v1114_v21 = vpop.f32.mrf.mxu0  ;;  %v1213_v63 = vmax.f32 %v1178_v50, 0.0  ;;  %v1217_v19 = vmax.f32 %v1184_v59, 0.0  ;;  %v1231_v59 = vpack.c.bf16 %v1211_v13, %v1207_v47 }
 0x254   :  { %v1187_v46 = vpop.f32.mrf.mxu1  ;;  %v1115_v60 = vadd.f32 %v1114_v21, %v5070_v3  ;;  %v1218_v4 = vmax.f32 %v1113_v10, 0.0  ;;  %v1203_v10 = vmax.f32 %v5113_v12, 0.0  ;;  %v1201_v47 = vmax.f32 %v5104_v43, 0.0 }
 0x255   :  { %v1188_v29 = vadd.f32 %v1187_v46, %v5070_v3  ;;  %v1220_v0 = vmax.f32 %v1186_v55, 0.0  ;;  %v1212_v46 = vmax.f32 %v1176_v58, 0.0  ;;  %v1233_v44 = vpack.c.bf16 %v1213_v63, %v1209_v36  ;;  %v3887_v36 = vld [vmem:[%s6550_s0 + $0x74] ss:$16 sps:$4 sm:$0xff]  }
 0x256   :  { %v1219_v40 = vmax.f32 %v1115_v60, 0.0  ;;  %v1234_v25 = vpack.c.bf16 %v1218_v4, %v1214_v24  ;;  %v1083_v24 = vadd.f32 %v5064_v42, %v5086_v56  ;;  %v1156_v4 = vadd.f32 %v5066_v32, %v5086_v56 }
 0x257   :  { %v1221_v1 = vmax.f32 %v1188_v29, 0.0  ;;  %v1236_v50 = vpack.c.bf16 %v1220_v0, %v1216_v34  ;;  %v1202_v13 = vmax.f32 %v5107_v30, 0.0  ;;  %v1204_v28 = vmax.f32 %v5110_v15, 0.0 }
 0x258   :  { %v1235_v51 = vpack.c.bf16 %v1219_v40, %v1215_v27  ;;  %v1206_v40 = vmax.f32 %v1099_v7, 0.0  ;;  %v1208_v27 = vmax.f32 %v1172_v45, 0.0  ;;  %v1197_v12 = vmax.f32 %v5098_v5, 0.0  ;;  %v3710_v5 = vld [vmem:[%s6550_s0 + $0x90] sm:$0x11] }
 0x259   :  { %v1237_v21 = vpack.c.bf16 %v1221_v1, %v1217_v19  ;;  %v1227_v42 = vpack.c.bf16 %v1203_v10, %v1199_v61  ;;  %v1229_v23 = vpack.c.bf16 %v1205_v11, %v1201_v47  ;;  %v1079_v32 = vadd.f32 %v5060_v16, %v5084_v31  ;;  %v5165_v1 = vld [vmem:[%s6558_s8] sm:$0x1]  ;;  %v3896_v10 = vld [vmem:[%s6550_s0 + $0x5c] ss:$16 sps:$4 sm:$0xff]  }
 0x25a   :  { %1257 = vmatprep.subr.bf16.mxu0 %v1235_v51  ;;  %v1230_v53 = vpack.c.bf16 %v1210_v33, %v1206_v40  ;;  %v1232_v45 = vpack.c.bf16 %v1212_v46, %v1208_v27  ;;  %v1195_v51 = vmax.f32 %v5095_v2, 0.0  ;;  %v1152_v43 = vadd.f32 %v5062_v37, %v5084_v31  ;;  %v3711_v37 = vld [vmem:[%s6550_s0 + $0x98] sm:$0x11]  ;;  %6967 = vst [vmem:[#allocation64_spill] sm:$0xff] %v5165_v1  ;;  %v3885_v46 = vld [vmem:[%s6550_s0 + $0x70] ss:$16 sps:$4 sm:$0xff]  }
 0x25b   :  { %1298 = vmatprep.subr.bf16.mxu1 %v1237_v21  ;;  %1258 = vmatpush1.bf16.msra.mxu0 %v1234_v25  ;;  %v1198_v57 = vmax.f32 %v1089_v22, 0.0  ;;  %v1200_v55 = vmax.f32 %v1162_v26, 0.0  ;;  %v1191_v30 = vmax.f32 %v5089_v14, 0.0  ;;  %v1193_v33 = vmax.f32 %v5092_v52, 0.0  ;;  %v3890_v21 = vld [vmem:[%s6550_s0 + $0x7c] ss:$16 sps:$4 sm:$0xff]  }
 0x25c   :  { %1299 = vmatpush1.bf16.msra.mxu1 %v1236_v50  ;;  %1259 = vmatprep.subr.bf16.mxu0 %v1231_v59  ;;  %v1194_v2 = vmax.f32 %v1083_v24, 0.0  ;;  %v1196_v15 = vmax.f32 %v1156_v4, 0.0  ;;  %v1190_v58 = vmax.f32 %v1079_v32, 0.0  ;;  %v1192_v14 = vmax.f32 %v1152_v43, 0.0  ;;  %v3888_v25 = vld [vmem:[%s6550_s0 + $0x78] ss:$16 sps:$4 sm:$0xff]  }
 0x25d   :  { %1300 = vmatprep.subr.bf16.mxu1 %v1233_v44  ;;  %v1226_v16 = vpack.c.bf16 %v1202_v13, %v1198_v57  ;;  %v1228_v54 = vpack.c.bf16 %v1204_v28, %v1200_v55  ;;  %v1223_v35 = vpack.c.bf16 %v1195_v51, %v1191_v30  ;;  %v1225_v62 = vpack.c.bf16 %v1197_v12, %v1193_v33  ;;  %v3893_v50 = vld [vmem:[%s6550_s0 + $0x54] ss:$16 sps:$4 sm:$0xff]   ;;  %v3891_v11 = vld [vmem:[%s6550_s0 + $0x50] ss:$16 sps:$4 sm:$0xff]   ;;  %v3894_v59 = vld [vmem:[%s6550_s0 + $0x58] ss:$16 sps:$4 sm:$0xff]  }
 0x25e   :  { %v3721_v52 = vcombine.high %v3710_v5, %v3710_v5  ;;  %v3723_v60 = vcombine.high %v3711_v37, %v3711_v37  ;;  %v3720_v29 = vcombine.low %v3710_v5, %v3710_v5  ;;  %v3722_v63 = vcombine.low %v3711_v37, %v3711_v37  ;;  %v5204_v44 = vld [vmem:[%s6553_s3] sm:$0xff]   ;;  %v5215_v22 = vld [vmem:[%s6553_s3 + $0x8] sm:$0xff]   ;;  %v5226_v26 = vld [vmem:[%s6553_s3 + $0x10] sm:$0xff]  }
 0x25f   :  { %1260 = vmatpush1.bf16.msra.mxu0 %v1230_v53  ;;  %v1222_v0 = vpack.c.bf16 %v1194_v2, %v1190_v58  ;;  %v1224_v19 = vpack.c.bf16 %v1196_v15, %v1192_v14  ;;  %6968 = vst [vmem:[#allocation61_spill] sm:$0xff] %v5204_v44  ;;  %6969 = vst [vmem:[#allocation62_spill] sm:$0xff] %v5215_v22  ;;  %v5237_v40 = vld [vmem:[%s6553_s3 + $0x18] sm:$0xff]   ;;  %v5248_v27 = vld [vmem:[%s6553_s3 + $0x20] sm:$0xff]  }
 0x260   :  { %1301 = vmatpush1.bf16.msra.mxu1 %v1232_v45  ;;  %1261 = vmatprep.subr.bf16.mxu0 %v1227_v42  ;;  %v1393_v7 = vsel %vm629_vm1, %v3720_v29, 0  ;;  %v1399_v34 = vsel %vm629_vm1, %v3722_v63, 0  ;;  %6970 = vst [vmem:[#allocation59_spill] sm:$0xff] %v5226_v26  ;;  %6971 = vst [vmem:[#allocation60_spill] sm:$0xff] %v5237_v40  ;;  %v5259_v24 = vld [vmem:[%s6553_s3 + $0x28] sm:$0xff]   ;;  %v5270_v4 = vld [vmem:[%s6553_s3 + $0x30] sm:$0xff]  }
 0x261   :  { %1302 = vmatprep.subr.bf16.mxu1 %v1229_v23  ;;  %6972 = vst [vmem:[#allocation57_spill] sm:$0xff] %v5248_v27  ;;  %6973 = vst [vmem:[#allocation58_spill] sm:$0xff] %v5259_v24  ;;  %v5281_v61 = vld [vmem:[%s6553_s3 + $0x38] sm:$0xff]   ;;  %v6982_v55 = vld [vmem:[#allocation37_spill] sm:$0xff] }
 0x262   :  { %6974 = vst [vmem:[#allocation55_spill] sm:$0xff] %v5270_v4  ;;  %6975 = vst [vmem:[#allocation56_spill] sm:$0xff] %v5281_v61  ;;  %v6983_v33 = vld [vmem:[#allocation38_spill] sm:$0xff] }
 0x263   :  { %1262 = vmatpush1.bf16.msra.mxu0 %v1226_v16  ;;  %v6984_v16 = vld [vmem:[#allocation41_spill] sm:$0xff]  ;;  %v6985_v37 = vld [vmem:[#allocation42_spill] sm:$0xff] }
 0x264   :  { %1303 = vmatpush1.bf16.msra.mxu1 %v1228_v54  ;;  %1263 = vmatprep.subr.bf16.mxu0 %v1223_v35 }
 0x265   :  { %1304 = vmatprep.subr.bf16.mxu1 %v1225_v62 }
 0x267   :  { %1264 = vmatpush1.bf16.msra.mxu0 %v1222_v0 }
 0x268   :  { %1305 = vmatpush1.bf16.msra.mxu1 %v1224_v19  ;;  %3724 = vmatprep.subr.msk.bf16.mxu0 %vm629_vm1, %v3721_v52 }
 0x269   :  { %3733 = vmatprep.subr.msk.bf16.mxu1 %vm629_vm1, %v3723_v60 }
 0x26a   :  { %3700 = vmatmul.mubr.msk.bf16.vlgmr.msra.gmra.mxu0 %vm1245_vm3, %v5165_v1 }
 0x26b   :  { %3701 = vmatmul.mubr.msk.bf16.vlgmr.msra.gmra.mxu1 %vm1245_vm3, %v5165_v1  ;;  %1415 = vmatpush1.bf16.msra.mxu0 %v1393_v7 }
 0x26c   :  { %1528 = vmatpush1.bf16.msra.mxu1 %v1399_v34  ;;  %1416 = vmatprep.subr.bf16.mxu0 %v3887_v36 }
 0x26d   :  { %1529 = vmatprep.subr.bf16.mxu1 %v3890_v21  ;;  %1436 = vmatprep.mubr.bf16.mxu0 %v6955_v41  ;;  %v6990_v21 = vld [vmem:[#allocation43_spill] sm:$0xff] }
 0x26e   :  { %1549 = vmatprep.mubr.bf16.mxu1 %v6955_v41 }
 0x26f   :  { %1417 = vmatpush1.bf16.msra.mxu0 %v3885_v46 }
 0x270   :  { %1530 = vmatpush1.bf16.msra.mxu1 %v3888_v25  ;;  %1418 = vmatprep.subr.bf16.mxu0 %v3893_v50  ;;  %v6991_v25 = vld [vmem:[#allocation44_spill] sm:$0xff] }
 0x271   :  { %1531 = vmatprep.subr.bf16.mxu1 %v3896_v10 }
 0x273   :  { %1419 = vmatpush1.bf16.msra.mxu0 %v3891_v11 }
 0x274   :  { %1532 = vmatpush1.bf16.msra.mxu1 %v3894_v59  ;;  %v6992_v59 = vld [vmem:[#allocation49_spill] sm:$0xff] }
 0x276   :  { %3725 = vmatmul.mubr.msk.bf16.vlgmr.msra.gmra.mxu0 %vm604_vm2, %v5204_v44 }
 0x277   :  { %3734 = vmatmul.mubr.msk.bf16.vlgmr.msra.gmra.mxu1 %vm604_vm2, %v5204_v44  ;;  %1446 = vmatprep.mubr.bf16.mxu0 %v6955_v41 }
 0x278   :  { %1559 = vmatprep.mubr.bf16.mxu1 %v6955_v41 }
 0x27e   :  { %3726 = vmatmul.mubr.msk.bf16.gmra.mxu0 %vm604_vm2, %v5215_v22 }
 0x27f   :  { %3735 = vmatmul.mubr.msk.bf16.gmra.mxu1 %vm604_vm2, %v5215_v22  ;;  %1456 = vmatprep.mubr.bf16.mxu0 %v6955_v41 }
 0x280   :  { %1569 = vmatprep.mubr.bf16.mxu1 %v6955_v41 }
 0x286   :  { %3727 = vmatmul.mubr.msk.bf16.gmra.mxu0 %vm604_vm2, %v5226_v26 }
 0x287   :  { %3736 = vmatmul.mubr.msk.bf16.gmra.mxu1 %vm604_vm2, %v5226_v26  ;;  %1466 = vmatprep.mubr.bf16.mxu0 %v6955_v41 }
 0x288   :  { %1579 = vmatprep.mubr.bf16.mxu1 %v6955_v41 }
 0x28e   :  { %3728 = vmatmul.mubr.msk.bf16.gmra.mxu0 %vm604_vm2, %v5237_v40 }
 0x28f   :  { %3737 = vmatmul.mubr.msk.bf16.gmra.mxu1 %vm604_vm2, %v5237_v40  ;;  %1476 = vmatprep.mubr.bf16.mxu0 %v6955_v41 }
 0x290   :  { %1589 = vmatprep.mubr.bf16.mxu1 %v6955_v41 }
 0x296   :  { %3729 = vmatmul.mubr.msk.bf16.gmra.mxu0 %vm604_vm2, %v5248_v27 }
 0x297   :  { %3738 = vmatmul.mubr.msk.bf16.gmra.mxu1 %vm604_vm2, %v5248_v27  ;;  %1486 = vmatprep.mubr.bf16.mxu0 %v6955_v41 }
 0x298   :  { %1599 = vmatprep.mubr.bf16.mxu1 %v6955_v41 }
 0x29e   :  { %3730 = vmatmul.mubr.msk.bf16.gmra.mxu0 %vm604_vm2, %v5259_v24 }
 0x29f   :  { %3739 = vmatmul.mubr.msk.bf16.gmra.mxu1 %vm604_vm2, %v5259_v24  ;;  %1496 = vmatprep.mubr.bf16.mxu0 %v6955_v41 }
 0x2a0   :  { %1609 = vmatprep.mubr.bf16.mxu1 %v6955_v41 }
 0x2a6   :  { %3731 = vmatmul.mubr.msk.bf16.gmra.mxu0 %vm604_vm2, %v5270_v4 }
 0x2a7   :  { %3740 = vmatmul.mubr.msk.bf16.gmra.mxu1 %vm604_vm2, %v5270_v4  ;;  %1506 = vmatprep.mubr.bf16.mxu0 %v6955_v41 }
 0x2a8   :  { %1619 = vmatprep.mubr.bf16.mxu1 %v6955_v41 }
 0x2ae   :  { %3732 = vmatmul.mubr.msk.bf16.gmra.mxu0 %vm604_vm2, %v5281_v61 }
 0x2af   :  { %3741 = vmatmul.mubr.msk.bf16.gmra.mxu1 %vm604_vm2, %v5281_v61  ;;  %1758 = vmatprep.mubr.bf16.mxu0 %v6955_v41 }
 0x2b0   :  { %1831 = vmatprep.mubr.bf16.mxu1 %v6955_v41 }
 0x32a   :  { %v5289_v47 = vpop.f32.mrf.mxu0 }
 0x32b   :  { %6976 = vst [vmem:[#allocation51_spill] sm:$0xff] %v5289_v47  ;;  %v5291_v13 = vpop.f32.mrf.mxu1 }
 0x32c   :  { %6977 = vst [vmem:[#allocation52_spill] sm:$0xff] %v5291_v13  ;;  %v5293_v28 = vpop.f32.mrf.mxu0 }
 0x32d   :  { %6978 = vst [vmem:[#allocation47_spill] sm:$0xff] %v5293_v28  ;;  %v5295_v53 = vpop.f32.mrf.mxu1 }
 0x32e   :  { %6979 = vst [vmem:[#allocation48_spill] sm:$0xff] %v5295_v53  ;;  %v1287_v45 = vpop.f32.mrf.mxu0 }
 0x32f   :  { %v1328_v51 = vpop.f32.mrf.mxu1 }
 0x330   :  { %v1288_v12 = vpop.f32.mrf.mxu0  ;;  %v6993_v51 = vld [vmem:[#allocation50_spill] sm:$0xff] }
 0x331   :  { %v1329_v42 = vpop.f32.mrf.mxu1 }
 0x336   :  { %v1438_v23 = vpop.f32.mrf.mxu0 }
 0x337   :  { %v1551_v32 = vpop.f32.mrf.mxu1  ;;  %v1439_v30 = vadd.f32 %v1438_v23, %v6982_v55 }
 0x338   :  { %v5297_v43 = vpop.f32.mrf.mxu0  ;;  %v1552_v5 = vadd.f32 %v1551_v32, %v6983_v33 }
 0x339   :  { %6980 = vst [vmem:[#allocation39_spill] sm:$0xff] %v5297_v43  ;;  %v5299_v57 = vpop.f32.mrf.mxu1  ;;  %v1630_v14 = vmax.f32 %v1439_v30, 0.0  ;;  %v7021_v43 = vld [vmem:[#allocation8_spill] sm:$0xff] }
 0x33a   :  { %6981 = vst [vmem:[#allocation40_spill] sm:$0xff] %v5299_v57  ;;  %v1442_v2 = vpop.f32.mrf.mxu0  ;;  %v1632_v52 = vmax.f32 %v1552_v5, 0.0 }
 0x33b   :  { %v1555_v15 = vpop.f32.mrf.mxu1  ;;  %v1443_v54 = vadd.f32 %v1442_v2, %v6984_v16 }
 0x33c   :  { %v1556_v35 = vadd.f32 %v1555_v15, %v6985_v37  ;;  %v5305_v62 = vpop.f32.mrf.mxu0 }
 0x33d   :  { %v5307_v58 = vpop.f32.mrf.mxu1  ;;  %v1634_v60 = vmax.f32 %v1443_v54, 0.0  ;;  %v5355_v38 = vadd.f32 %v5305_v62, %v4626_v8  ;;  %v7004_v62 = vld [vmem:[#allocation82_spill] sm:$0xff] }
 0x33e   :  { %v1636_v29 = vmax.f32 %v1556_v35, 0.0  ;;  %v1448_v63 = vpop.f32.mrf.mxu0  ;;  %v5359_v56 = vadd.f32 %v5307_v58, %v4630_v48 }
 0x33f   :  { %v1561_v0 = vpop.f32.mrf.mxu1  ;;  %v5309_v19 = vpack.c.bf16 %v1634_v60, %v1630_v14  ;;  %v1449_v46 = vadd.f32 %v1448_v63, %v6990_v21  ;;  %6998 = vst [vmem:[#allocation103_spill] sm:$0xff] %v5355_v38  ;;  %v7014_v38 = vld [vmem:[#allocation14_spill] sm:$0xff] }
 0x340   :  { %v5311_v7 = vpack.c.bf16 %v1636_v29, %v1632_v52  ;;  %v5313_v34 = vpop.f32.mrf.mxu0  ;;  %v1562_v50 = vadd.f32 %v1561_v0, %v6991_v25  ;;  %6999 = vst [vmem:[#allocation104_spill] sm:$0xff] %v5359_v56 }
 0x341   :  { %6986 = vst [vmem:[#allocation53_spill] sm:$0xff] %v5309_v19  ;;  %6988 = vst [vmem:[#allocation45_spill] sm:$0xff] %v5313_v34  ;;  %v5315_v36 = vpop.f32.mrf.mxu1  ;;  %v1638_v32 = vmax.f32 %v1449_v46, 0.0  ;;  %v7029_v34 = vld [vmem:[#allocation26_spill] sm:$0xff] }
 0x342   :  { %6987 = vst [vmem:[#allocation54_spill] sm:$0xff] %v5311_v7  ;;  %6989 = vst [vmem:[#allocation46_spill] sm:$0xff] %v5315_v36  ;;  %v1452_v10 = vpop.f32.mrf.mxu0  ;;  %v1640_v30 = vmax.f32 %v1562_v50, 0.0 }
 0x343   :  { %v1565_v11 = vpop.f32.mrf.mxu1  ;;  %v1453_v45 = vadd.f32 %v1452_v10, %v6992_v59 }
 0x344   :  { %v1566_v12 = vadd.f32 %v1565_v11, %v6993_v51  ;;  %v1454_v42 = vpop.f32.mrf.mxu0 }
 0x345   :  { %v1567_v23 = vpop.f32.mrf.mxu1  ;;  %v1642_v5 = vmax.f32 %v1453_v45, 0.0  ;;  %v5362_v31 = vadd.f32 %v1454_v42, %v4642_v6  ;;  %v7007_v6 = vld [vmem:[#allocation86_spill] sm:$0xff] }
 0x346   :  { %v1644_v2 = vmax.f32 %v1566_v12, 0.0  ;;  %v5321_v15 = vpop.f32.mrf.mxu0  ;;  %v5365_v41 = vadd.f32 %v1567_v23, %v4646_v9  ;;  %v7008_v9 = vld [vmem:[#allocation89_spill] sm:$0xff] }
 0x347   :  { %6994 = vst [vmem:[#allocation99_spill] sm:$0xff] %v5321_v15  ;;  %v5323_v54 = vpop.f32.mrf.mxu1  ;;  %v5325_v35 = vpack.c.bf16 %v1642_v5, %v1638_v32  ;;  %7000 = vst [vmem:[#allocation105_spill] sm:$0xff] %v5362_v31  ;;  %v7023_v31 = vld [vmem:[#allocation28_spill] sm:$0xff]  ;;  %v7031_v15 = vld [vmem:[#allocation23_spill] sm:$0xff] }
 0x348   :  { %6995 = vst [vmem:[#allocation100_spill] sm:$0xff] %v5323_v54  ;;  %v5327_v14 = vpack.c.bf16 %v1644_v2, %v1640_v30  ;;  %v1460_v52 = vpop.f32.mrf.mxu0  ;;  %7001 = vst [vmem:[#allocation106_spill] sm:$0xff] %v5365_v41 }
 0x349   :  { %6996 = vst [vmem:[#allocation101_spill] sm:$0xff] %v5325_v35  ;;  %v1573_v60 = vpop.f32.mrf.mxu1  ;;  %v5368_v7 = vadd.f32 %v1460_v52, %v4662_v17  ;;  %v7006_v35 = vld [vmem:[#allocation85_spill] sm:$0xff]  ;;  %v7009_v17 = vld [vmem:[#allocation90_spill] sm:$0xff] }
 0x34a   :  { %6997 = vst [vmem:[#allocation102_spill] sm:$0xff] %v5327_v14  ;;  %v5329_v29 = vpop.f32.mrf.mxu0  ;;  %v5371_v19 = vadd.f32 %v1573_v60, %v4666_v18  ;;  %v7010_v18 = vld [vmem:[#allocation93_spill] sm:$0xff] }
 0x34b   :  { %v5331_v63 = vpop.f32.mrf.mxu1  ;;  %7002 = vst [vmem:[#allocation107_spill] sm:$0xff] %v5368_v7  ;;  %v7026_v7 = vld [vmem:[#allocation6_spill] sm:$0xff] }
 0x34c   :  { %v1464_v0 = vpop.f32.mrf.mxu0  ;;  %7003 = vst [vmem:[#allocation108_spill] sm:$0xff] %v5371_v19 }
 0x34d   :  { %v1577_v10 = vpop.f32.mrf.mxu1  ;;  %v5374_v14 = vadd.f32 %v1464_v0, %v4678_v20  ;;  %v7011_v20 = vld [vmem:[#allocation94_spill] sm:$0xff] }
 0x34e   :  { %v5333_v46 = vpop.f32.mrf.mxu0  ;;  %v5377_v8 = vadd.f32 %v1577_v10, %v7004_v62  ;;  %v7012_v62 = vld [vmem:[#allocation11_spill] sm:$0xff] }
 0x34f   :  { %v5335_v50 = vpop.f32.mrf.mxu1 }
 0x350   :  { %v1470_v11 = vpop.f32.mrf.mxu0  ;;  %7005 = vst [vmem:[#allocation109_spill] sm:$0xff] %v5377_v8 }
 0x351   :  { %v1583_v45 = vpop.f32.mrf.mxu1  ;;  %v5380_v42 = vadd.f32 %v1470_v11, %v7006_v35  ;;  %v7013_v11 = vld [vmem:[#allocation12_spill] sm:$0xff] }
 0x352   :  { %v5337_v12 = vpop.f32.mrf.mxu0  ;;  %v5383_v23 = vadd.f32 %v1583_v45, %v7007_v6 }
 0x353   :  { %v5339_v32 = vpop.f32.mrf.mxu1 }
 0x354   :  { %v1474_v30 = vpop.f32.mrf.mxu0 }
 0x355   :  { %v1587_v5 = vpop.f32.mrf.mxu1  ;;  %v5386_v52 = vadd.f32 %v1474_v30, %v7008_v9  ;;  %v7015_v9 = vld [vmem:[#allocation15_spill] sm:$0xff] }
 0x356   :  { %v5341_v2 = vpop.f32.mrf.mxu0  ;;  %v5389_v60 = vadd.f32 %v1587_v5, %v7009_v17  ;;  %v7016_v17 = vld [vmem:[#allocation16_spill] sm:$0xff] }
 0x357   :  { %v5343_v51 = vpop.f32.mrf.mxu1 }
 0x358   :  { %v1480_v59 = vpop.f32.mrf.mxu0 }
 0x359   :  { %v1593_v25 = vpop.f32.mrf.mxu1  ;;  %v5392_v0 = vadd.f32 %v1480_v59, %v7010_v18  ;;  %v7017_v18 = vld [vmem:[#allocation10_spill] sm:$0xff] }
 0x35a   :  { %v5345_v21 = vpop.f32.mrf.mxu0  ;;  %v5395_v10 = vadd.f32 %v1593_v25, %v7011_v20  ;;  %v7018_v20 = vld [vmem:[#allocation17_spill] sm:$0xff] }
 0x35b   :  { %v5347_v37 = vpop.f32.mrf.mxu1 }
 0x35c   :  { %v1484_v16 = vpop.f32.mrf.mxu0 }
 0x35d   :  { %v1597_v33 = vpop.f32.mrf.mxu1  ;;  %v5398_v56 = vadd.f32 %v1484_v16, %v7012_v62  ;;  %v7019_v62 = vld [vmem:[#allocation18_spill] sm:$0xff] }
 0x35e   :  { %v5349_v55 = vpop.f32.mrf.mxu0  ;;  %v5401_v35 = vadd.f32 %v1597_v33, %v7013_v11  ;;  %v7020_v11 = vld [vmem:[#allocation24_spill] sm:$0xff] }
 0x35f   :  { %v5351_v53 = vpop.f32.mrf.mxu1 }
 0x360   :  { %v1490_v28 = vpop.f32.mrf.mxu0 }
 0x361   :  { %v1603_v13 = vpop.f32.mrf.mxu1  ;;  %v5404_v30 = vadd.f32 %v1490_v28, %v7014_v38 }
 0x362   :  { %v1492_v47 = vpop.f32.mrf.mxu0  ;;  %v5407_v5 = vadd.f32 %v1603_v13, %v7015_v9  ;;  %v7022_v13 = vld [vmem:[#allocation27_spill] sm:$0xff] }
 0x363   :  { %v1605_v61 = vpop.f32.mrf.mxu1  ;;  %v5410_v59 = vadd.f32 %v1492_v47, %v7016_v17  ;;  %v7024_v17 = vld [vmem:[#allocation5_spill] sm:$0xff] }
 0x364   :  { %v1494_v4 = vpop.f32.mrf.mxu0  ;;  %v5413_v25 = vadd.f32 %v1605_v61, %v7017_v18  ;;  %v7025_v61 = vld [vmem:[#allocation29_spill] sm:$0xff] }
 0x365   :  { %v1607_v24 = vpop.f32.mrf.mxu1  ;;  %v5416_v16 = vadd.f32 %v1494_v4, %v7018_v20  ;;  %v7027_v20 = vld [vmem:[#allocation21_spill] sm:$0xff] }
 0x366   :  { %v1498_v27 = vpop.f32.mrf.mxu0  ;;  %v5419_v33 = vadd.f32 %v1607_v24, %v7019_v62  ;;  %v7028_v24 = vld [vmem:[#allocation25_spill] sm:$0xff] }
 0x367   :  { %v1611_v40 = vpop.f32.mrf.mxu1 }
 0x368   :  { %v1500_v26 = vpop.f32.mrf.mxu0 }
 0x369   :  { %v1613_v22 = vpop.f32.mrf.mxu1  ;;  %v1501_v4 = vadd.f32 %v1500_v26, %v7026_v7 }
 0x36a   :  { %v1502_v44 = vpop.f32.mrf.mxu0  ;;  %v1614_v36 = vadd.f32 %v1613_v22, %v7027_v20 }
 0x36b   :  { %v1615_v1 = vpop.f32.mrf.mxu1 }
 0x36c   :  { %v1504_v39 = vpop.f32.mrf.mxu0 }
 0x36d   :  { %v1617_v3 = vpop.f32.mrf.mxu1  ;;  %v1505_v57 = vadd.f32 %v1504_v39, %v7020_v11 }
 0x36e   :  { %v1508_v58 = vpop.f32.mrf.mxu0  ;;  %v1618_v28 = vadd.f32 %v1617_v3, %v7021_v43  ;;  %v7030_v43 = vld [vmem:[#allocation22_spill] sm:$0xff] }
 0x36f   :  { %v1621_v48 = vpop.f32.mrf.mxu1  ;;  %v1509_v62 = vadd.f32 %v1508_v58, %v7028_v24  ;;  %v1503_v54 = vadd.f32 %v1502_v44, %v7030_v43  ;;  %v7033_v24 = vld [vmem:[#allocation19_spill] sm:$0xff]  ;;  %v1679_v43 = vmax.f32 %v1501_v4, 0.0  ;;  %v1669_v4 = vmax.f32 %v5401_v35, 0.0 }
 0x370   :  { %v1510_v45 = vpop.f32.mrf.mxu0  ;;  %v1622_v39 = vadd.f32 %v1621_v48, %v7029_v34  ;;  %v1499_v48 = vadd.f32 %v1498_v27, %v7033_v24  ;;  %v7034_v34 = vld [vmem:[#allocation20_spill] sm:$0xff]  ;;  %v1663_v35 = vmax.f32 %v5392_v0, 0.0 }
 0x371   :  { %v1623_v6 = vpop.f32.mrf.mxu1  ;;  %v1511_v9 = vadd.f32 %v1510_v45, %v7022_v13  ;;  %v1616_v45 = vadd.f32 %v1615_v1, %v7031_v15  ;;  %v7032_v13 = vld [vmem:[#allocation30_spill] sm:$0xff]  ;;  %v1686_v8 = vmax.f32 %v1509_v62, 0.0  ;;  %v1681_v1 = vmax.f32 %v1614_v36, 0.0  ;;  %v7036_v62 = vld [vmem:[#allocation13_spill] sm:$0xff] }
 0x372   :  { %v1512_v38 = vpop.f32.mrf.mxu0  ;;  %v1624_v47 = vadd.f32 %v1623_v6, %v7023_v31  ;;  %v1612_v31 = vadd.f32 %v1611_v40, %v7034_v34  ;;  %v1688_v44 = vmax.f32 %v1622_v39, 0.0  ;;  %v1602_v36 = vadd.f32 %v5351_v53, %v7036_v62 }
 0x373   :  { %v1625_v41 = vpop.f32.mrf.mxu1  ;;  %v1513_v19 = vadd.f32 %v1512_v38, %v7024_v17  ;;  %v1683_v17 = vmax.f32 %v1505_v57, 0.0  ;;  %v1687_v7 = vmax.f32 %v1511_v9, 0.0  ;;  %v1677_v9 = vmax.f32 %v5419_v33, 0.0 }
 0x374   :  { %v1626_v18 = vadd.f32 %v1625_v41, %v7025_v61  ;;  %v1514_v11 = vpop.f32.mrf.mxu0  ;;  %v1685_v41 = vmax.f32 %v1618_v28, 0.0  ;;  %v1689_v22 = vmax.f32 %v1624_v47, 0.0  ;;  %v7035_v47 = vld [vmem:[#allocation9_spill] sm:$0xff]  ;;  %v1676_v53 = vmax.f32 %v5413_v25, 0.0 }
 0x375   :  { %v1627_v3 = vpop.f32.mrf.mxu1  ;;  %v1515_v6 = vadd.f32 %v1514_v11, %v7032_v13  ;;  %v1690_v61 = vmax.f32 %v1513_v19, 0.0  ;;  %v1682_v13 = vmax.f32 %v1503_v54, 0.0  ;;  %v1719_v19 = vpack.c.bf16 %v1683_v17, %v1679_v43 }
 0x376   :  { %v1628_v38 = vadd.f32 %v1627_v3, %v4854_v49  ;;  %v1692_v26 = vmax.f32 %v1626_v18, 0.0  ;;  %v1684_v3 = vmax.f32 %v1616_v45, 0.0  ;;  %v1675_v18 = vmax.f32 %v5416_v16, 0.0  ;;  %v7038_v16 = vld [vmem:[#allocation96_spill] sm:$0xff]  ;;  %v7039_v45 = vld [vmem:[#allocation91_spill] sm:$0xff] }
 0x377   :  { %v1691_v20 = vmax.f32 %v1515_v6, 0.0  ;;  %v1722_v57 = vpack.c.bf16 %v1690_v61, %v1686_v8  ;;  %v1721_v27 = vpack.c.bf16 %v1685_v41, %v1681_v1  ;;  %v1489_v40 = vadd.f32 %v5349_v55, %v7035_v47  ;;  %v7037_v8 = vld [vmem:[#allocation95_spill] sm:$0xff] }
 0x378   :  { %v1693_v58 = vmax.f32 %v1628_v38, 0.0  ;;  %v1724_v28 = vpack.c.bf16 %v1692_v26, %v1688_v44  ;;  %v1483_v54 = vadd.f32 %v5345_v21, %v7037_v8  ;;  %v1596_v33 = vadd.f32 %v5347_v37, %v7038_v16 }
 0x379   :  { %v1723_v15 = vpack.c.bf16 %v1691_v20, %v1687_v7  ;;  %v1678_v20 = vmax.f32 %v1499_v48, 0.0  ;;  %v1680_v7 = vmax.f32 %v1612_v31, 0.0  ;;  %v1673_v17 = vmax.f32 %v5407_v5, 0.0 }
 0x37a   :  { %v1725_v11 = vpack.c.bf16 %v1693_v58, %v1689_v22  ;;  %v1674_v43 = vmax.f32 %v5410_v59, 0.0  ;;  %v1667_v61 = vmax.f32 %v5398_v56, 0.0  ;;  %v1479_v37 = vadd.f32 %v5341_v2, %v7039_v45  ;;  %v7041_v59 = vld [vmem:[#allocation87_spill] sm:$0xff] }
 0x37b   :  { %1726 = vmatprep.subr.bf16.mxu0 %v1723_v15  ;;  %v1671_v15 = vmax.f32 %v5404_v30, 0.0  ;;  %v1718_v55 = vpack.c.bf16 %v1682_v13, %v1678_v20  ;;  %v1720_v31 = vpack.c.bf16 %v1684_v3, %v1680_v7  ;;  %v1717_v39 = vpack.c.bf16 %v1677_v9, %v1673_v17  ;;  %v7040_v30 = vld [vmem:[#allocation92_spill] sm:$0xff] }
 0x37c   :  { %1799 = vmatprep.subr.bf16.mxu1 %v1725_v11  ;;  %1727 = vmatpush1.bf16.msra.mxu0 %v1722_v57  ;;  %v1592_v5 = vadd.f32 %v5343_v51, %v7040_v30  ;;  %v1670_v6 = vmax.f32 %v1489_v40, 0.0  ;;  %v1672_v38 = vmax.f32 %v1602_v36, 0.0  ;;  %v1473_v25 = vadd.f32 %v5337_v12, %v7041_v59  ;;  %v7042_v13 = vld [vmem:[#allocation88_spill] sm:$0xff]  ;;  %v7043_v12 = vld [vmem:[#allocation83_spill] sm:$0xff]  ;;  %v7047_v36 = vld [vmem:[#allocation109_spill] sm:$0xff] }
 0x37d   :  { %1800 = vmatpush1.bf16.msra.mxu1 %v1724_v28  ;;  %1728 = vmatprep.subr.bf16.mxu0 %v1719_v19  ;;  %v1715_v21 = vpack.c.bf16 %v1675_v18, %v1671_v15  ;;  %v1586_v56 = vadd.f32 %v5339_v32, %v7042_v13  ;;  %v1665_v41 = vmax.f32 %v5395_v10, 0.0  ;;  %v1666_v2 = vmax.f32 %v1483_v54, 0.0  ;;  %v7044_v32 = vld [vmem:[#allocation84_spill] sm:$0xff]  ;;  %v7045_v57 = vld [vmem:[#allocation79_spill] sm:$0xff] }
 0x37e   :  { %1801 = vmatprep.subr.bf16.mxu1 %v1721_v27  ;;  %v1668_v26 = vmax.f32 %v1596_v33, 0.0  ;;  %v1714_v22 = vpack.c.bf16 %v1674_v43, %v1670_v6  ;;  %v1716_v51 = vpack.c.bf16 %v1676_v53, %v1672_v38  ;;  %v1659_v58 = vmax.f32 %v5386_v52, 0.0  ;;  %v7046_v18 = vld [vmem:[#allocation80_spill] sm:$0xff]  ;;  %v7049_v33 = vld [vmem:[#allocation99_spill] sm:$0xff] }
 0x37f   :  { %v1661_v48 = vmax.f32 %v5389_v60, 0.0  ;;  %v1711_v44 = vpack.c.bf16 %v1667_v61, %v1663_v35  ;;  %v1713_v1 = vpack.c.bf16 %v1669_v4, %v1665_v41  ;;  %v1469_v11 = vadd.f32 %v5333_v46, %v7043_v12  ;;  %v7051_v17 = vld [vmem:[#allocation100_spill] sm:$0xff]  ;;  %v7052_v53 = vld [vmem:[#allocation71_spill] sm:$0xff]  ;;  %v7055_v4 = vld [vmem:[#allocation46_spill] sm:$0xff] }
 0x380   :  { %1729 = vmatpush1.bf16.msra.mxu0 %v1718_v55  ;;  %v1582_v0 = vadd.f32 %v5335_v50, %v7044_v32  ;;  %v1662_v3 = vmax.f32 %v1479_v37, 0.0  ;;  %v1664_v10 = vmax.f32 %v1592_v5, 0.0  ;;  %v1463_v28 = vadd.f32 %v5329_v29, %v7045_v57  ;;  %v7048_v29 = vld [vmem:[#allocation75_spill] sm:$0xff]  ;;  %v7053_v55 = vld [vmem:[#allocation45_spill] sm:$0xff]  ;;  %v7054_v61 = vld [vmem:[#allocation72_spill] sm:$0xff] }
 0x381   :  { %1802 = vmatpush1.bf16.msra.mxu1 %v1720_v31  ;;  %1730 = vmatprep.subr.bf16.mxu0 %v1715_v21  ;;  %v1576_v52 = vadd.f32 %v5331_v63, %v7046_v18  ;;  %v1655_v60 = vmax.f32 %v5380_v42, 0.0  ;;  %v1657_v9 = vmax.f32 %v5383_v23, 0.0  ;;  %v1658_v46 = vmax.f32 %v1473_v25, 0.0  ;;  %v7050_v63 = vld [vmem:[#allocation76_spill] sm:$0xff]  ;;  %v7056_v21 = vld [vmem:[#allocation107_spill] sm:$0xff]  ;;  %v7058_v35 = vld [vmem:[#allocation105_spill] sm:$0xff] }
 0x382   :  { %1803 = vmatprep.subr.bf16.mxu1 %v1717_v39  ;;  %v1660_v19 = vmax.f32 %v1586_v56, 0.0  ;;  %v1710_v27 = vpack.c.bf16 %v1666_v2, %v1662_v3  ;;  %v1712_v50 = vpack.c.bf16 %v1668_v26, %v1664_v10  ;;  %v1651_v40 = vmax.f32 %v5374_v14, 0.0  ;;  %v7057_v37 = vld [vmem:[#allocation108_spill] sm:$0xff]  ;;  %v7059_v2 = vld [vmem:[#allocation106_spill] sm:$0xff] }
 0x383   :  { %v1653_v20 = vmax.f32 %v7047_v36, 0.0  ;;  %v1707_v7 = vpack.c.bf16 %v1659_v58, %v1655_v60  ;;  %v1709_v54 = vpack.c.bf16 %v1661_v48, %v1657_v9  ;;  %v1459_v15 = vadd.f32 %v7049_v33, %v7048_v29  ;;  %v7063_v3 = vld [vmem:[#allocation40_spill] sm:$0xff]  ;;  %v7081_v29 = vld [vmem:[#allocation35_spill] sm:$0xff] }
 0x384   :  { %1731 = vmatpush1.bf16.msra.mxu0 %v1714_v22  ;;  %v1572_v42 = vadd.f32 %v7051_v17, %v7050_v63  ;;  %v1654_v43 = vmax.f32 %v1469_v11, 0.0  ;;  %v1656_v23 = vmax.f32 %v1582_v0, 0.0  ;;  %v1451_v31 = vadd.f32 %v7053_v55, %v7052_v53  ;;  %v7062_v0 = vld [vmem:[#allocation68_spill] sm:$0xff]  ;;  %v7067_v17 = vld [vmem:[#allocation102_spill] sm:$0xff] }
 0x385   :  { %1804 = vmatpush1.bf16.msra.mxu1 %v1716_v51  ;;  %1732 = vmatprep.subr.bf16.mxu0 %v1711_v44  ;;  %v1564_v14 = vadd.f32 %v7055_v4, %v7054_v61  ;;  %v1647_v39 = vmax.f32 %v7056_v21, 0.0  ;;  %v1649_v5 = vmax.f32 %v7057_v37, 0.0  ;;  %v1650_v6 = vmax.f32 %v1463_v28, 0.0  ;;  %v7060_v44 = vld [vmem:[#allocation67_spill] sm:$0xff]  ;;  %v7082_v57 = vld [vmem:[#allocation36_spill] sm:$0xff] }
 0x386   :  { %1805 = vmatprep.subr.bf16.mxu1 %v1713_v1  ;;  %v1652_v38 = vmax.f32 %v1576_v52, 0.0  ;;  %v1706_v25 = vpack.c.bf16 %v1658_v46, %v1654_v43  ;;  %v1708_v56 = vpack.c.bf16 %v1660_v19, %v1656_v23  ;;  %v1643_v41 = vmax.f32 %v7058_v35, 0.0  ;;  %v7061_v1 = vld [vmem:[#allocation39_spill] sm:$0xff]  ;;  %v7069_v43 = vld [vmem:[#allocation54_spill] sm:$0xff] }
 0x387   :  { %v1645_v26 = vmax.f32 %v7059_v2, 0.0  ;;  %v1703_v22 = vpack.c.bf16 %v1651_v40, %v1647_v39  ;;  %v1705_v51 = vpack.c.bf16 %v1653_v20, %v1649_v5  ;;  %v1646_v58 = vmax.f32 %v1459_v15, 0.0  ;;  %v7064_v46 = vld [vmem:[#allocation103_spill] sm:$0xff]  ;;  %v7066_v15 = vld [vmem:[#allocation101_spill] sm:$0xff] }
 0x388   :  { %1733 = vmatpush1.bf16.msra.mxu0 %v1710_v27  ;;  %v1648_v48 = vmax.f32 %v1572_v42, 0.0  ;;  %v1441_v11 = vadd.f32 %v7061_v1, %v7060_v44  ;;  %v1554_v10 = vadd.f32 %v7063_v3, %v7062_v0  ;;  %v1639_v28 = vmax.f32 %v1451_v31, 0.0  ;;  %v7065_v27 = vld [vmem:[#allocation104_spill] sm:$0xff]  ;;  %v7068_v42 = vld [vmem:[#allocation53_spill] sm:$0xff]  ;;  %v7070_v23 = vld [vmem:[#allocation31_spill] sm:$0xff] }
 0x389   :  { %1806 = vmatpush1.bf16.msra.mxu1 %v1712_v50  ;;  %1734 = vmatprep.subr.bf16.mxu0 %v1707_v7  ;;  %v1641_v52 = vmax.f32 %v1564_v14, 0.0  ;;  %v1702_v60 = vpack.c.bf16 %v1650_v6, %v1646_v58  ;;  %v1635_v19 = vmax.f32 %v7064_v46, 0.0  ;;  %v1637_v50 = vmax.f32 %v7065_v27, 0.0  ;;  %v7072_v31 = vld [vmem:[#allocation32_spill] sm:$0xff]  ;;  %v7073_v4 = vld [vmem:[#allocation7_spill] sm:$0xff]  ;;  %v7074_v14 = vld [vmem:[#allocation33_spill] sm:$0xff] }
 0x38a   :  { %1807 = vmatprep.subr.bf16.mxu1 %v1709_v54  ;;  %v1704_v9 = vpack.c.bf16 %v1652_v38, %v1648_v48  ;;  %v1699_v40 = vpack.c.bf16 %v1643_v41, %v1639_v28  ;;  %v1631_v20 = vmax.f32 %v1441_v11, 0.0  ;;  %v1633_v7 = vmax.f32 %v1554_v10, 0.0  ;;  %v7075_v27 = vld [vmem:[#allocation66_spill] sm:$0xff] }
 0x38b   :  { %v1701_v36 = vpack.c.bf16 %v1645_v26, %v1641_v52  ;;  %v7071_v55 = vmov 0  }
 0x38c   :  { %1735 = vmatpush1.bf16.msra.mxu0 %v1706_v25  ;;  %v1695_v54 = vpack.c.bf16 %v1635_v19, %v1631_v20  ;;  %v1697_v33 = vpack.c.bf16 %v1637_v50, %v1633_v7 }
 0x38d   :  { %1808 = vmatpush1.bf16.msra.mxu1 %v1708_v56  ;;  %1736 = vmatprep.subr.bf16.mxu0 %v1703_v22 }
 0x38e   :  { %1809 = vmatprep.subr.bf16.mxu1 %v1705_v51 }
 0x390   :  { %1737 = vmatpush1.bf16.msra.mxu0 %v1702_v60 }
 0x391   :  { %1810 = vmatpush1.bf16.msra.mxu1 %v1704_v9  ;;  %1738 = vmatprep.subr.bf16.mxu0 %v1699_v40 }
 0x392   :  { %1811 = vmatprep.subr.bf16.mxu1 %v1701_v36  ;;  %v7076_v36 = vld [vmem:[#allocation63_spill] sm:$0xff] }
 0x394   :  { %1739 = vmatpush1.bf16.msra.mxu0 %v7066_v15  ;;  %v7077_v15 = vld [vmem:[#allocation98_spill] sm:$0xff] }
 0x395   :  { %1812 = vmatpush1.bf16.msra.mxu1 %v7067_v17  ;;  %1740 = vmatprep.subr.bf16.mxu0 %v1695_v54 }
 0x396   :  { %1813 = vmatprep.subr.bf16.mxu1 %v1697_v33 }
 0x398   :  { %1741 = vmatpush1.bf16.msra.mxu0 %v7068_v42 }
 0x399   :  { %1814 = vmatpush1.bf16.msra.mxu1 %v7069_v43  ;;  %v7078_v43 = vld [vmem:[#allocation65_spill] sm:$0xff] }
 0x39b   :  { %1759 = vmatmul.mubr.bf16.vlgmr.msra.gmra.mxu0 %v7070_v23 }
 0x39c   :  { %1832 = vmatmul.mubr.bf16.vlgmr.msra.gmra.mxu1 %v7070_v23  ;;  %1768 = vmatprep.mubr.bf16.mxu0 %v7071_v55 }
 0x39d   :  { %1841 = vmatprep.mubr.bf16.mxu1 %v7071_v55 }
 0x3a3   :  { %1769 = vmatmul.mubr.bf16.gmra.mxu0 %v7072_v31 }
 0x3a4   :  { %1842 = vmatmul.mubr.bf16.gmra.mxu1 %v7072_v31  ;;  %1778 = vmatprep.mubr.bf16.mxu0 %v7071_v55 }
 0x3a5   :  { %1851 = vmatprep.mubr.bf16.mxu1 %v7071_v55 }
 0x3ab   :  { %1779 = vmatmul.mubr.bf16.gmra.mxu0 %v7073_v4 }
 0x3ac   :  { %1852 = vmatmul.mubr.bf16.gmra.mxu1 %v7073_v4  ;;  %1788 = vmatprep.mubr.bf16.mxu0 %v7071_v55 }
 0x3ad   :  { %1861 = vmatprep.mubr.bf16.mxu1 %v7071_v55 }
 0x3b3   :  { %1789 = vmatmul.mubr.bf16.gmra.mxu0 %v7074_v14 }
 0x3b4   :  { %1862 = vmatmul.mubr.bf16.gmra.mxu1 %v7074_v14  ;;  %1952 = vmatprep.mubr.bf16.mxu0 %v7071_v55 }
 0x3b5   :  { %1993 = vmatprep.mubr.bf16.mxu1 %v7071_v55 }
 0x45b   :  { %v5515_v21 = vpop.f32.mrf.mxu0 }
 0x45c   :  { %v5517_v39 = vpop.f32.mrf.mxu1 }
 0x45d   :  { %v1762_v37 = vpop.f32.mrf.mxu0 }
 0x45e   :  { %v1835_v5 = vpop.f32.mrf.mxu1  ;;  %v5528_v50 = vadd.f32 %v1762_v37, %v7075_v27  ;;  %v7079_v37 = vld [vmem:[#allocation97_spill] sm:$0xff] }
 0x45f   :  { %v5519_v6 = vpop.f32.mrf.mxu0  ;;  %v5531_v40 = vadd.f32 %v1835_v5, %v7075_v27 }
 0x460   :  { %v5521_v38 = vpop.f32.mrf.mxu1 }
 0x461   :  { %v1766_v25 = vpop.f32.mrf.mxu0 }
 0x462   :  { %v1839_v56 = vpop.f32.mrf.mxu1  ;;  %v5534_v20 = vadd.f32 %v1766_v25, %v7076_v36 }
 0x463   :  { %v5523_v35 = vpop.f32.mrf.mxu0  ;;  %v5537_v7 = vadd.f32 %v1839_v56, %v7076_v36 }
 0x464   :  { %v5525_v41 = vpop.f32.mrf.mxu1 }
 0x465   :  { %v1772_v2 = vpop.f32.mrf.mxu0 }
 0x466   :  { %v1845_v26 = vpop.f32.mrf.mxu1  ;;  %v5540_v17 = vadd.f32 %v1772_v2, %v7077_v15 }
 0x467   :  { %v1774_v22 = vpop.f32.mrf.mxu0  ;;  %v5543_v42 = vadd.f32 %v1845_v26, %v7077_v15  ;;  %v7080_v26 = vld [vmem:[#allocation34_spill] sm:$0xff] }
 0x468   :  { %v1847_v51 = vpop.f32.mrf.mxu1  ;;  %v5546_v23 = vadd.f32 %v1774_v22, %v7078_v43 }
 0x469   :  { %v1776_v58 = vpop.f32.mrf.mxu0  ;;  %v5549_v31 = vadd.f32 %v1847_v51, %v7078_v43 }
 0x46a   :  { %v1849_v48 = vpop.f32.mrf.mxu1  ;;  %v5552_v4 = vadd.f32 %v1776_v58, %v7078_v43 }
 0x46b   :  { %v1780_v1 = vpop.f32.mrf.mxu0  ;;  %v5555_v14 = vadd.f32 %v1849_v48, %v7078_v43 }
 0x46c   :  { %v1853_v11 = vpop.f32.mrf.mxu1 }
 0x46d   :  { %v1782_v3 = vpop.f32.mrf.mxu0 }
 0x46e   :  { %v1855_v10 = vpop.f32.mrf.mxu1  ;;  %v1783_v58 = vadd.f32 %v1782_v3, %v7082_v57 }
 0x46f   :  { %v1784_v28 = vpop.f32.mrf.mxu0  ;;  %v1856_v32 = vadd.f32 %v1855_v10, %v7082_v57 }
 0x470   :  { %v1857_v52 = vpop.f32.mrf.mxu1  ;;  %v1785_v12 = vadd.f32 %v1784_v28, %v7079_v37  ;;  %v1889_v8 = vmax.f32 %v1783_v58, 0.0 }
 0x471   :  { %v1786_v60 = vpop.f32.mrf.mxu0 }
 0x472   :  { %v1859_v9 = vpop.f32.mrf.mxu1  ;;  %v1787_v5 = vadd.f32 %v1786_v60, %v7079_v37  ;;  %v1892_v62 = vmax.f32 %v1785_v12, 0.0  ;;  %v1881_v12 = vmax.f32 %v5540_v17, 0.0  ;;  %v1834_v17 = vadd.f32 %v5517_v39, %v7075_v27  ;;  %v3753_v39 = vld [vmem:[%s6550_s0 + $0xe8] sm:$0x11] }
 0x473   :  { %v1790_v46 = vpop.f32.mrf.mxu0  ;;  %v1860_v25 = vadd.f32 %v1859_v9, %v7079_v37 }
 0x474   :  { %v1863_v19 = vpop.f32.mrf.mxu1  ;;  %v1791_v48 = vadd.f32 %v1790_v46, %v7080_v26  ;;  %v1893_v13 = vmax.f32 %v1787_v5, 0.0 }
 0x475   :  { %v1792_v54 = vpop.f32.mrf.mxu0  ;;  %v1864_v60 = vadd.f32 %v1863_v19, %v7080_v26  ;;  %v1781_v19 = vadd.f32 %v1780_v1, %v7082_v57 }
 0x476   :  { %v1865_v33 = vpop.f32.mrf.mxu1  ;;  %v1793_v63 = vadd.f32 %v1792_v54, %v7080_v26  ;;  %v1858_v54 = vadd.f32 %v1857_v52, %v7079_v37  ;;  %v1896_v16 = vmax.f32 %v1791_v48, 0.0  ;;  %v1891_v52 = vmax.f32 %v1856_v32, 0.0 }
 0x477   :  { %v1794_v56 = vpop.f32.mrf.mxu0  ;;  %v1866_v22 = vadd.f32 %v1865_v33, %v7080_v26  ;;  %v1854_v26 = vadd.f32 %v1853_v11, %v7082_v57  ;;  %v1898_v28 = vmax.f32 %v1864_v60, 0.0  ;;  %v1771_v11 = vadd.f32 %v5523_v35, %v7077_v15  ;;  %v7137_v57 = vld [vmem:[#allocation82_spill] sm:$0xff] }
 0x478   :  { %v1867_v2 = vpop.f32.mrf.mxu1  ;;  %v1795_v18 = vadd.f32 %v1794_v56, %v7081_v29  ;;  %v1897_v30 = vmax.f32 %v1793_v63, 0.0  ;;  %v1887_v63 = vmax.f32 %v5555_v14, 0.0  ;;  %v1844_v32 = vadd.f32 %v5525_v41, %v7077_v15 }
 0x479   :  { %v1868_v51 = vadd.f32 %v1867_v2, %v7081_v29  ;;  %v1796_v43 = vpop.f32.mrf.mxu0  ;;  %v1895_v2 = vmax.f32 %v1860_v25, 0.0  ;;  %v1899_v10 = vmax.f32 %v1866_v22, 0.0  ;;  %v1913_v22 = vpack.c.bf16 %v1893_v13, %v1889_v8 }
 0x47a   :  { %v1869_v9 = vpop.f32.mrf.mxu1  ;;  %v1797_v33 = vadd.f32 %v1796_v43, %v7081_v29  ;;  %v1900_v59 = vmax.f32 %v1795_v18, 0.0  ;;  %v1885_v18 = vmax.f32 %v5552_v4, 0.0  ;;  %v1883_v8 = vmax.f32 %v5543_v42, 0.0 }
 0x47b   :  { %v1870_v56 = vadd.f32 %v1869_v9, %v7081_v29  ;;  %v1902_v3 = vmax.f32 %v1868_v51, 0.0  ;;  %v1894_v9 = vmax.f32 %v1858_v54, 0.0  ;;  %v1915_v1 = vpack.c.bf16 %v1895_v2, %v1891_v52  ;;  %v3906_v52 = vld [vmem:[%s6550_s0 + $0xcc] ss:$16 sps:$4 sm:$0xff]  }
 0x47c   :  { %v1901_v45 = vmax.f32 %v1797_v33, 0.0  ;;  %v1916_v5 = vpack.c.bf16 %v1900_v59, %v1896_v16  ;;  %v1765_v16 = vadd.f32 %v5519_v6, %v7076_v36  ;;  %v1838_v59 = vadd.f32 %v5521_v38, %v7076_v36 }
 0x47d   :  { %v1903_v46 = vmax.f32 %v1870_v56, 0.0  ;;  %v1918_v25 = vpack.c.bf16 %v1902_v3, %v1898_v28  ;;  %v1884_v13 = vmax.f32 %v5546_v23, 0.0  ;;  %v1886_v35 = vmax.f32 %v5549_v31, 0.0  ;;  %v3903_v28 = vld [vmem:[%s6550_s0 + $0xc4] ss:$16 sps:$4 sm:$0xff]  }
 0x47e   :  { %v1917_v37 = vpack.c.bf16 %v1901_v45, %v1897_v30  ;;  %v1888_v45 = vmax.f32 %v1781_v19, 0.0  ;;  %v1890_v30 = vmax.f32 %v1854_v26, 0.0  ;;  %v1877_v14 = vmax.f32 %v5534_v20, 0.0  ;;  %v3752_v20 = vld [vmem:[%s6550_s0 + $0xe0] sm:$0x11] }
 0x47f   :  { %v1919_v43 = vpack.c.bf16 %v1903_v46, %v1899_v10  ;;  %v1909_v6 = vpack.c.bf16 %v1885_v18, %v1881_v12  ;;  %v1911_v26 = vpack.c.bf16 %v1887_v63, %v1883_v8  ;;  %v1761_v38 = vadd.f32 %v5515_v21, %v7075_v27  ;;  %v3912_v18 = vld [vmem:[%s6550_s0 + $0xac] ss:$16 sps:$4 sm:$0xff]   ;;  %v3907_v63 = vld [vmem:[%s6550_s0 + $0xa0] ss:$16 sps:$4 sm:$0xff]   ;;  %v5683_v8 = vpop.permute.xlu0 %1242  ;;  %v7139_v27 = vld [vmem:[#allocation85_spill] sm:$0xff] }
 0x480   :  { %1928 = vmatprep.subr.bf16.mxu0 %v1917_v37  ;;  %v1912_v41 = vpack.c.bf16 %v1892_v62, %v1888_v45  ;;  %v1914_v4 = vpack.c.bf16 %v1894_v9, %v1890_v30  ;;  %v1879_v37 = vmax.f32 %v5537_v7, 0.0  ;;  %v1880_v42 = vmax.f32 %v1771_v11, 0.0  ;;  %v3901_v9 = vld [vmem:[%s6550_s0 + $0xc0] ss:$16 sps:$4 sm:$0xff]   ;;  %v7088_v30 = vld [vmem:[#allocation57_spill] sm:$0xff]  ;;  %7092 = vst [vmem:[#allocation19_spill] sm:$0xff] %v5683_v8 }
 0x481   :  { %1969 = vmatprep.subr.bf16.mxu1 %v1919_v43  ;;  %1929 = vmatpush1.bf16.msra.mxu0 %v1916_v5  ;;  %v1882_v51 = vmax.f32 %v1844_v32, 0.0  ;;  %v1873_v23 = vmax.f32 %v5528_v50, 0.0  ;;  %v1875_v62 = vmax.f32 %v5531_v40, 0.0  ;;  %v1876_v7 = vmax.f32 %v1765_v16, 0.0  ;;  %v7083_v43 = vld [vmem:[#allocation64_spill] sm:$0xff]  ;;  %v7085_v11 = vld [vmem:[#allocation62_spill] sm:$0xff] }
 0x482   :  { %1970 = vmatpush1.bf16.msra.mxu1 %v1918_v25  ;;  %1930 = vmatprep.subr.bf16.mxu0 %v1913_v22  ;;  %v1878_v31 = vmax.f32 %v1838_v59, 0.0  ;;  %v1908_v21 = vpack.c.bf16 %v1884_v13, %v1880_v42  ;;  %v1872_v54 = vmax.f32 %v1761_v38, 0.0  ;;  %v1874_v50 = vmax.f32 %v1834_v17, 0.0  ;;  %v3904_v5 = vld [vmem:[%s6550_s0 + $0xc8] ss:$16 sps:$4 sm:$0xff]   ;;  %v7087_v45 = vld [vmem:[#allocation60_spill] sm:$0xff] }
 0x483   :  { %1971 = vmatprep.subr.bf16.mxu1 %v1915_v1  ;;  %v1910_v58 = vpack.c.bf16 %v1886_v35, %v1882_v51  ;;  %v1905_v48 = vpack.c.bf16 %v1877_v14, %v1873_v23  ;;  %v1907_v60 = vpack.c.bf16 %v1879_v37, %v1875_v62  ;;  %v3763_v40 = vcombine.high %v3752_v20, %v3752_v20  ;;  %v3909_v25 = vld [vmem:[%s6550_s0 + $0xa4] ss:$16 sps:$4 sm:$0xff]   ;;  %v3910_v22 = vld [vmem:[%s6550_s0 + $0xa8] ss:$16 sps:$4 sm:$0xff]   ;;  %v7089_v16 = vld [vmem:[#allocation58_spill] sm:$0xff] }
 0x484   :  { %v3765_v33 = vcombine.high %v3753_v39, %v3753_v39  ;;  %v3762_v56 = vcombine.low %v3752_v20, %v3752_v20  ;;  %v3764_v2 = vcombine.low %v3753_v39, %v3753_v39  ;;  %v1904_v3 = vpack.c.bf16 %v1876_v7, %v1872_v54  ;;  %v7084_v1 = vld [vmem:[#allocation61_spill] sm:$0xff]  ;;  %v7086_v32 = vld [vmem:[#allocation59_spill] sm:$0xff]  ;;  %v7091_v12 = vld [vmem:[#allocation56_spill] sm:$0xff] }
 0x485   :  { %1931 = vmatpush1.bf16.msra.mxu0 %v1912_v41  ;;  %v1906_v10 = vpack.c.bf16 %v1878_v31, %v1874_v50  ;;  %v7090_v59 = vld [vmem:[#allocation55_spill] sm:$0xff]  ;;  %v7094_v14 = vld [vmem:[#allocation52_spill] sm:$0xff] }
 0x486   :  { %1972 = vmatpush1.bf16.msra.mxu1 %v1914_v4  ;;  %1932 = vmatprep.subr.bf16.mxu0 %v1909_v6  ;;  %v2132_v46 = vsel %vm629_vm1, %v3762_v56, 0  ;;  %v2138_v19 = vsel %vm629_vm1, %v3764_v2, 0  ;;  %v7093_v41 = vld [vmem:[#allocation51_spill] sm:$0xff]  ;;  %v5691_v37 = vadd.f32 %v7094_v14, %v5683_v8  ;;  %v7098_v31 = vld [vmem:[#allocation48_spill] sm:$0xff]  ;;  %v7103_v14 = vld [vmem:[#allocation41_spill] sm:$0xff] }
 0x487   :  { %1973 = vmatprep.subr.bf16.mxu1 %v1911_v26  ;;  %v5687_v4 = vadd.f32 %v7093_v41, %v5683_v8  ;;  %v7097_v20 = vld [vmem:[#allocation47_spill] sm:$0xff] }
 0x488   :  { %v5715_v7 = vadd.f32 %v7097_v20, %v5683_v8 }
 0x489   :  { %1933 = vmatpush1.bf16.msra.mxu0 %v1908_v21  ;;  %v5719_v21 = vadd.f32 %v7098_v31, %v5683_v8 }
 0x48a   :  { %1974 = vmatpush1.bf16.msra.mxu1 %v1910_v58  ;;  %1934 = vmatprep.subr.bf16.mxu0 %v1905_v48 }
 0x48b   :  { %1975 = vmatprep.subr.bf16.mxu1 %v1907_v60 }
 0x48d   :  { %1935 = vmatpush1.bf16.msra.mxu0 %v1904_v3 }
 0x48e   :  { %1976 = vmatpush1.bf16.msra.mxu1 %v1906_v10  ;;  %3766 = vmatprep.subr.msk.bf16.mxu0 %vm629_vm1, %v3763_v40 }
 0x48f   :  { %3775 = vmatprep.subr.msk.bf16.mxu1 %vm629_vm1, %v3765_v33 }
 0x490   :  { %3742 = vmatmul.mubr.msk.bf16.vlgmr.msra.gmra.mxu0 %vm1245_vm3, %v7083_v43 }
 0x491   :  { %3743 = vmatmul.mubr.msk.bf16.vlgmr.msra.gmra.mxu1 %vm1245_vm3, %v7083_v43  ;;  %2154 = vmatpush1.bf16.msra.mxu0 %v2132_v46 }
 0x492   :  { %2267 = vmatpush1.bf16.msra.mxu1 %v2138_v19  ;;  %2155 = vmatprep.subr.bf16.mxu0 %v3903_v28 }
 0x493   :  { %2268 = vmatprep.subr.bf16.mxu1 %v3906_v52  ;;  %2175 = vmatprep.mubr.bf16.mxu0 %v7071_v55 }
 0x494   :  { %2288 = vmatprep.mubr.bf16.mxu1 %v7071_v55 }
 0x495   :  { %2156 = vmatpush1.bf16.msra.mxu0 %v3901_v9 }
 0x496   :  { %2269 = vmatpush1.bf16.msra.mxu1 %v3904_v5  ;;  %2157 = vmatprep.subr.bf16.mxu0 %v3909_v25 }
 0x497   :  { %2270 = vmatprep.subr.bf16.mxu1 %v3912_v18 }
 0x499   :  { %2158 = vmatpush1.bf16.msra.mxu0 %v3907_v63 }
 0x49a   :  { %2271 = vmatpush1.bf16.msra.mxu1 %v3910_v22 }
 0x49c   :  { %3767 = vmatmul.mubr.msk.bf16.vlgmr.msra.gmra.mxu0 %vm604_vm2, %v7084_v1 }
 0x49d   :  { %3776 = vmatmul.mubr.msk.bf16.vlgmr.msra.gmra.mxu1 %vm604_vm2, %v7084_v1  ;;  %2185 = vmatprep.mubr.bf16.mxu0 %v7071_v55 }
 0x49e   :  { %2298 = vmatprep.mubr.bf16.mxu1 %v7071_v55 }
 0x4a4   :  { %3768 = vmatmul.mubr.msk.bf16.gmra.mxu0 %vm604_vm2, %v7085_v11 }
 0x4a5   :  { %3777 = vmatmul.mubr.msk.bf16.gmra.mxu1 %vm604_vm2, %v7085_v11  ;;  %2195 = vmatprep.mubr.bf16.mxu0 %v7071_v55  ;;  %v7101_v11 = vld [vmem:[#allocation37_spill] sm:$0xff] }
 0x4a6   :  { %2308 = vmatprep.mubr.bf16.mxu1 %v7071_v55 }
 0x4ac   :  { %3769 = vmatmul.mubr.msk.bf16.gmra.mxu0 %vm604_vm2, %v7086_v32 }
 0x4ad   :  { %3778 = vmatmul.mubr.msk.bf16.gmra.mxu1 %vm604_vm2, %v7086_v32  ;;  %2205 = vmatprep.mubr.bf16.mxu0 %v7071_v55 }
 0x4ae   :  { %2318 = vmatprep.mubr.bf16.mxu1 %v7071_v55 }
 0x4b4   :  { %3770 = vmatmul.mubr.msk.bf16.gmra.mxu0 %vm604_vm2, %v7087_v45 }
 0x4b5   :  { %3779 = vmatmul.mubr.msk.bf16.gmra.mxu1 %vm604_vm2, %v7087_v45  ;;  %2215 = vmatprep.mubr.bf16.mxu0 %v7071_v55  ;;  %v7102_v45 = vld [vmem:[#allocation38_spill] sm:$0xff] }
 0x4b6   :  { %2328 = vmatprep.mubr.bf16.mxu1 %v7071_v55 }
 0x4bc   :  { %3771 = vmatmul.mubr.msk.bf16.gmra.mxu0 %vm604_vm2, %v7088_v30 }
 0x4bd   :  { %3780 = vmatmul.mubr.msk.bf16.gmra.mxu1 %vm604_vm2, %v7088_v30  ;;  %2225 = vmatprep.mubr.bf16.mxu0 %v7071_v55 }
 0x4be   :  { %2338 = vmatprep.mubr.bf16.mxu1 %v7071_v55 }
 0x4c4   :  { %3772 = vmatmul.mubr.msk.bf16.gmra.mxu0 %vm604_vm2, %v7089_v16 }
 0x4c5   :  { %3781 = vmatmul.mubr.msk.bf16.gmra.mxu1 %vm604_vm2, %v7089_v16  ;;  %2235 = vmatprep.mubr.bf16.mxu0 %v7071_v55 }
 0x4c6   :  { %2348 = vmatprep.mubr.bf16.mxu1 %v7071_v55 }
 0x4cc   :  { %3773 = vmatmul.mubr.msk.bf16.gmra.mxu0 %vm604_vm2, %v7090_v59 }
 0x4cd   :  { %3782 = vmatmul.mubr.msk.bf16.gmra.mxu1 %vm604_vm2, %v7090_v59  ;;  %2245 = vmatprep.mubr.bf16.mxu0 %v7071_v55 }
 0x4ce   :  { %2358 = vmatprep.mubr.bf16.mxu1 %v7071_v55 }
 0x4d4   :  { %3774 = vmatmul.mubr.msk.bf16.gmra.mxu0 %vm604_vm2, %v7091_v12 }
 0x4d5   :  { %3783 = vmatmul.mubr.msk.bf16.gmra.mxu1 %vm604_vm2, %v7091_v12  ;;  %2497 = vmatprep.mubr.bf16.mxu0 %v7071_v55 }
 0x4d6   :  { %2570 = vmatprep.mubr.bf16.mxu1 %v7071_v55 }
 0x550   :  { %v1954_v13 = vpop.f32.mrf.mxu0 }
 0x551   :  { %v1995_v35 = vpop.f32.mrf.mxu1  ;;  %v5694_v6 = vadd.f32 %v1954_v13, %v5683_v8 }
 0x552   :  { %v5697_v26 = vadd.f32 %v1995_v35, %v5683_v8  ;;  %v1956_v38 = vpop.f32.mrf.mxu0 }
 0x553   :  { %v1997_v17 = vpop.f32.mrf.mxu1  ;;  %v5701_v42 = vmax.f32 %v5687_v4, %v5694_v6  ;;  %v5708_v23 = vadd.f32 %v1956_v38, %v5683_v8 }
 0x554   :  { %v5705_v51 = vmax.f32 %v5691_v37, %v5697_v26  ;;  %v5711_v62 = vadd.f32 %v1997_v17, %v5683_v8  ;;  %v1958_v58 = vpop.f32.mrf.mxu0  ;;  %v7104_v17 = vld [vmem:[#allocation42_spill] sm:$0xff] }
 0x555   :  { %7095 = vst [vmem:[#allocation20_spill] sm:$0xff] %v5701_v42  ;;  %v1999_v39 = vpop.f32.mrf.mxu1  ;;  %v2006_v48 = vsub.f32 %v5687_v4, %v5701_v42  ;;  %v2018_v60 = vsub.f32 %v5694_v6, %v5701_v42  ;;  %v5731_v40 = vmax.f32 %v5715_v7, %v5708_v23  ;;  %v7135_v42 = vld [vmem:[#allocation81_spill] sm:$0xff] }
 0x556   :  { %7096 = vst [vmem:[#allocation9_spill] sm:$0xff] %v5705_v51  ;;  %v2008_v54 = vsub.f32 %v5691_v37, %v5705_v51  ;;  %v2020_v50 = vsub.f32 %v5697_v26, %v5705_v51  ;;  %v5735_v33 = vmax.f32 %v5719_v21, %v5711_v62  ;;  %v1959_v56 = vpop.f32.mrf.mxu0 }
 0x557   :  { %7099 = vst [vmem:[#allocation109_spill] sm:$0xff] %v5731_v40  ;;  %v2000_v2 = vpop.f32.mrf.mxu1  ;;  %v2010_v3 = vmul.f32 1.442695, %v2006_v48  ;;  %v2022_v10 = vmul.f32 1.442695, %v2018_v60  ;;  %v2007_v28 = vsub.f32 %v5715_v7, %v5731_v40  ;;  %v2019_v52 = vsub.f32 %v5708_v23, %v5731_v40  ;;  %v7133_v40 = vld [vmem:[#allocation78_spill] sm:$0xff] }
 0x558   :  { %7100 = vst [vmem:[#allocation99_spill] sm:$0xff] %v5735_v33  ;;  %v2014_v46 = vmul.f32 1.442695, %v2008_v54  ;;  %v2026_v19 = vmul.f32 1.442695, %v2020_v50  ;;  %v2009_v43 = vsub.f32 %v5719_v21, %v5735_v33  ;;  %v2021_v9 = vsub.f32 %v5711_v62, %v5735_v33  ;;  %v7105_v50 = vld [vmem:[#allocation69_spill] sm:$0xff] }
 0x559   :  { %3929 = vpow2.f32 %v2010_v3  ;;  %v2012_v5 = vmul.f32 1.442695, %v2007_v28  ;;  %v2024_v25 = vmul.f32 1.442695, %v2019_v52  ;;  %v7106_v2 = vld [vmem:[#allocation70_spill] sm:$0xff] }
 0x55a   :  { %3931 = vpow2.f32 %v2022_v10  ;;  %v2016_v18 = vmul.f32 1.442695, %v2009_v43  ;;  %v2028_v63 = vmul.f32 1.442695, %v2021_v9 }
 0x55b   :  { %3933 = vpow2.f32 %v2014_v46 }
 0x55c   :  { %3935 = vpow2.f32 %v2026_v19  ;;  %v2177_v22 = vpop.f32.mrf.mxu0 }
 0x55d   :  { %v2290_v1 = vpop.f32.mrf.mxu1  ;;  %3937 = vpow2.f32 %v2012_v5  ;;  %v2178_v32 = vadd.f32 %v2177_v22, %v7101_v11  ;;  %v7110_v22 = vld [vmem:[#allocation44_spill] sm:$0xff]  ;;  %v7131_v11 = vld [vmem:[#allocation77_spill] sm:$0xff] }
 0x55e   :  { %3939 = vpow2.f32 %v2024_v25  ;;  %v2291_v30 = vadd.f32 %v2290_v1, %v7102_v45  ;;  %v2179_v16 = vpop.f32.mrf.mxu0 }
 0x55f   :  { %v2292_v59 = vpop.f32.mrf.mxu1  ;;  %3941 = vpow2.f32 %v2016_v18  ;;  %v2180_v12 = vadd.f32 %v2179_v16, %v7060_v44  ;;  %v2369_v31 = vmax.f32 %v2178_v32, 0.0  ;;  %v7109_v18 = vld [vmem:[#allocation43_spill] sm:$0xff] }
 0x560   :  { %3943 = vpow2.f32 %v2028_v63  ;;  %v2293_v13 = vadd.f32 %v2292_v59, %v7062_v0  ;;  %v2181_v35 = vpop.f32.mrf.mxu0  ;;  %v2371_v58 = vmax.f32 %v2291_v30, 0.0 }
 0x561   :  { %v2294_v41 = vpop.f32.mrf.mxu1  ;;  %v2182_v38 = vadd.f32 %v2181_v35, %v7103_v14  ;;  %v2370_v10 = vmax.f32 %v2180_v12, 0.0 }
 0x562   :  { %v2295_v20 = vadd.f32 %v2294_v41, %v7104_v17  ;;  %v2183_v39 = vpop.f32.mrf.mxu0  ;;  %v2372_v46 = vmax.f32 %v2293_v13, 0.0 }
 0x563   :  { %v2296_v48 = vpop.f32.mrf.mxu1  ;;  %v2373_v60 = vmax.f32 %v2182_v38, 0.0  ;;  %v2184_v56 = vadd.f32 %v2183_v39, %v7105_v50 }
 0x564   :  { %v2375_v54 = vmax.f32 %v2295_v20, 0.0  ;;  %v2297_v3 = vadd.f32 %v2296_v48, %v7106_v2  ;;  %v2187_v19 = vpop.f32.mrf.mxu0 }
 0x565   :  { %v2300_v28 = vpop.f32.mrf.mxu1  ;;  %v5753_v52 = vpack.c.bf16 %v2373_v60, %v2369_v31  ;;  %v2374_v9 = vmax.f32 %v2184_v56, 0.0  ;;  %v2188_v63 = vadd.f32 %v2187_v19, %v7109_v18 }
 0x566   :  { %v5755_v43 = vpack.c.bf16 %v2375_v54, %v2371_v58  ;;  %v2376_v5 = vmax.f32 %v2297_v3, 0.0  ;;  %v3930_v25 = vpop.eup %3929  ;;  %v2301_v1 = vadd.f32 %v2300_v28, %v7110_v22  ;;  %v2189_v32 = vpop.f32.mrf.mxu0  ;;  %v7115_v28 = vld [vmem:[#allocation49_spill] sm:$0xff] }
 0x567   :  { %7107 = vst [vmem:[#allocation100_spill] sm:$0xff] %v5753_v52  ;;  %v2302_v30 = vpop.f32.mrf.mxu1  ;;  %v3932_v16 = vpop.eup %3931  ;;  %v2034_v59 = vrot.slane %v3930_v25, 1  ;;  %v5759_v35 = vpack.c.bf16 %v2374_v9, %v2370_v10  ;;  %v2190_v20 = vadd.f32 %v2189_v32, %v7052_v53  ;;  %v2377_v54 = vmax.f32 %v2188_v63, 0.0 }
 0x568   :  { %7108 = vst [vmem:[#allocation45_spill] sm:$0xff] %v5755_v43  ;;  %v5761_v12 = vpack.c.bf16 %v2376_v5, %v2372_v46  ;;  %v3934_v13 = vpop.eup %3933  ;;  %v2050_v41 = vrot.slane %v3932_v16, 1  ;;  %v5763_v38 = vadd.f32 %v3932_v16, %v3930_v25  ;;  %v2191_v31 = vpop.f32.mrf.mxu0  ;;  %v2379_v56 = vmax.f32 %v2301_v1, 0.0  ;;  %v7140_v43 = vld [vmem:[#allocation86_spill] sm:$0xff] }
 0x569   :  { %7111 = vst [vmem:[#allocation46_spill] sm:$0xff] %v5759_v35  ;;  %v2304_v58 = vpop.f32.mrf.mxu1  ;;  %v3936_v39 = vpop.eup %3935  ;;  %v2042_v48 = vmul.f32 %v2034_v59, %v5687_v4  ;;  %v2036_v60 = vrot.slane %v3934_v13, 1  ;;  %v2192_v9 = vadd.f32 %v2191_v31, %v7115_v28  ;;  %v2303_v53 = vadd.f32 %v2302_v30, %v7054_v61  ;;  %v7116_v4 = vld [vmem:[#allocation50_spill] sm:$0xff] }
 0x56a   :  { %7112 = vst [vmem:[#allocation107_spill] sm:$0xff] %v5761_v12  ;;  %7113 = vst [vmem:[#allocation108_spill] sm:$0xff] %v5763_v38  ;;  %v3938_v3 = vpop.eup %3937  ;;  %v2058_v10 = vmul.f32 %v2050_v41, %v5694_v6  ;;  %v2052_v19 = vrot.slane %v3936_v39, 1  ;;  %v5768_v46 = vadd.f32 %v3936_v39, %v3934_v13  ;;  %v2193_v5 = vpop.f32.mrf.mxu0  ;;  %v2305_v59 = vadd.f32 %v2304_v58, %v7116_v4  ;;  %v7125_v4 = vld [vmem:[#allocation73_spill] sm:$0xff] }
 0x56b   :  { %v2306_v25 = vpop.f32.mrf.mxu1  ;;  %v3940_v16 = vpop.eup %3939  ;;  %v2044_v32 = vmul.f32 %v2036_v60, %v5691_v37  ;;  %v2035_v38 = vrot.slane %v3938_v3, 1  ;;  %v2381_v28 = vmax.f32 %v2192_v9, 0.0  ;;  %v7142_v12 = vld [vmem:[#allocation89_spill] sm:$0xff] }
 0x56c   :  { %7114 = vst [vmem:[#allocation105_spill] sm:$0xff] %v5768_v46  ;;  %v3942_v63 = vpop.eup %3941  ;;  %v5774_v1 = vadd.f32 %v2058_v10, %v2042_v48  ;;  %v2060_v6 = vmul.f32 %v2052_v19, %v5697_v26  ;;  %v2051_v41 = vrot.slane %v3940_v16, 1  ;;  %v5777_v13 = vadd.f32 %v3940_v16, %v3938_v3  ;;  %v5779_v39 = vpop.f32.mrf.mxu0 }
 0x56d   :  { %7119 = vst [vmem:[#allocation40_spill] sm:$0xff] %v5779_v39  ;;  %v5781_v31 = vpop.f32.mrf.mxu1  ;;  %v3944_v46 = vpop.eup %3943  ;;  %v2043_v37 = vmul.f32 %v2035_v38, %v5715_v7  ;;  %v2037_v60 = vrot.slane %v3942_v63, 1  ;;  %v2383_v30 = vmax.f32 %v2305_v59, 0.0  ;;  %v5790_v16 = vpack.c.bf16 %v2381_v28, %v2377_v54 }
 0x56e   :  { %7117 = vst [vmem:[#allocation106_spill] sm:$0xff] %v5774_v1  ;;  %7118 = vst [vmem:[#allocation39_spill] sm:$0xff] %v5777_v13  ;;  %v5784_v61 = vadd.f32 %v2060_v6, %v2044_v32  ;;  %v2059_v58 = vmul.f32 %v2051_v41, %v5708_v23  ;;  %v2053_v48 = vrot.slane %v3944_v46, 1  ;;  %v5787_v10 = vadd.f32 %v3944_v46, %v3942_v63  ;;  %v2199_v26 = vpop.f32.mrf.mxu0  ;;  %v7127_v32 = vld [vmem:[#allocation74_spill] sm:$0xff] }
 0x56f   :  { %7120 = vst [vmem:[#allocation103_spill] sm:$0xff] %v5781_v31  ;;  %v2312_v3 = vpop.f32.mrf.mxu1  ;;  %v2045_v19 = vmul.f32 %v2037_v60, %v5719_v21  ;;  %7123 = vst [vmem:[#allocation102_spill] sm:$0xff] %v5790_v16  ;;  %v5792_v13 = vpack.c.bf16 %v2383_v30, %v2379_v56  ;;  %v2194_v7 = vadd.f32 %v2193_v5, %v7125_v4  ;;  %v2378_v63 = vmax.f32 %v2190_v20, 0.0  ;;  %v7160_v31 = vld [vmem:[#allocation6_spill] sm:$0xff] }
 0x570   :  { %7121 = vst [vmem:[#allocation104_spill] sm:$0xff] %v5784_v61  ;;  %7122 = vst [vmem:[#allocation101_spill] sm:$0xff] %v5787_v10  ;;  %v5795_v38 = vadd.f32 %v2059_v58, %v2043_v37  ;;  %v2061_v9 = vmul.f32 %v2053_v48, %v5711_v62  ;;  %v2307_v59 = vadd.f32 %v2306_v25, %v7127_v32  ;;  %v5799_v23 = vpop.f32.mrf.mxu0  ;;  %v2380_v21 = vmax.f32 %v2303_v53, 0.0 }
 0x571   :  { %7124 = vst [vmem:[#allocation53_spill] sm:$0xff] %v5792_v13  ;;  %v5801_v46 = vpop.f32.mrf.mxu1  ;;  %v2382_v6 = vmax.f32 %v2194_v7, 0.0  ;;  %v5830_v33 = vadd.f32 %v2199_v26, %v7131_v11  ;;  %v5833_v51 = vadd.f32 %v2312_v3, %v7133_v40  ;;  %v7143_v11 = vld [vmem:[#allocation90_spill] sm:$0xff]  ;;  %v7144_v40 = vld [vmem:[#allocation93_spill] sm:$0xff] }
 0x572   :  { %7126 = vst [vmem:[#allocation54_spill] sm:$0xff] %v5795_v38  ;;  %v5803_v41 = vadd.f32 %v2061_v9, %v2045_v19  ;;  %v2384_v54 = vmax.f32 %v2307_v59, 0.0  ;;  %v2203_v56 = vpop.f32.mrf.mxu0  ;;  %v7148_v13 = vld [vmem:[#allocation14_spill] sm:$0xff] }
 0x573   :  { %v2316_v28 = vpop.f32.mrf.mxu1  ;;  %v5805_v60 = vpack.c.bf16 %v2382_v6, %v2378_v63  ;;  %7132 = vst [vmem:[#allocation33_spill] sm:$0xff] %v5830_v33  ;;  %7134 = vst [vmem:[#allocation64_spill] sm:$0xff] %v5833_v51  ;;  %v5836_v8 = vadd.f32 %v2203_v56, %v7135_v42  ;;  %v7145_v42 = vld [vmem:[#allocation94_spill] sm:$0xff]  ;;  %v7157_v51 = vld [vmem:[#allocation28_spill] sm:$0xff] }
 0x574   :  { %7128 = vst [vmem:[#allocation31_spill] sm:$0xff] %v5803_v41  ;;  %v5807_v5 = vpack.c.bf16 %v2384_v54, %v2380_v21  ;;  %v5809_v37 = vpop.f32.mrf.mxu0  ;;  %v5839_v29 = vadd.f32 %v2316_v28, %v7137_v57  ;;  %v7146_v57 = vld [vmem:[#allocation11_spill] sm:$0xff] }
 0x575   :  { %7129 = vst [vmem:[#allocation32_spill] sm:$0xff] %v5805_v60  ;;  %v5811_v62 = vpop.f32.mrf.mxu1  ;;  %7136 = vst [vmem:[#allocation61_spill] sm:$0xff] %v5836_v8 }
 0x576   :  { %7130 = vst [vmem:[#allocation7_spill] sm:$0xff] %v5807_v5  ;;  %v2209_v25 = vpop.f32.mrf.mxu0  ;;  %7138 = vst [vmem:[#allocation62_spill] sm:$0xff] %v5839_v29  ;;  %v7155_v5 = vld [vmem:[#allocation8_spill] sm:$0xff]  ;;  %v7163_v29 = vld [vmem:[#allocation26_spill] sm:$0xff] }
 0x577   :  { %v2322_v30 = vpop.f32.mrf.mxu1  ;;  %v5842_v55 = vadd.f32 %v2209_v25, %v7139_v27  ;;  %v7147_v25 = vld [vmem:[#allocation12_spill] sm:$0xff] }
 0x578   :  { %v5813_v58 = vpop.f32.mrf.mxu0  ;;  %v5845_v52 = vadd.f32 %v2322_v30, %v7140_v43 }
 0x579   :  { %v5815_v20 = vpop.f32.mrf.mxu1 }
 0x57a   :  { %v2213_v48 = vpop.f32.mrf.mxu0  ;;  %7141 = vst [vmem:[#allocation59_spill] sm:$0xff] %v5845_v52  ;;  %v7165_v52 = vld [vmem:[#allocation23_spill] sm:$0xff] }
 0x57b   :  { %v2326_v19 = vpop.f32.mrf.mxu1  ;;  %v5848_v26 = vadd.f32 %v2213_v48, %v7142_v12  ;;  %v7149_v12 = vld [vmem:[#allocation15_spill] sm:$0xff] }
 0x57c   :  { %v5817_v53 = vpop.f32.mrf.mxu0  ;;  %v5851_v3 = vadd.f32 %v2326_v19, %v7143_v11  ;;  %v7150_v11 = vld [vmem:[#allocation16_spill] sm:$0xff] }
 0x57d   :  { %v5819_v7 = vpop.f32.mrf.mxu1 }
 0x57e   :  { %v2219_v9 = vpop.f32.mrf.mxu0 }
 0x57f   :  { %v2332_v59 = vpop.f32.mrf.mxu1  ;;  %v5854_v56 = vadd.f32 %v2219_v9, %v7144_v40  ;;  %v7151_v40 = vld [vmem:[#allocation10_spill] sm:$0xff] }
 0x580   :  { %v5821_v63 = vpop.f32.mrf.mxu0  ;;  %v5857_v28 = vadd.f32 %v2332_v59, %v7145_v42  ;;  %v7152_v42 = vld [vmem:[#allocation17_spill] sm:$0xff] }
 0x581   :  { %v5823_v6 = vpop.f32.mrf.mxu1 }
 0x582   :  { %v2223_v21 = vpop.f32.mrf.mxu0 }
 0x583   :  { %v2336_v54 = vpop.f32.mrf.mxu1  ;;  %v5860_v35 = vadd.f32 %v2223_v21, %v7146_v57  ;;  %v7153_v57 = vld [vmem:[#allocation18_spill] sm:$0xff] }
 0x584   :  { %v5825_v10 = vpop.f32.mrf.mxu0  ;;  %v5863_v27 = vadd.f32 %v2336_v54, %v7147_v25  ;;  %v7154_v25 = vld [vmem:[#allocation24_spill] sm:$0xff] }
 0x585   :  { %v5827_v32 = vpop.f32.mrf.mxu1 }
 0x586   :  { %v2229_v41 = vpop.f32.mrf.mxu0 }
 0x587   :  { %v2342_v38 = vpop.f32.mrf.mxu1  ;;  %v5866_v48 = vadd.f32 %v2229_v41, %v7148_v13 }
 0x588   :  { %v2231_v4 = vpop.f32.mrf.mxu0  ;;  %v5869_v19 = vadd.f32 %v2342_v38, %v7149_v12  ;;  %v7156_v38 = vld [vmem:[#allocation27_spill] sm:$0xff] }
 0x589   :  { %v2344_v61 = vpop.f32.mrf.mxu1  ;;  %v5872_v9 = vadd.f32 %v2231_v4, %v7150_v11  ;;  %v7158_v11 = vld [vmem:[#allocation5_spill] sm:$0xff] }
 0x58a   :  { %v2233_v1 = vpop.f32.mrf.mxu0  ;;  %v5875_v59 = vadd.f32 %v2344_v61, %v7151_v40  ;;  %v7159_v61 = vld [vmem:[#allocation29_spill] sm:$0xff] }
 0x58b   :  { %v2346_v22 = vpop.f32.mrf.mxu1  ;;  %v5878_v21 = vadd.f32 %v2233_v1, %v7152_v42  ;;  %v7161_v42 = vld [vmem:[#allocation21_spill] sm:$0xff] }
 0x58c   :  { %v2237_v18 = vpop.f32.mrf.mxu0  ;;  %v5881_v54 = vadd.f32 %v2346_v22, %v7153_v57  ;;  %v7162_v22 = vld [vmem:[#allocation25_spill] sm:$0xff] }
 0x58d   :  { %v2350_v2 = vpop.f32.mrf.mxu1 }
 0x58e   :  { %v2239_v50 = vpop.f32.mrf.mxu0 }
 0x58f   :  { %v2352_v17 = vpop.f32.mrf.mxu1  ;;  %v2240_v1 = vadd.f32 %v2239_v50, %v7160_v31 }
 0x590   :  { %v2241_v14 = vpop.f32.mrf.mxu0  ;;  %v2353_v39 = vadd.f32 %v2352_v17, %v7161_v42 }
 0x591   :  { %v2354_v0 = vpop.f32.mrf.mxu1 }
 0x592   :  { %v2243_v44 = vpop.f32.mrf.mxu0 }
 0x593   :  { %v2356_v45 = vpop.f32.mrf.mxu1  ;;  %v2244_v16 = vadd.f32 %v2243_v44, %v7154_v25 }
 0x594   :  { %v2247_v15 = vpop.f32.mrf.mxu0  ;;  %v2357_v41 = vadd.f32 %v2356_v45, %v7155_v5  ;;  %v7164_v5 = vld [vmem:[#allocation22_spill] sm:$0xff] }
 0x595   :  { %v2360_v36 = vpop.f32.mrf.mxu1  ;;  %v2248_v57 = vadd.f32 %v2247_v15, %v7162_v22  ;;  %v2242_v8 = vadd.f32 %v2241_v14, %v7164_v5  ;;  %v2418_v5 = vmax.f32 %v2240_v1, 0.0  ;;  %v2408_v1 = vmax.f32 %v5863_v27, 0.0 }
 0x596   :  { %v2249_v30 = vpop.f32.mrf.mxu0  ;;  %v2361_v44 = vadd.f32 %v2360_v36, %v7163_v29  ;;  %v2238_v36 = vadd.f32 %v2237_v18, %v7033_v24  ;;  %v2351_v29 = vadd.f32 %v2350_v2, %v7034_v34  ;;  %v7167_v2 = vld [vmem:[#allocation13_spill] sm:$0xff]  ;;  %v2402_v27 = vmax.f32 %v5854_v56, 0.0 }
 0x597   :  { %v2362_v43 = vpop.f32.mrf.mxu1  ;;  %v2250_v12 = vadd.f32 %v2249_v30, %v7156_v38  ;;  %v2355_v30 = vadd.f32 %v2354_v0, %v7165_v52  ;;  %v7166_v38 = vld [vmem:[#allocation30_spill] sm:$0xff]  ;;  %v2425_v22 = vmax.f32 %v2248_v57, 0.0  ;;  %v2420_v0 = vmax.f32 %v2353_v39, 0.0 }
 0x598   :  { %v2251_v13 = vpop.f32.mrf.mxu0  ;;  %v2363_v4 = vadd.f32 %v2362_v43, %v7157_v51  ;;  %v2427_v14 = vmax.f32 %v2361_v44, 0.0  ;;  %v2228_v57 = vadd.f32 %v5825_v10, %v7035_v47  ;;  %v2341_v18 = vadd.f32 %v5827_v32, %v7167_v2  ;;  %v7170_v44 = vld [vmem:[#allocation91_spill] sm:$0xff] }
 0x599   :  { %v2364_v60 = vpop.f32.mrf.mxu1  ;;  %v2252_v33 = vadd.f32 %v2251_v13, %v7158_v11  ;;  %v2422_v11 = vmax.f32 %v2244_v16, 0.0  ;;  %v2426_v31 = vmax.f32 %v2250_v12, 0.0  ;;  %v2419_v39 = vmax.f32 %v2351_v29, 0.0 }
 0x59a   :  { %v2365_v40 = vadd.f32 %v2364_v60, %v7159_v61  ;;  %v2253_v25 = vpop.f32.mrf.mxu0  ;;  %v2424_v60 = vmax.f32 %v2357_v41, 0.0  ;;  %v2428_v17 = vmax.f32 %v2363_v4, 0.0  ;;  %v2413_v10 = vmax.f32 %v5872_v9, 0.0  ;;  %v7172_v9 = vld [vmem:[#allocation87_spill] sm:$0xff] }
 0x59b   :  { %v2366_v45 = vpop.f32.mrf.mxu1  ;;  %v2254_v43 = vadd.f32 %v2253_v25, %v7166_v38  ;;  %v2429_v61 = vmax.f32 %v2252_v33, 0.0  ;;  %v2421_v38 = vmax.f32 %v2242_v8, 0.0  ;;  %v2416_v33 = vmax.f32 %v5881_v54, 0.0  ;;  %v7168_v8 = vld [vmem:[#allocation95_spill] sm:$0xff] }
 0x59c   :  { %v2367_v13 = vadd.f32 %v2366_v45, %v4854_v49  ;;  %v2431_v50 = vmax.f32 %v2365_v40, 0.0  ;;  %v2423_v45 = vmax.f32 %v2355_v30, 0.0  ;;  %v2414_v40 = vmax.f32 %v5878_v21, 0.0  ;;  %v7169_v21 = vld [vmem:[#allocation96_spill] sm:$0xff] }
 0x59d   :  { %v2430_v42 = vmax.f32 %v2254_v43, 0.0  ;;  %v2461_v16 = vpack.c.bf16 %v2429_v61, %v2425_v22  ;;  %v2458_v12 = vpack.c.bf16 %v2422_v11, %v2418_v5  ;;  %v2460_v4 = vpack.c.bf16 %v2424_v60, %v2420_v0 }
 0x59e   :  { %v2432_v15 = vmax.f32 %v2367_v13, 0.0  ;;  %v2463_v41 = vpack.c.bf16 %v2431_v50, %v2427_v14  ;;  %v2335_v54 = vadd.f32 %v5823_v6, %v7169_v21  ;;  %v2410_v11 = vmax.f32 %v5866_v48, 0.0  ;;  %v7171_v48 = vld [vmem:[#allocation92_spill] sm:$0xff] }
 0x59f   :  { %v2462_v52 = vpack.c.bf16 %v2430_v42, %v2426_v31  ;;  %v2417_v42 = vmax.f32 %v2238_v36, 0.0  ;;  %v2222_v31 = vadd.f32 %v5821_v63, %v7168_v8  ;;  %v2415_v32 = vmax.f32 %v5875_v59, 0.0 }
 0x5a0   :  { %v2464_v25 = vpack.c.bf16 %v2432_v15, %v2428_v17  ;;  %v2459_v29 = vpack.c.bf16 %v2423_v45, %v2419_v39  ;;  %v2406_v61 = vmax.f32 %v5860_v35, 0.0  ;;  %v2454_v63 = vpack.c.bf16 %v2414_v40, %v2410_v11  ;;  %v7176_v45 = vld [vmem:[#allocation79_spill] sm:$0xff]  ;;  %v7182_v11 = vld [vmem:[#allocation40_spill] sm:$0xff] }
 0x5a1   :  { %2465 = vmatprep.subr.bf16.mxu0 %v2462_v52  ;;  %v2412_v52 = vmax.f32 %v5869_v19, 0.0  ;;  %v2457_v5 = vpack.c.bf16 %v2421_v38, %v2417_v42  ;;  %v2218_v6 = vadd.f32 %v5817_v53, %v7170_v44  ;;  %v2331_v19 = vadd.f32 %v5819_v7, %v7171_v48  ;;  %v7173_v38 = vld [vmem:[#allocation88_spill] sm:$0xff]  ;;  %v7178_v40 = vld [vmem:[#allocation59_spill] sm:$0xff]  ;;  %v7180_v42 = vld [vmem:[#allocation62_spill] sm:$0xff] }
 0x5a2   :  { %2538 = vmatprep.subr.bf16.mxu1 %v2464_v25  ;;  %2466 = vmatpush1.bf16.msra.mxu0 %v2461_v16  ;;  %v2409_v30 = vmax.f32 %v2228_v57, 0.0  ;;  %v2411_v43 = vmax.f32 %v2341_v18, 0.0  ;;  %v2212_v59 = vadd.f32 %v5813_v58, %v7172_v9  ;;  %v2325_v35 = vadd.f32 %v5815_v20, %v7173_v38  ;;  %v7174_v58 = vld [vmem:[#allocation83_spill] sm:$0xff]  ;;  %v7175_v20 = vld [vmem:[#allocation84_spill] sm:$0xff]  ;;  %v7179_v57 = vld [vmem:[#allocation61_spill] sm:$0xff] }
 0x5a3   :  { %2539 = vmatpush1.bf16.msra.mxu1 %v2463_v41  ;;  %2467 = vmatprep.subr.bf16.mxu0 %v2458_v12  ;;  %v2456_v22 = vpack.c.bf16 %v2416_v33, %v2412_v52  ;;  %v2404_v13 = vmax.f32 %v5857_v28, 0.0  ;;  %v2405_v53 = vmax.f32 %v2222_v31, 0.0  ;;  %v2407_v60 = vmax.f32 %v2335_v54, 0.0  ;;  %v7177_v41 = vld [vmem:[#allocation80_spill] sm:$0xff] }
 0x5a4   :  { %2540 = vmatprep.subr.bf16.mxu1 %v2460_v4  ;;  %v2453_v50 = vpack.c.bf16 %v2413_v10, %v2409_v30  ;;  %v2455_v7 = vpack.c.bf16 %v2415_v32, %v2411_v43  ;;  %v2398_v17 = vmax.f32 %v5848_v26, 0.0  ;;  %v2400_v15 = vmax.f32 %v5851_v3, 0.0  ;;  %v7184_v10 = vld [vmem:[#allocation103_spill] sm:$0xff] }
 0x5a5   :  { %v2450_v36 = vpack.c.bf16 %v2406_v61, %v2402_v27  ;;  %v2452_v14 = vpack.c.bf16 %v2408_v1, %v2404_v13  ;;  %v2208_v0 = vadd.f32 %v5809_v37, %v7174_v58  ;;  %v2321_v56 = vadd.f32 %v5811_v62, %v7175_v20  ;;  %v7186_v1 = vld [vmem:[#allocation64_spill] sm:$0xff] }
 0x5a6   :  { %2468 = vmatpush1.bf16.msra.mxu0 %v2457_v5  ;;  %v2401_v25 = vmax.f32 %v2218_v6, 0.0  ;;  %v2403_v28 = vmax.f32 %v2331_v19, 0.0  ;;  %v2202_v16 = vadd.f32 %v5799_v23, %v7176_v45  ;;  %v2315_v26 = vadd.f32 %v5801_v46, %v7177_v41  ;;  %v7181_v23 = vld [vmem:[#allocation75_spill] sm:$0xff]  ;;  %v7183_v46 = vld [vmem:[#allocation76_spill] sm:$0xff] }
 0x5a7   :  { %2541 = vmatpush1.bf16.msra.mxu1 %v2459_v29  ;;  %2469 = vmatprep.subr.bf16.mxu0 %v2454_v63  ;;  %v2394_v3 = vmax.f32 %v5842_v55, 0.0  ;;  %v2396_v33 = vmax.f32 %v7178_v40, 0.0  ;;  %v2397_v37 = vmax.f32 %v2212_v59, 0.0  ;;  %v2399_v12 = vmax.f32 %v2325_v35, 0.0  ;;  %v7185_v29 = vld [vmem:[#allocation33_spill] sm:$0xff] }
 0x5a8   :  { %2542 = vmatprep.subr.bf16.mxu1 %v2456_v22  ;;  %v2449_v4 = vpack.c.bf16 %v2405_v53, %v2401_v25  ;;  %v2451_v62 = vpack.c.bf16 %v2407_v60, %v2403_v28  ;;  %v2390_v18 = vmax.f32 %v7179_v57, 0.0  ;;  %v2392_v39 = vmax.f32 %v7180_v42, 0.0  ;;  %v7187_v60 = vld [vmem:[#allocation32_spill] sm:$0xff]  ;;  %v3994_v28 = vld [vmem:[%s6556_s6 + $0x8] sm:$0xff]  }
 0x5a9   :  { %v2446_v31 = vpack.c.bf16 %v2398_v17, %v2394_v3  ;;  %v2448_v54 = vpack.c.bf16 %v2400_v15, %v2396_v33  ;;  %v2198_v52 = vadd.f32 %v7182_v11, %v7181_v23  ;;  %v2311_v55 = vadd.f32 %v7184_v10, %v7183_v46  ;;  %v7190_v17 = vld [vmem:[#allocation53_spill] sm:$0xff]  ;;  %v7191_v15 = vld [vmem:[#allocation46_spill] sm:$0xff]  ;;  %v7203_v46 = vld [vmem:[#allocation36_spill] sm:$0xff] }
 0x5aa   :  { %2470 = vmatpush1.bf16.msra.mxu0 %v2453_v50  ;;  %v2393_v32 = vmax.f32 %v2208_v0, 0.0  ;;  %v2395_v5 = vmax.f32 %v2321_v56, 0.0  ;;  %v2386_v61 = vmax.f32 %v7185_v29, 0.0  ;;  %v2388_v63 = vmax.f32 %v7186_v1, 0.0  ;;  %v7188_v50 = vld [vmem:[#allocation7_spill] sm:$0xff]  ;;  %v7194_v0 = vld [vmem:[#allocation45_spill] sm:$0xff] }
 0x5ab   :  { %2543 = vmatpush1.bf16.msra.mxu1 %v2455_v7  ;;  %2471 = vmatprep.subr.bf16.mxu0 %v2450_v36  ;;  %v2389_v22 = vmax.f32 %v2202_v16, 0.0  ;;  %v2391_v6 = vmax.f32 %v2315_v26, 0.0  ;;  %v2385_v35 = vmax.f32 %v2198_v52, 0.0  ;;  %v2387_v27 = vmax.f32 %v2311_v55, 0.0  ;;  %v7189_v7 = vld [vmem:[#allocation102_spill] sm:$0xff]  ;;  %v7192_v36 = vld [vmem:[#allocation107_spill] sm:$0xff] }
 0x5ac   :  { %2544 = vmatprep.subr.bf16.mxu1 %v2452_v14  ;;  %v2445_v19 = vpack.c.bf16 %v2397_v37, %v2393_v32  ;;  %v2447_v30 = vpack.c.bf16 %v2399_v12, %v2395_v5  ;;  %v2442_v43 = vpack.c.bf16 %v2390_v18, %v2386_v61  ;;  %v2444_v59 = vpack.c.bf16 %v2392_v39, %v2388_v63  ;;  %v7193_v14 = vld [vmem:[#allocation100_spill] sm:$0xff]  ;;  %v3995_v16 = vld [vmem:[%s6556_s6 + $0x10] sm:$0xff]  }
 0x5ad   :  { %v2441_v13 = vpack.c.bf16 %v2389_v22, %v2385_v35  ;;  %v2443_v53 = vpack.c.bf16 %v2391_v6, %v2387_v27  ;;  %v3993_v56 = vld [vmem:[%s6556_s6] sm:$0xff]   ;;  %v7195_v25 = vmov 0   ;;  %v3996_v26 = vld [vmem:[%s6556_s6 + $0x18] sm:$0xff]  }
 0x5ae   :  { %2472 = vmatpush1.bf16.msra.mxu0 %v2449_v4  ;;  %v7197_v35 = vld [vmem:[#allocation63_spill] sm:$0xff] }
 0x5af   :  { %2545 = vmatpush1.bf16.msra.mxu1 %v2451_v62  ;;  %2473 = vmatprep.subr.bf16.mxu0 %v2446_v31 }
 0x5b0   :  { %2546 = vmatprep.subr.bf16.mxu1 %v2448_v54 }
 0x5b2   :  { %2474 = vmatpush1.bf16.msra.mxu0 %v2445_v19 }
 0x5b3   :  { %2547 = vmatpush1.bf16.msra.mxu1 %v2447_v30  ;;  %2475 = vmatprep.subr.bf16.mxu0 %v2442_v43  ;;  %v7196_v30 = vld [vmem:[#allocation66_spill] sm:$0xff] }
 0x5b4   :  { %2548 = vmatprep.subr.bf16.mxu1 %v2444_v59 }
 0x5b6   :  { %2476 = vmatpush1.bf16.msra.mxu0 %v2441_v13 }
 0x5b7   :  { %2549 = vmatpush1.bf16.msra.mxu1 %v2443_v53  ;;  %2477 = vmatprep.subr.bf16.mxu0 %v7187_v60 }
 0x5b8   :  { %2550 = vmatprep.subr.bf16.mxu1 %v7188_v50  ;;  %v7198_v50 = vld [vmem:[#allocation98_spill] sm:$0xff] }
 0x5ba   :  { %2478 = vmatpush1.bf16.msra.mxu0 %v7189_v7 }
 0x5bb   :  { %2551 = vmatpush1.bf16.msra.mxu1 %v7190_v17  ;;  %2479 = vmatprep.subr.bf16.mxu0 %v7191_v15  ;;  %v7199_v15 = vld [vmem:[#allocation65_spill] sm:$0xff] }
 0x5bc   :  { %2552 = vmatprep.subr.bf16.mxu1 %v7192_v36 }
 0x5be   :  { %2480 = vmatpush1.bf16.msra.mxu0 %v7193_v14 }
 0x5bf   :  { %2553 = vmatpush1.bf16.msra.mxu1 %v7194_v0 }
 0x5c1   :  { %2498 = vmatmul.mubr.bf16.vlgmr.msra.gmra.mxu0 %v3993_v56 }
 0x5c2   :  { %2571 = vmatmul.mubr.bf16.vlgmr.msra.gmra.mxu1 %v3993_v56  ;;  %2507 = vmatprep.mubr.bf16.mxu0 %v7195_v25 }
 0x5c3   :  { %2580 = vmatprep.mubr.bf16.mxu1 %v7195_v25 }
 0x5c9   :  { %2508 = vmatmul.mubr.bf16.gmra.mxu0 %v3994_v28 }
 0x5ca   :  { %2581 = vmatmul.mubr.bf16.gmra.mxu1 %v3994_v28  ;;  %2517 = vmatprep.mubr.bf16.mxu0 %v7195_v25  ;;  %v7200_v28 = vld [vmem:[#allocation97_spill] sm:$0xff] }
 0x5cb   :  { %2590 = vmatprep.mubr.bf16.mxu1 %v7195_v25 }
 0x5d1   :  { %2518 = vmatmul.mubr.bf16.gmra.mxu0 %v3995_v16 }
 0x5d2   :  { %2591 = vmatmul.mubr.bf16.gmra.mxu1 %v3995_v16  ;;  %2527 = vmatprep.mubr.bf16.mxu0 %v7195_v25 }
 0x5d3   :  { %2600 = vmatprep.mubr.bf16.mxu1 %v7195_v25 }
 0x5d9   :  { %2528 = vmatmul.mubr.bf16.gmra.mxu0 %v3996_v26 }
 0x5da   :  { %2601 = vmatmul.mubr.bf16.gmra.mxu1 %v3996_v26  ;;  %2691 = vmatprep.mubr.bf16.mxu0 %v7195_v25 }
 0x5db   :  { %2732 = vmatprep.mubr.bf16.mxu1 %v7195_v25 }
 0x681   :  { %v5973_v3 = vpop.f32.mrf.mxu0 }
 0x682   :  { %v5975_v40 = vpop.f32.mrf.mxu1 }
 0x683   :  { %v2501_v33 = vpop.f32.mrf.mxu0 }
 0x684   :  { %v2574_v37 = vpop.f32.mrf.mxu1  ;;  %v5986_v43 = vadd.f32 %v2501_v33, %v7196_v30 }
 0x685   :  { %v5977_v12 = vpop.f32.mrf.mxu0  ;;  %v5989_v59 = vadd.f32 %v2574_v37, %v7196_v30 }
 0x686   :  { %v5979_v4 = vpop.f32.mrf.mxu1 }
 0x687   :  { %v2505_v62 = vpop.f32.mrf.mxu0 }
 0x688   :  { %v2578_v57 = vpop.f32.mrf.mxu1  ;;  %v5992_v27 = vadd.f32 %v2505_v62, %v7197_v35  ;;  %v7201_v62 = vld [vmem:[#allocation34_spill] sm:$0xff] }
 0x689   :  { %v5981_v18 = vpop.f32.mrf.mxu0  ;;  %v5995_v13 = vadd.f32 %v2578_v57, %v7197_v35 }
 0x68a   :  { %v5983_v42 = vpop.f32.mrf.mxu1 }
 0x68b   :  { %v2511_v39 = vpop.f32.mrf.mxu0 }
 0x68c   :  { %v2584_v31 = vpop.f32.mrf.mxu1  ;;  %v5998_v7 = vadd.f32 %v2511_v39, %v7198_v50 }
 0x68d   :  { %v2513_v54 = vpop.f32.mrf.mxu0  ;;  %v6001_v17 = vadd.f32 %v2584_v31, %v7198_v50  ;;  %v7202_v31 = vld [vmem:[#allocation35_spill] sm:$0xff] }
 0x68e   :  { %v2586_v11 = vpop.f32.mrf.mxu1  ;;  %v6004_v36 = vadd.f32 %v2513_v54, %v7199_v15 }
 0x68f   :  { %v2515_v52 = vpop.f32.mrf.mxu0  ;;  %v6007_v14 = vadd.f32 %v2586_v11, %v7199_v15 }
 0x690   :  { %v2588_v10 = vpop.f32.mrf.mxu1  ;;  %v6010_v0 = vadd.f32 %v2515_v52, %v7199_v15 }
 0x691   :  { %v2519_v55 = vpop.f32.mrf.mxu0  ;;  %v6013_v56 = vadd.f32 %v2588_v10, %v7199_v15 }
 0x692   :  { %v2592_v32 = vpop.f32.mrf.mxu1 }
 0x693   :  { %v2521_v5 = vpop.f32.mrf.mxu0 }
 0x694   :  { %v2594_v29 = vpop.f32.mrf.mxu1  ;;  %v2522_v52 = vadd.f32 %v2521_v5, %v7203_v46 }
 0x695   :  { %v2523_v61 = vpop.f32.mrf.mxu0  ;;  %v2595_v23 = vadd.f32 %v2594_v29, %v7203_v46 }
 0x696   :  { %v2596_v1 = vpop.f32.mrf.mxu1  ;;  %v2524_v41 = vadd.f32 %v2523_v61, %v7200_v28  ;;  %v2628_v48 = vmax.f32 %v2522_v52, 0.0 }
 0x697   :  { %v2525_v63 = vpop.f32.mrf.mxu0 }
 0x698   :  { %v2598_v22 = vpop.f32.mrf.mxu1  ;;  %v2526_v16 = vadd.f32 %v2525_v63, %v7200_v28  ;;  %v2631_v44 = vmax.f32 %v2524_v41, 0.0  ;;  %v2623_v41 = vmax.f32 %v6004_v36, 0.0  ;;  %v2612_v36 = vmax.f32 %v5986_v43, 0.0 }
 0x699   :  { %v2529_v6 = vpop.f32.mrf.mxu0  ;;  %v2599_v26 = vadd.f32 %v2598_v22, %v7200_v28 }
 0x69a   :  { %v2602_v19 = vpop.f32.mrf.mxu1  ;;  %v2530_v10 = vadd.f32 %v2529_v6, %v7201_v62  ;;  %v2632_v45 = vmax.f32 %v2526_v16, 0.0 }
 0x69b   :  { %v2531_v53 = vpop.f32.mrf.mxu0  ;;  %v2603_v63 = vadd.f32 %v2602_v19, %v7201_v62  ;;  %v2520_v19 = vadd.f32 %v2519_v55, %v7203_v46  ;;  %v2510_v55 = vadd.f32 %v5981_v18, %v7198_v50  ;;  %v2625_v18 = vmax.f32 %v6007_v14, 0.0 }
 0x69c   :  { %v2604_v60 = vpop.f32.mrf.mxu1  ;;  %v2532_v57 = vadd.f32 %v2531_v53, %v7201_v62  ;;  %v2597_v53 = vadd.f32 %v2596_v1, %v7200_v28  ;;  %v2635_v9 = vmax.f32 %v2530_v10, 0.0  ;;  %v2630_v1 = vmax.f32 %v2595_v23, 0.0 }
 0x69d   :  { %v2533_v33 = vpop.f32.mrf.mxu0  ;;  %v2605_v39 = vadd.f32 %v2604_v60, %v7201_v62  ;;  %v2593_v62 = vadd.f32 %v2592_v32, %v7203_v46  ;;  %v2637_v61 = vmax.f32 %v2603_v63, 0.0  ;;  %v2583_v23 = vadd.f32 %v5983_v42, %v7198_v50  ;;  %v7259_v46 = vld [vmem:[#allocation78_spill] sm:$0xff]  ;;  %v7261_v50 = vld [vmem:[#allocation81_spill] sm:$0xff] }
 0x69e   :  { %v2606_v37 = vpop.f32.mrf.mxu1  ;;  %v2534_v54 = vadd.f32 %v2533_v33, %v7202_v31  ;;  %v2636_v58 = vmax.f32 %v2532_v57, 0.0  ;;  %v2626_v57 = vmax.f32 %v6013_v56, 0.0  ;;  %v2618_v56 = vmax.f32 %v5995_v13, 0.0 }
 0x69f   :  { %v2607_v11 = vadd.f32 %v2606_v37, %v7202_v31  ;;  %v2535_v15 = vpop.f32.mrf.mxu0  ;;  %v2634_v37 = vmax.f32 %v2599_v26, 0.0  ;;  %v2638_v29 = vmax.f32 %v2605_v39, 0.0  ;;  %v2652_v39 = vpack.c.bf16 %v2632_v45, %v2628_v48 }
 0x6a0   :  { %v2608_v22 = vpop.f32.mrf.mxu1  ;;  %v2536_v60 = vadd.f32 %v2535_v15, %v7202_v31  ;;  %v2639_v20 = vmax.f32 %v2534_v54, 0.0  ;;  %v2624_v54 = vmax.f32 %v6010_v0, 0.0  ;;  %v2620_v48 = vmax.f32 %v5998_v7, 0.0 }
 0x6a1   :  { %v2609_v33 = vadd.f32 %v2608_v22, %v7202_v31  ;;  %v2641_v5 = vmax.f32 %v2607_v11, 0.0  ;;  %v2633_v22 = vmax.f32 %v2597_v53, 0.0  ;;  %v2654_v11 = vpack.c.bf16 %v2634_v37, %v2630_v1  ;;  %v3922_v1 = vld [vmem:[%s6550_s0 + $0x11c] ss:$16 sps:$4 sm:$0xff]  }
 0x6a2   :  { %v2640_v38 = vmax.f32 %v2536_v60, 0.0  ;;  %v2655_v16 = vpack.c.bf16 %v2639_v20, %v2635_v9  ;;  %v2504_v9 = vadd.f32 %v5977_v12, %v7197_v35  ;;  %v2577_v20 = vadd.f32 %v5979_v4, %v7197_v35 }
 0x6a3   :  { %v2642_v6 = vmax.f32 %v2609_v33, 0.0  ;;  %v2657_v26 = vpack.c.bf16 %v2641_v5, %v2637_v61  ;;  %v2622_v45 = vmax.f32 %v6001_v17, 0.0  ;;  %v2616_v0 = vmax.f32 %v5992_v27, 0.0  ;;  %v3794_v27 = vld [vmem:[%s6550_s0 + $0x130] sm:$0x11] }
 0x6a4   :  { %v2656_v28 = vpack.c.bf16 %v2640_v38, %v2636_v58  ;;  %v2627_v38 = vmax.f32 %v2520_v19, 0.0  ;;  %v2629_v58 = vmax.f32 %v2593_v62, 0.0  ;;  %v2648_v12 = vpack.c.bf16 %v2624_v54, %v2620_v48  ;;  %v3919_v61 = vld [vmem:[%s6550_s0 + $0x114] ss:$16 sps:$4 sm:$0xff]   ;;  %v3928_v54 = vld [vmem:[%s6550_s0 + $0xfc] ss:$16 sps:$4 sm:$0xff]  }
 0x6a5   :  { %v2658_v15 = vpack.c.bf16 %v2642_v6, %v2638_v29  ;;  %v2500_v4 = vadd.f32 %v5973_v3, %v7196_v30  ;;  %v2573_v7 = vadd.f32 %v5975_v40, %v7196_v30  ;;  %v2619_v17 = vmax.f32 %v2510_v55, 0.0  ;;  %v3795_v40 = vld [vmem:[%s6550_s0 + $0x138] sm:$0x11]  ;;  %v3999_v55 = vld [vmem:[%s6553_s3 + $0x8] sm:$0xff]  }
 0x6a6   :  { %2667 = vmatprep.subr.bf16.mxu0 %v2656_v28  ;;  %v2651_v42 = vpack.c.bf16 %v2631_v44, %v2627_v38  ;;  %v2653_v32 = vpack.c.bf16 %v2633_v22, %v2629_v58  ;;  %v2650_v28 = vpack.c.bf16 %v2626_v57, %v2622_v45  ;;  %v2621_v62 = vmax.f32 %v2583_v23, 0.0  ;;  %v3917_v22 = vld [vmem:[%s6550_s0 + $0x110] ss:$16 sps:$4 sm:$0xff]   ;;  %v4001_v38 = vld [vmem:[%s6553_s3 + $0x18] sm:$0xff]  }
 0x6a7   :  { %2708 = vmatprep.subr.bf16.mxu1 %v2658_v15  ;;  %2668 = vmatpush1.bf16.msra.mxu0 %v2655_v16  ;;  %v2614_v44 = vmax.f32 %v5989_v59, 0.0  ;;  %v2615_v13 = vmax.f32 %v2504_v9, 0.0  ;;  %v2617_v14 = vmax.f32 %v2577_v20, 0.0  ;;  %v2647_v3 = vpack.c.bf16 %v2623_v41, %v2619_v17  ;;  %v3997_v15 = vld [vmem:[%s6558_s8] sm:$0x1]  ;;  %v4000_v23 = vld [vmem:[%s6553_s3 + $0x10] sm:$0xff]  }
 0x6a8   :  { %2709 = vmatpush1.bf16.msra.mxu1 %v2657_v26  ;;  %2669 = vmatprep.subr.bf16.mxu0 %v2652_v39  ;;  %v2649_v52 = vpack.c.bf16 %v2625_v18, %v2621_v62  ;;  %v2644_v10 = vpack.c.bf16 %v2616_v0, %v2612_v36  ;;  %v2611_v53 = vmax.f32 %v2500_v4, 0.0  ;;  %v2613_v43 = vmax.f32 %v2573_v7, 0.0  ;;  %v3920_v16 = vld [vmem:[%s6550_s0 + $0x118] ss:$16 sps:$4 sm:$0xff]   ;;  %v3925_v26 = vld [vmem:[%s6550_s0 + $0xf4] ss:$16 sps:$4 sm:$0xff]  }
 0x6a9   :  { %2710 = vmatprep.subr.bf16.mxu1 %v2654_v11  ;;  %v2646_v63 = vpack.c.bf16 %v2618_v56, %v2614_v44  ;;  %v3805_v59 = vcombine.high %v3794_v27, %v3794_v27  ;;  %v3807_v60 = vcombine.high %v3795_v40, %v3795_v40  ;;  %v3804_v33 = vcombine.low %v3794_v27, %v3794_v27  ;;  %v3923_v57 = vld [vmem:[%s6550_s0 + $0xf0] ss:$16 sps:$4 sm:$0xff]   ;;  %v3926_v39 = vld [vmem:[%s6550_s0 + $0xf8] ss:$16 sps:$4 sm:$0xff]  }
 0x6aa   :  { %v3806_v37 = vcombine.low %v3795_v40, %v3795_v40  ;;  %v2643_v5 = vpack.c.bf16 %v2615_v13, %v2611_v53  ;;  %v2645_v29 = vpack.c.bf16 %v2617_v14, %v2613_v43  ;;  %v3998_v11 = vld [vmem:[%s6553_s3] sm:$0xff]   ;;  %v4003_v9 = vld [vmem:[%s6553_s3 + $0x28] sm:$0xff]   ;;  %v4004_v20 = vld [vmem:[%s6553_s3 + $0x30] sm:$0xff]  }
 0x6ab   :  { %2670 = vmatpush1.bf16.msra.mxu0 %v2651_v42  ;;  %v2875_v6 = vsel %vm629_vm1, %v3804_v33, 0  ;;  %v4002_v58 = vld [vmem:[%s6553_s3 + $0x20] sm:$0xff]   ;;  %v4005_v48 = vld [vmem:[%s6553_s3 + $0x38] sm:$0xff]   ;;  %v7263_v30 = vld [vmem:[#allocation82_spill] sm:$0xff] }
 0x6ac   :  { %2711 = vmatpush1.bf16.msra.mxu1 %v2653_v32  ;;  %2671 = vmatprep.subr.bf16.mxu0 %v2648_v12  ;;  %v2881_v19 = vsel %vm629_vm1, %v3806_v37, 0  ;;  %v7204_v18 = vld [vmem:[#allocation19_spill] sm:$0xff]  ;;  %v7205_v12 = vld [vmem:[#allocation20_spill] sm:$0xff]  ;;  %v7207_v4 = vld [vmem:[#allocation9_spill] sm:$0xff] }
 0x6ad   :  { %2712 = vmatprep.subr.bf16.mxu1 %v2650_v28 }
 0x6af   :  { %2672 = vmatpush1.bf16.msra.mxu0 %v2647_v3 }
 0x6b0   :  { %2713 = vmatpush1.bf16.msra.mxu1 %v2649_v52  ;;  %2673 = vmatprep.subr.bf16.mxu0 %v2644_v10  ;;  %v7209_v52 = vld [vmem:[#allocation109_spill] sm:$0xff]  ;;  %v7211_v10 = vld [vmem:[#allocation99_spill] sm:$0xff] }
 0x6b1   :  { %2714 = vmatprep.subr.bf16.mxu1 %v2646_v63 }
 0x6b3   :  { %2674 = vmatpush1.bf16.msra.mxu0 %v2643_v5 }
 0x6b4   :  { %2715 = vmatpush1.bf16.msra.mxu1 %v2645_v29  ;;  %3808 = vmatprep.subr.msk.bf16.mxu0 %vm629_vm1, %v3805_v59 }
 0x6b5   :  { %3817 = vmatprep.subr.msk.bf16.mxu1 %vm629_vm1, %v3807_v60 }
 0x6b6   :  { %3784 = vmatmul.mubr.msk.bf16.vlgmr.msra.gmra.mxu0 %vm1245_vm3, %v3997_v15 }
 0x6b7   :  { %3785 = vmatmul.mubr.msk.bf16.vlgmr.msra.gmra.mxu1 %vm1245_vm3, %v3997_v15  ;;  %2897 = vmatpush1.bf16.msra.mxu0 %v2875_v6 }
 0x6b8   :  { %3010 = vmatpush1.bf16.msra.mxu1 %v2881_v19  ;;  %2898 = vmatprep.subr.bf16.mxu0 %v3919_v61 }
 0x6b9   :  { %3011 = vmatprep.subr.bf16.mxu1 %v3922_v1  ;;  %2918 = vmatprep.mubr.bf16.mxu0 %v7195_v25 }
 0x6ba   :  { %3031 = vmatprep.mubr.bf16.mxu1 %v7195_v25 }
 0x6bb   :  { %2899 = vmatpush1.bf16.msra.mxu0 %v3917_v22 }
 0x6bc   :  { %3012 = vmatpush1.bf16.msra.mxu1 %v3920_v16  ;;  %2900 = vmatprep.subr.bf16.mxu0 %v3925_v26 }
 0x6bd   :  { %3013 = vmatprep.subr.bf16.mxu1 %v3928_v54  ;;  %v7213_v54 = vld [vmem:[#allocation37_spill] sm:$0xff] }
 0x6bf   :  { %2901 = vmatpush1.bf16.msra.mxu0 %v3923_v57 }
 0x6c0   :  { %3014 = vmatpush1.bf16.msra.mxu1 %v3926_v39  ;;  %v7214_v39 = vld [vmem:[#allocation38_spill] sm:$0xff] }
 0x6c2   :  { %3809 = vmatmul.mubr.msk.bf16.vlgmr.msra.gmra.mxu0 %vm604_vm2, %v3998_v11 }
 0x6c3   :  { %3818 = vmatmul.mubr.msk.bf16.vlgmr.msra.gmra.mxu1 %vm604_vm2, %v3998_v11  ;;  %2928 = vmatprep.mubr.bf16.mxu0 %v7195_v25 }
 0x6c4   :  { %3041 = vmatprep.mubr.bf16.mxu1 %v7195_v25 }
 0x6ca   :  { %3810 = vmatmul.mubr.msk.bf16.gmra.mxu0 %vm604_vm2, %v3999_v55 }
 0x6cb   :  { %3819 = vmatmul.mubr.msk.bf16.gmra.mxu1 %vm604_vm2, %v3999_v55  ;;  %2938 = vmatprep.mubr.bf16.mxu0 %v7195_v25 }
 0x6cc   :  { %3051 = vmatprep.mubr.bf16.mxu1 %v7195_v25 }
 0x6d2   :  { %3811 = vmatmul.mubr.msk.bf16.gmra.mxu0 %vm604_vm2, %v4000_v23 }
 0x6d3   :  { %3820 = vmatmul.mubr.msk.bf16.gmra.mxu1 %vm604_vm2, %v4000_v23  ;;  %2948 = vmatprep.mubr.bf16.mxu0 %v7195_v25 }
 0x6d4   :  { %3061 = vmatprep.mubr.bf16.mxu1 %v7195_v25 }
 0x6da   :  { %3812 = vmatmul.mubr.msk.bf16.gmra.mxu0 %vm604_vm2, %v4001_v38 }
 0x6db   :  { %3821 = vmatmul.mubr.msk.bf16.gmra.mxu1 %vm604_vm2, %v4001_v38  ;;  %2958 = vmatprep.mubr.bf16.mxu0 %v7195_v25  ;;  %v7215_v38 = vld [vmem:[#allocation67_spill] sm:$0xff] }
 0x6dc   :  { %3071 = vmatprep.mubr.bf16.mxu1 %v7195_v25 }
 0x6e2   :  { %3813 = vmatmul.mubr.msk.bf16.gmra.mxu0 %vm604_vm2, %v4002_v58 }
 0x6e3   :  { %3822 = vmatmul.mubr.msk.bf16.gmra.mxu1 %vm604_vm2, %v4002_v58  ;;  %2968 = vmatprep.mubr.bf16.mxu0 %v7195_v25 }
 0x6e4   :  { %3081 = vmatprep.mubr.bf16.mxu1 %v7195_v25 }
 0x6ea   :  { %3814 = vmatmul.mubr.msk.bf16.gmra.mxu0 %vm604_vm2, %v4003_v9 }
 0x6eb   :  { %3823 = vmatmul.mubr.msk.bf16.gmra.mxu1 %vm604_vm2, %v4003_v9  ;;  %2978 = vmatprep.mubr.bf16.mxu0 %v7195_v25  ;;  %v7216_v9 = vld [vmem:[#allocation68_spill] sm:$0xff] }
 0x6ec   :  { %3091 = vmatprep.mubr.bf16.mxu1 %v7195_v25 }
 0x6f2   :  { %3815 = vmatmul.mubr.msk.bf16.gmra.mxu0 %vm604_vm2, %v4004_v20 }
 0x6f3   :  { %3824 = vmatmul.mubr.msk.bf16.gmra.mxu1 %vm604_vm2, %v4004_v20  ;;  %2988 = vmatprep.mubr.bf16.mxu0 %v7195_v25 }
 0x6f4   :  { %3101 = vmatprep.mubr.bf16.mxu1 %v7195_v25 }
 0x6fa   :  { %3816 = vmatmul.mubr.msk.bf16.gmra.mxu0 %vm604_vm2, %v4005_v48 }
 0x6fb   :  { %3825 = vmatmul.mubr.msk.bf16.gmra.mxu1 %vm604_vm2, %v4005_v48  ;;  %3240 = vmatprep.mubr.bf16.mxu0 %v7195_v25 }
 0x6fc   :  { %3313 = vmatprep.mubr.bf16.mxu1 %v7195_v25 }
 0x776   :  { %v2693_v45 = vpop.f32.mrf.mxu0 }
 0x777   :  { %v2734_v41 = vpop.f32.mrf.mxu1  ;;  %v6151_v42 = vadd.f32 %v2693_v45, %v7204_v18 }
 0x778   :  { %v6154_v32 = vadd.f32 %v2734_v41, %v7204_v18  ;;  %v2695_v0 = vpop.f32.mrf.mxu0  ;;  %v7217_v41 = vld [vmem:[#allocation41_spill] sm:$0xff] }
 0x779   :  { %v2736_v56 = vpop.f32.mrf.mxu1  ;;  %v6158_v28 = vmax.f32 %v7205_v12, %v6151_v42  ;;  %v6165_v17 = vadd.f32 %v2695_v0, %v7204_v18 }
 0x77a   :  { %v6162_v7 = vmax.f32 %v7207_v4, %v6154_v32  ;;  %v6168_v62 = vadd.f32 %v2736_v56, %v7204_v18  ;;  %v2697_v36 = vpop.f32.mrf.mxu0  ;;  %v7218_v56 = vld [vmem:[#allocation42_spill] sm:$0xff] }
 0x77b   :  { %7206 = vst [vmem:[#allocation60_spill] sm:$0xff] %v6158_v28  ;;  %v2738_v44 = vpop.f32.mrf.mxu1  ;;  %v2745_v27 = vsub.f32 %v7205_v12, %v6158_v28  ;;  %v2757_v13 = vsub.f32 %v6151_v42, %v6158_v28  ;;  %v6180_v40 = vmax.f32 %v7209_v52, %v6165_v17  ;;  %v7257_v28 = vld [vmem:[#allocation77_spill] sm:$0xff] }
 0x77c   :  { %7208 = vst [vmem:[#allocation57_spill] sm:$0xff] %v6162_v7  ;;  %v2747_v14 = vsub.f32 %v7207_v4, %v6162_v7  ;;  %v2759_v3 = vsub.f32 %v6154_v32, %v6162_v7  ;;  %v6184_v63 = vmax.f32 %v7211_v10, %v6168_v62  ;;  %v2698_v53 = vpop.f32.mrf.mxu0 }
 0x77d   :  { %7210 = vst [vmem:[#allocation58_spill] sm:$0xff] %v6180_v40  ;;  %v2739_v43 = vpop.f32.mrf.mxu1  ;;  %v2749_v59 = vmul.f32 1.442695, %v2745_v27  ;;  %v2761_v60 = vmul.f32 1.442695, %v2757_v13  ;;  %v2746_v5 = vsub.f32 %v7209_v52, %v6180_v40  ;;  %v2758_v29 = vsub.f32 %v6165_v17, %v6180_v40 }
 0x77e   :  { %7212 = vst [vmem:[#allocation55_spill] sm:$0xff] %v6184_v63  ;;  %v2753_v33 = vmul.f32 1.442695, %v2747_v14  ;;  %v2765_v37 = vmul.f32 1.442695, %v2759_v3  ;;  %v2748_v6 = vsub.f32 %v7211_v10, %v6184_v63  ;;  %v2760_v19 = vsub.f32 %v6168_v62, %v6184_v63  ;;  %v7219_v3 = vld [vmem:[#allocation69_spill] sm:$0xff] }
 0x77f   :  { %3945 = vpow2.f32 %v2749_v59  ;;  %v2751_v61 = vmul.f32 1.442695, %v2746_v5  ;;  %v2763_v1 = vmul.f32 1.442695, %v2758_v29  ;;  %v7220_v10 = vld [vmem:[#allocation70_spill] sm:$0xff] }
 0x780   :  { %3947 = vpow2.f32 %v2761_v60  ;;  %v2755_v15 = vmul.f32 1.442695, %v2748_v6  ;;  %v2767_v22 = vmul.f32 1.442695, %v2760_v19 }
 0x781   :  { %3949 = vpow2.f32 %v2753_v33 }
 0x782   :  { %3951 = vpow2.f32 %v2765_v37  ;;  %v2920_v16 = vpop.f32.mrf.mxu0 }
 0x783   :  { %v3033_v26 = vpop.f32.mrf.mxu1  ;;  %3953 = vpow2.f32 %v2751_v61  ;;  %v2921_v57 = vadd.f32 %v2920_v16, %v7213_v54  ;;  %v7223_v61 = vld [vmem:[#allocation43_spill] sm:$0xff] }
 0x784   :  { %3955 = vpow2.f32 %v2763_v1  ;;  %v3034_v11 = vadd.f32 %v3033_v26, %v7214_v39  ;;  %v2922_v55 = vpop.f32.mrf.mxu0 }
 0x785   :  { %v3035_v23 = vpop.f32.mrf.mxu1  ;;  %3957 = vpow2.f32 %v2755_v15  ;;  %v2923_v58 = vadd.f32 %v2922_v55, %v7215_v38  ;;  %v3112_v4 = vmax.f32 %v2921_v57, 0.0  ;;  %v7224_v15 = vld [vmem:[#allocation44_spill] sm:$0xff]  ;;  %v7227_v55 = vld [vmem:[#allocation71_spill] sm:$0xff] }
 0x786   :  { %3959 = vpow2.f32 %v2767_v22  ;;  %v3036_v20 = vadd.f32 %v3035_v23, %v7216_v9  ;;  %v2924_v48 = vpop.f32.mrf.mxu0  ;;  %v3114_v36 = vmax.f32 %v3034_v11, 0.0 }
 0x787   :  { %v3037_v45 = vpop.f32.mrf.mxu1  ;;  %v2925_v0 = vadd.f32 %v2924_v48, %v7217_v41  ;;  %v3113_v43 = vmax.f32 %v2923_v58, 0.0 }
 0x788   :  { %v3038_v12 = vadd.f32 %v3037_v45, %v7218_v56  ;;  %v2926_v44 = vpop.f32.mrf.mxu0  ;;  %v3115_v59 = vmax.f32 %v3036_v20, 0.0 }
 0x789   :  { %v3039_v27 = vpop.f32.mrf.mxu1  ;;  %v3116_v13 = vmax.f32 %v2925_v0, 0.0  ;;  %v2927_v52 = vadd.f32 %v2926_v44, %v7219_v3  ;;  %v7228_v0 = vld [vmem:[#allocation106_spill] sm:$0xff]  ;;  %v7230_v44 = vld [vmem:[#allocation49_spill] sm:$0xff] }
 0x78a   :  { %v3118_v14 = vmax.f32 %v3038_v12, 0.0  ;;  %v3040_v53 = vadd.f32 %v3039_v27, %v7220_v10  ;;  %v2930_v60 = vpop.f32.mrf.mxu0  ;;  %v7231_v10 = vld [vmem:[#allocation50_spill] sm:$0xff] }
 0x78b   :  { %v3043_v33 = vpop.f32.mrf.mxu1  ;;  %v6202_v37 = vpack.c.bf16 %v3116_v13, %v3112_v4  ;;  %v3117_v29 = vmax.f32 %v2927_v52, 0.0  ;;  %v2931_v1 = vadd.f32 %v2930_v60, %v7223_v61  ;;  %v7229_v4 = vld [vmem:[#allocation72_spill] sm:$0xff] }
 0x78c   :  { %v6204_v5 = vpack.c.bf16 %v3118_v14, %v3114_v36  ;;  %v3119_v6 = vmax.f32 %v3040_v53, 0.0  ;;  %v6206_v19 = vpop.eup %3945  ;;  %v3044_v22 = vadd.f32 %v3043_v33, %v7224_v15  ;;  %v2932_v16 = vpop.f32.mrf.mxu0  ;;  %v7232_v33 = vld [vmem:[#allocation104_spill] sm:$0xff] }
 0x78d   :  { %7221 = vst [vmem:[#allocation56_spill] sm:$0xff] %v6202_v37  ;;  %v3045_v26 = vpop.f32.mrf.mxu1  ;;  %v6210_v54 = vpop.eup %3947  ;;  %v2773_v57 = vrot.slane %v6206_v19, 1  ;;  %v6213_v39 = vpack.c.bf16 %v3117_v29, %v3113_v43  ;;  %v2933_v23 = vadd.f32 %v2932_v16, %v7227_v55  ;;  %v3120_v9 = vmax.f32 %v2931_v1, 0.0  ;;  %v7233_v1 = vld [vmem:[#allocation73_spill] sm:$0xff] }
 0x78e   :  { %7222 = vst [vmem:[#allocation51_spill] sm:$0xff] %v6204_v5  ;;  %v6215_v11 = vpack.c.bf16 %v3119_v6, %v3115_v59  ;;  %v3950_v38 = vpop.eup %3949  ;;  %v2789_v58 = vrot.slane %v6210_v54, 1  ;;  %v3122_v20 = vmax.f32 %v3044_v22, 0.0  ;;  %v2934_v48 = vpop.f32.mrf.mxu0  ;;  %v3046_v36 = vadd.f32 %v3045_v26, %v7229_v4 }
 0x78f   :  { %7225 = vst [vmem:[#allocation52_spill] sm:$0xff] %v6213_v39  ;;  %v3047_v45 = vpop.f32.mrf.mxu1  ;;  %v3952_v41 = vpop.eup %3951  ;;  %v2781_v56 = vmul.f32 %v2773_v57, %v7228_v0  ;;  %v2775_v12 = vrot.slane %v3950_v38, 1  ;;  %v2935_v27 = vadd.f32 %v2934_v48, %v7230_v44  ;;  %v3121_v52 = vmax.f32 %v2933_v23, 0.0  ;;  %v7237_v48 = vld [vmem:[#allocation54_spill] sm:$0xff] }
 0x790   :  { %7226 = vst [vmem:[#allocation47_spill] sm:$0xff] %v6215_v11  ;;  %v3954_v13 = vpop.eup %3953  ;;  %v2797_v14 = vmul.f32 %v2789_v58, %v6151_v42  ;;  %v2791_v3 = vrot.slane %v3952_v41, 1  ;;  %v3048_v53 = vadd.f32 %v3047_v45, %v7231_v10  ;;  %v2936_v43 = vpop.f32.mrf.mxu0  ;;  %v7241_v10 = vld [vmem:[#allocation31_spill] sm:$0xff]  ;;  %v7265_v11 = vld [vmem:[#allocation85_spill] sm:$0xff] }
 0x791   :  { %v3049_v59 = vpop.f32.mrf.mxu1  ;;  %v3956_v60 = vpop.eup %3955  ;;  %v2783_v29 = vmul.f32 %v2775_v12, %v7232_v33  ;;  %v2774_v6 = vrot.slane %v3954_v13, 1  ;;  %v3124_v61 = vmax.f32 %v2935_v27, 0.0  ;;  %v2937_v15 = vadd.f32 %v2936_v43, %v7233_v1  ;;  %v7243_v33 = vld [vmem:[#allocation74_spill] sm:$0xff] }
 0x792   :  { %v3958_v22 = vpop.eup %3957  ;;  %v6226_v16 = vadd.f32 %v2797_v14, %v2781_v56  ;;  %v2799_v26 = vmul.f32 %v2791_v3, %v6154_v32  ;;  %v2790_v57 = vrot.slane %v3956_v60, 1  ;;  %v3126_v42 = vmax.f32 %v3048_v53, 0.0  ;;  %v6229_v55 = vpop.f32.mrf.mxu0 }
 0x793   :  { %7235 = vst [vmem:[#allocation28_spill] sm:$0xff] %v6229_v55  ;;  %v6231_v23 = vpop.f32.mrf.mxu1  ;;  %v3960_v58 = vpop.eup %3959  ;;  %v2782_v45 = vmul.f32 %v2774_v6, %v7237_v48  ;;  %v2776_v0 = vrot.slane %v3958_v22, 1  ;;  %v6234_v12 = vpack.c.bf16 %v3124_v61, %v3120_v9  ;;  %v3125_v4 = vmax.f32 %v2937_v15, 0.0 }
 0x794   :  { %7234 = vst [vmem:[#allocation48_spill] sm:$0xff] %v6226_v16  ;;  %7236 = vst [vmem:[#allocation13_spill] sm:$0xff] %v6231_v23  ;;  %v6236_v44 = vadd.f32 %v2799_v26, %v2783_v29  ;;  %v2798_v56 = vmul.f32 %v2790_v57, %v6165_v17  ;;  %v2792_v27 = vrot.slane %v3960_v58, 1  ;;  %v6239_v14 = vpack.c.bf16 %v3126_v42, %v3122_v20  ;;  %v2942_v32 = vpop.f32.mrf.mxu0  ;;  %v7282_v23 = vld [vmem:[#allocation8_spill] sm:$0xff] }
 0x795   :  { %7238 = vst [vmem:[#allocation95_spill] sm:$0xff] %v6234_v12  ;;  %v3055_v3 = vpop.f32.mrf.mxu1  ;;  %v2784_v53 = vmul.f32 %v2776_v0, %v7241_v10  ;;  %v6242_v43 = vpack.c.bf16 %v3125_v4, %v3121_v52  ;;  %v3050_v1 = vadd.f32 %v3049_v59, %v7243_v33  ;;  %v3123_v17 = vmax.f32 %v3046_v36, 0.0  ;;  %v7249_v59 = vld [vmem:[#allocation108_spill] sm:$0xff]  ;;  %v7253_v33 = vld [vmem:[#allocation39_spill] sm:$0xff] }
 0x796   :  { %7239 = vst [vmem:[#allocation96_spill] sm:$0xff] %v6236_v44  ;;  %7240 = vst [vmem:[#allocation59_spill] sm:$0xff] %v6239_v14  ;;  %v6245_v6 = vadd.f32 %v2798_v56, %v2782_v45  ;;  %v2800_v9 = vmul.f32 %v2792_v27, %v6168_v62  ;;  %v6248_v61 = vpop.f32.mrf.mxu0  ;;  %v2805_v45 = vmul.f32 %v6206_v19, %v7249_v59  ;;  %v7250_v62 = vld [vmem:[#allocation105_spill] sm:$0xff]  ;;  %v7267_v14 = vld [vmem:[#allocation86_spill] sm:$0xff] }
 0x797   :  { %7242 = vst [vmem:[#allocation61_spill] sm:$0xff] %v6242_v43  ;;  %7245 = vst [vmem:[#allocation40_spill] sm:$0xff] %v6248_v61  ;;  %v6250_v29 = vpop.f32.mrf.mxu1  ;;  %v3127_v15 = vmax.f32 %v3050_v1, 0.0  ;;  %v2807_v0 = vmul.f32 %v3950_v38, %v7250_v62  ;;  %v2806_v1 = vmul.f32 %v3954_v13, %v7253_v33  ;;  %v6291_v18 = vadd.f32 %v2942_v32, %v7257_v28  ;;  %v7270_v32 = vld [vmem:[#allocation90_spill] sm:$0xff]  ;;  %v7291_v61 = vld [vmem:[#allocation23_spill] sm:$0xff] }
 0x798   :  { %7244 = vst [vmem:[#allocation62_spill] sm:$0xff] %v6245_v6  ;;  %7246 = vst [vmem:[#allocation103_spill] sm:$0xff] %v6250_v29  ;;  %v6252_v20 = vadd.f32 %v2800_v9, %v2784_v53  ;;  %v2946_v26 = vpop.f32.mrf.mxu0  ;;  %v6264_v36 = vadd.f32 %v6210_v54, %v2805_v45  ;;  %v7254_v9 = vld [vmem:[#allocation101_spill] sm:$0xff]  ;;  %v6294_v31 = vadd.f32 %v3055_v3, %v7259_v46 }
 0x799   :  { %v3059_v57 = vpop.f32.mrf.mxu1  ;;  %v6254_v42 = vpack.c.bf16 %v3127_v15, %v3123_v17  ;;  %v6266_v27 = vadd.f32 %v3952_v41, %v2807_v0  ;;  %v2808_v17 = vmul.f32 %v3958_v22, %v7254_v9  ;;  %v6274_v19 = vadd.f32 %v3956_v60, %v2806_v1  ;;  %7258 = vst [vmem:[#allocation46_spill] sm:$0xff] %v6291_v18  ;;  %v7271_v3 = vld [vmem:[#allocation93_spill] sm:$0xff] }
 0x79a   :  { %7247 = vst [vmem:[#allocation33_spill] sm:$0xff] %v6252_v20  ;;  %v6256_v52 = vpop.f32.mrf.mxu0  ;;  %7251 = vst [vmem:[#allocation32_spill] sm:$0xff] %v6264_v36  ;;  %v6297_v35 = vadd.f32 %v2946_v26, %v7261_v50  ;;  %v6300_v25 = vadd.f32 %v3059_v57, %v7263_v30  ;;  %v7272_v26 = vld [vmem:[#allocation94_spill] sm:$0xff]  ;;  %v7273_v57 = vld [vmem:[#allocation11_spill] sm:$0xff] }
 0x79b   :  { %7248 = vst [vmem:[#allocation64_spill] sm:$0xff] %v6254_v42  ;;  %v6258_v48 = vpop.f32.mrf.mxu1  ;;  %7252 = vst [vmem:[#allocation7_spill] sm:$0xff] %v6266_v27  ;;  %v6276_v38 = vadd.f32 %v3960_v58, %v2808_v17  ;;  %v7269_v42 = vld [vmem:[#allocation89_spill] sm:$0xff] }
 0x79c   :  { %v2952_v4 = vpop.f32.mrf.mxu0  ;;  %7255 = vst [vmem:[#allocation102_spill] sm:$0xff] %v6274_v19  ;;  %7260 = vst [vmem:[#allocation107_spill] sm:$0xff] %v6294_v31  ;;  %v7275_v31 = vld [vmem:[#allocation14_spill] sm:$0xff] }
 0x79d   :  { %v3065_v56 = vpop.f32.mrf.mxu1  ;;  %7256 = vst [vmem:[#allocation53_spill] sm:$0xff] %v6276_v38  ;;  %7262 = vst [vmem:[#allocation100_spill] sm:$0xff] %v6297_v35  ;;  %v6303_v39 = vadd.f32 %v2952_v4, %v7265_v11  ;;  %v7274_v11 = vld [vmem:[#allocation12_spill] sm:$0xff]  ;;  %v7286_v35 = vld [vmem:[#allocation6_spill] sm:$0xff] }
 0x79e   :  { %v6268_v10 = vpop.f32.mrf.mxu0  ;;  %7264 = vst [vmem:[#allocation45_spill] sm:$0xff] %v6300_v25  ;;  %v6306_v12 = vadd.f32 %v3065_v56, %v7267_v14 }
 0x79f   :  { %v6270_v53 = vpop.f32.mrf.mxu1  ;;  %7266 = vst [vmem:[#allocation20_spill] sm:$0xff] %v6303_v39  ;;  %v7289_v39 = vld [vmem:[#allocation26_spill] sm:$0xff] }
 0x7a0   :  { %v2956_v15 = vpop.f32.mrf.mxu0  ;;  %7268 = vst [vmem:[#allocation9_spill] sm:$0xff] %v6306_v12 }
 0x7a1   :  { %v3069_v20 = vpop.f32.mrf.mxu1  ;;  %v6309_v28 = vadd.f32 %v2956_v15, %v7269_v42  ;;  %v7276_v15 = vld [vmem:[#allocation15_spill] sm:$0xff] }
 0x7a2   :  { %v6278_v59 = vpop.f32.mrf.mxu0  ;;  %v6312_v46 = vadd.f32 %v3069_v20, %v7270_v32  ;;  %v7277_v32 = vld [vmem:[#allocation16_spill] sm:$0xff] }
 0x7a3   :  { %v6280_v54 = vpop.f32.mrf.mxu1 }
 0x7a4   :  { %v2962_v41 = vpop.f32.mrf.mxu0 }
 0x7a5   :  { %v3075_v45 = vpop.f32.mrf.mxu1  ;;  %v6315_v50 = vadd.f32 %v2962_v41, %v7271_v3  ;;  %v7278_v3 = vld [vmem:[#allocation10_spill] sm:$0xff] }
 0x7a6   :  { %v6282_v62 = vpop.f32.mrf.mxu0  ;;  %v6318_v30 = vadd.f32 %v3075_v45, %v7272_v26  ;;  %v7279_v26 = vld [vmem:[#allocation17_spill] sm:$0xff] }
 0x7a7   :  { %v6284_v0 = vpop.f32.mrf.mxu1 }
 0x7a8   :  { %v2966_v6 = vpop.f32.mrf.mxu0 }
 0x7a9   :  { %v3079_v13 = vpop.f32.mrf.mxu1  ;;  %v6321_v43 = vadd.f32 %v2966_v6, %v7273_v57  ;;  %v7280_v57 = vld [vmem:[#allocation18_spill] sm:$0xff] }
 0x7aa   :  { %v6286_v33 = vpop.f32.mrf.mxu0  ;;  %v6324_v4 = vadd.f32 %v3079_v13, %v7274_v11  ;;  %v7281_v11 = vld [vmem:[#allocation24_spill] sm:$0xff] }
 0x7ab   :  { %v6288_v22 = vpop.f32.mrf.mxu1 }
 0x7ac   :  { %v2972_v60 = vpop.f32.mrf.mxu0 }
 0x7ad   :  { %v3085_v1 = vpop.f32.mrf.mxu1  ;;  %v6327_v42 = vadd.f32 %v2972_v60, %v7275_v31 }
 0x7ae   :  { %v2974_v58 = vpop.f32.mrf.mxu0  ;;  %v6330_v20 = vadd.f32 %v3085_v1, %v7276_v15  ;;  %v7283_v1 = vld [vmem:[#allocation27_spill] sm:$0xff] }
 0x7af   :  { %v3087_v9 = vpop.f32.mrf.mxu1  ;;  %v6333_v41 = vadd.f32 %v2974_v58, %v7277_v32  ;;  %v7284_v32 = vld [vmem:[#allocation5_spill] sm:$0xff] }
 0x7b0   :  { %v2976_v17 = vpop.f32.mrf.mxu0  ;;  %v6336_v45 = vadd.f32 %v3087_v9, %v7278_v3  ;;  %v7285_v9 = vld [vmem:[#allocation29_spill] sm:$0xff] }
 0x7b1   :  { %v3089_v38 = vpop.f32.mrf.mxu1  ;;  %v6339_v6 = vadd.f32 %v2976_v17, %v7279_v26  ;;  %v7287_v26 = vld [vmem:[#allocation21_spill] sm:$0xff] }
 0x7b2   :  { %v2980_v19 = vpop.f32.mrf.mxu0  ;;  %v6342_v13 = vadd.f32 %v3089_v38, %v7280_v57  ;;  %v7288_v38 = vld [vmem:[#allocation25_spill] sm:$0xff] }
 0x7b3   :  { %v3093_v44 = vpop.f32.mrf.mxu1 }
 0x7b4   :  { %v2982_v27 = vpop.f32.mrf.mxu0 }
 0x7b5   :  { %v3095_v16 = vpop.f32.mrf.mxu1  ;;  %v2983_v17 = vadd.f32 %v2982_v27, %v7286_v35 }
 0x7b6   :  { %v2984_v36 = vpop.f32.mrf.mxu0  ;;  %v3096_v12 = vadd.f32 %v3095_v16, %v7287_v26 }
 0x7b7   :  { %v3097_v63 = vpop.f32.mrf.mxu1 }
 0x7b8   :  { %v2986_v40 = vpop.f32.mrf.mxu0 }
 0x7b9   :  { %v3099_v7 = vpop.f32.mrf.mxu1  ;;  %v2987_v18 = vadd.f32 %v2986_v40, %v7281_v11 }
 0x7ba   :  { %v2990_v5 = vpop.f32.mrf.mxu0  ;;  %v3100_v31 = vadd.f32 %v3099_v7, %v7282_v23  ;;  %v7290_v23 = vld [vmem:[#allocation22_spill] sm:$0xff] }
 0x7bb   :  { %v3103_v37 = vpop.f32.mrf.mxu1  ;;  %v2991_v57 = vadd.f32 %v2990_v5, %v7288_v38  ;;  %v2985_v29 = vadd.f32 %v2984_v36, %v7290_v23  ;;  %v3161_v38 = vmax.f32 %v2983_v17, 0.0  ;;  %v3149_v17 = vmax.f32 %v6321_v43, 0.0 }
 0x7bc   :  { %v2992_v14 = vpop.f32.mrf.mxu0  ;;  %v3104_v40 = vadd.f32 %v3103_v37, %v7289_v39  ;;  %v2981_v37 = vadd.f32 %v2980_v19, %v7033_v24  ;;  %v3094_v39 = vadd.f32 %v3093_v44, %v7034_v34  ;;  %v2971_v34 = vadd.f32 %v6286_v33, %v7035_v47 }
 0x7bd   :  { %v3105_v56 = vpop.f32.mrf.mxu1  ;;  %v2993_v15 = vadd.f32 %v2992_v14, %v7283_v1  ;;  %v3098_v14 = vadd.f32 %v3097_v63, %v7291_v61  ;;  %v7292_v1 = vld [vmem:[#allocation30_spill] sm:$0xff]  ;;  %v3168_v26 = vmax.f32 %v2991_v57, 0.0  ;;  %v3163_v63 = vmax.f32 %v3096_v12, 0.0 }
 0x7be   :  { %v2994_v60 = vpop.f32.mrf.mxu0  ;;  %v3106_v58 = vadd.f32 %v3105_v56, %v7157_v51  ;;  %v3170_v36 = vmax.f32 %v3104_v40, 0.0  ;;  %v3164_v23 = vmax.f32 %v2985_v29, 0.0  ;;  %v3084_v24 = vadd.f32 %v6288_v22, %v7167_v2  ;;  %v7293_v40 = vld [vmem:[#allocation91_spill] sm:$0xff] }
 0x7bf   :  { %v3107_v55 = vpop.f32.mrf.mxu1  ;;  %v2995_v25 = vadd.f32 %v2994_v60, %v7284_v32  ;;  %v3165_v60 = vmax.f32 %v2987_v18, 0.0  ;;  %v3169_v27 = vmax.f32 %v2993_v15, 0.0  ;;  %v3159_v15 = vmax.f32 %v6342_v13, 0.0 }
 0x7c0   :  { %v3108_v3 = vadd.f32 %v3107_v55, %v7285_v9  ;;  %v2996_v11 = vpop.f32.mrf.mxu0  ;;  %v3167_v55 = vmax.f32 %v3100_v31, 0.0  ;;  %v3171_v16 = vmax.f32 %v3106_v58, 0.0  ;;  %v3160_v12 = vmax.f32 %v2981_v37, 0.0 }
 0x7c1   :  { %v3109_v7 = vpop.f32.mrf.mxu1  ;;  %v2997_v51 = vadd.f32 %v2996_v11, %v7292_v1  ;;  %v3172_v32 = vmax.f32 %v2995_v25, 0.0  ;;  %v3157_v25 = vmax.f32 %v6339_v6, 0.0  ;;  %v3201_v58 = vpack.c.bf16 %v3165_v60, %v3161_v38  ;;  %v7304_v38 = vld [vmem:[#allocation9_spill] sm:$0xff] }
 0x7c2   :  { %v3110_v56 = vadd.f32 %v3109_v7, %v4854_v49  ;;  %v3174_v35 = vmax.f32 %v3108_v3, 0.0  ;;  %v3166_v49 = vmax.f32 %v3098_v14, 0.0  ;;  %v3203_v3 = vpack.c.bf16 %v3167_v55, %v3163_v63  ;;  %v7296_v14 = vld [vmem:[#allocation88_spill] sm:$0xff] }
 0x7c3   :  { %v3173_v9 = vmax.f32 %v2997_v51, 0.0  ;;  %v3204_v18 = vpack.c.bf16 %v3172_v32, %v3168_v26  ;;  %v3162_v44 = vmax.f32 %v3094_v39, 0.0  ;;  %v2965_v29 = vadd.f32 %v6282_v62, %v7168_v8  ;;  %v7301_v39 = vld [vmem:[#allocation80_spill] sm:$0xff]  ;;  %v7302_v26 = vld [vmem:[#allocation103_spill] sm:$0xff] }
 0x7c4   :  { %v3175_v5 = vmax.f32 %v3110_v56, 0.0  ;;  %v3206_v31 = vpack.c.bf16 %v3174_v35, %v3170_v36  ;;  %v3078_v19 = vadd.f32 %v6284_v0, %v7169_v21  ;;  %v3153_v6 = vmax.f32 %v6327_v42, 0.0  ;;  %v7294_v0 = vld [vmem:[#allocation92_spill] sm:$0xff] }
 0x7c5   :  { %v3205_v61 = vpack.c.bf16 %v3173_v9, %v3169_v27  ;;  %v3155_v13 = vmax.f32 %v6330_v20, 0.0  ;;  %v3156_v47 = vmax.f32 %v6333_v41, 0.0  ;;  %v3158_v2 = vmax.f32 %v6336_v45, 0.0  ;;  %v7295_v41 = vld [vmem:[#allocation87_spill] sm:$0xff]  ;;  %v7303_v36 = vld [vmem:[#allocation20_spill] sm:$0xff] }
 0x7c6   :  { %v3207_v11 = vpack.c.bf16 %v3175_v5, %v3171_v16  ;;  %v3200_v33 = vpack.c.bf16 %v3164_v23, %v3160_v12  ;;  %v3202_v22 = vpack.c.bf16 %v3166_v49, %v3162_v44  ;;  %v3151_v57 = vmax.f32 %v6324_v4, 0.0  ;;  %v7299_v9 = vld [vmem:[#allocation79_spill] sm:$0xff]  ;;  %v7300_v5 = vld [vmem:[#allocation40_spill] sm:$0xff]  ;;  %v7310_v12 = vld [vmem:[#allocation13_spill] sm:$0xff] }
 0x7c7   :  { %3208 = vmatprep.subr.bf16.mxu0 %v3205_v61  ;;  %v3197_v8 = vpack.c.bf16 %v3157_v25, %v3153_v6  ;;  %v3199_v62 = vpack.c.bf16 %v3159_v15, %v3155_v13  ;;  %v2961_v21 = vadd.f32 %v6278_v59, %v7293_v40  ;;  %v3074_v42 = vadd.f32 %v6280_v54, %v7294_v0  ;;  %v7305_v23 = vld [vmem:[#allocation100_spill] sm:$0xff]  ;;  %v7311_v6 = vld [vmem:[#allocation46_spill] sm:$0xff] }
 0x7c8   :  { %3281 = vmatprep.subr.bf16.mxu1 %v3207_v11  ;;  %3209 = vmatpush1.bf16.msra.mxu0 %v3204_v18  ;;  %v3152_v20 = vmax.f32 %v2971_v34, 0.0  ;;  %v3154_v7 = vmax.f32 %v3084_v24, 0.0  ;;  %v2955_v45 = vadd.f32 %v6268_v10, %v7295_v41  ;;  %v3068_v43 = vadd.f32 %v6270_v53, %v7296_v14  ;;  %v7297_v10 = vld [vmem:[#allocation83_spill] sm:$0xff]  ;;  %v7298_v53 = vld [vmem:[#allocation84_spill] sm:$0xff]  ;;  %v7306_v18 = vld [vmem:[#allocation45_spill] sm:$0xff] }
 0x7c9   :  { %3282 = vmatpush1.bf16.msra.mxu1 %v3206_v31  ;;  %3210 = vmatprep.subr.bf16.mxu0 %v3201_v58  ;;  %v3145_v4 = vmax.f32 %v6315_v50, 0.0  ;;  %v3147_v1 = vmax.f32 %v6318_v30, 0.0  ;;  %v3148_v59 = vmax.f32 %v2965_v29, 0.0  ;;  %v3150_v51 = vmax.f32 %v3078_v19, 0.0  ;;  %v7307_v58 = vld [vmem:[#allocation75_spill] sm:$0xff]  ;;  %v7309_v24 = vld [vmem:[#allocation76_spill] sm:$0xff] }
 0x7ca   :  { %3283 = vmatprep.subr.bf16.mxu1 %v3203_v3  ;;  %v3196_v56 = vpack.c.bf16 %v3156_v47, %v3152_v20  ;;  %v3198_v54 = vpack.c.bf16 %v3158_v2, %v3154_v7  ;;  %v3141_v60 = vmax.f32 %v6309_v28, 0.0  ;;  %v3143_v55 = vmax.f32 %v6312_v46, 0.0  ;;  %v7308_v3 = vld [vmem:[#allocation28_spill] sm:$0xff]  ;;  %v7312_v47 = vld [vmem:[#allocation107_spill] sm:$0xff]  ;;  %v7313_v20 = vld [vmem:[#allocation61_spill] sm:$0xff] }
 0x7cb   :  { %v3193_v32 = vpack.c.bf16 %v3149_v17, %v3145_v4  ;;  %v3195_v35 = vpack.c.bf16 %v3151_v57, %v3147_v1  ;;  %v2951_v27 = vadd.f32 %v6256_v52, %v7297_v10  ;;  %v3064_v50 = vadd.f32 %v6258_v48, %v7298_v53  ;;  %v7314_v7 = vld [vmem:[#allocation64_spill] sm:$0xff]  ;;  %v7315_v41 = vld [vmem:[#allocation95_spill] sm:$0xff] }
 0x7cc   :  { %3211 = vmatpush1.bf16.msra.mxu0 %v3200_v33  ;;  %v3144_v16 = vmax.f32 %v2961_v21, 0.0  ;;  %v3146_v30 = vmax.f32 %v3074_v42, 0.0  ;;  %v2945_v37 = vadd.f32 %v7300_v5, %v7299_v9  ;;  %v3058_v28 = vadd.f32 %v7302_v26, %v7301_v39  ;;  %v7317_v14 = vld [vmem:[#allocation52_spill] sm:$0xff]  ;;  %v7320_v1 = vld [vmem:[#allocation51_spill] sm:$0xff] }
 0x7cd   :  { %3284 = vmatpush1.bf16.msra.mxu1 %v3202_v22  ;;  %3212 = vmatprep.subr.bf16.mxu0 %v3197_v8  ;;  %v3137_v46 = vmax.f32 %v7303_v36, 0.0  ;;  %v3139_v63 = vmax.f32 %v7304_v38, 0.0  ;;  %v3140_v52 = vmax.f32 %v2955_v45, 0.0  ;;  %v3142_v61 = vmax.f32 %v3068_v43, 0.0  ;;  %v7316_v45 = vld [vmem:[#allocation59_spill] sm:$0xff]  ;;  %v7319_v4 = vld [vmem:[#allocation56_spill] sm:$0xff] }
 0x7ce   :  { %3285 = vmatprep.subr.bf16.mxu1 %v3199_v62  ;;  %v3192_v11 = vpack.c.bf16 %v3148_v59, %v3144_v16  ;;  %v3194_v48 = vpack.c.bf16 %v3150_v51, %v3146_v30  ;;  %v3133_v49 = vmax.f32 %v7305_v23, 0.0  ;;  %v3135_v31 = vmax.f32 %v7306_v18, 0.0  ;;  %v7318_v43 = vld [vmem:[#allocation47_spill] sm:$0xff]  ;;  %v4006_v59 = vld [vmem:[%s6556_s6] sm:$0xff]  }
 0x7cf   :  { %v3189_v25 = vpack.c.bf16 %v3141_v60, %v3137_v46  ;;  %v3191_v15 = vpack.c.bf16 %v3143_v55, %v3139_v63  ;;  %v2941_v34 = vadd.f32 %v7308_v3, %v7307_v58  ;;  %v3054_v44 = vadd.f32 %v7310_v12, %v7309_v24  ;;  %v4009_v60 = vld [vmem:[%s6556_s6 + $0x18] sm:$0xff]  }
 0x7d0   :  { %3213 = vmatpush1.bf16.msra.mxu0 %v3196_v56  ;;  %v3136_v29 = vmax.f32 %v2951_v27, 0.0  ;;  %v3138_v19 = vmax.f32 %v3064_v50, 0.0  ;;  %v3129_v13 = vmax.f32 %v7311_v6, 0.0  ;;  %v3131_v2 = vmax.f32 %v7312_v47, 0.0  ;;  %v4007_v56 = vld [vmem:[%s6556_s6 + $0x8] sm:$0xff]   ;;  %v7323_v58 = vld [vmem:[#allocation63_spill] sm:$0xff] }
 0x7d1   :  { %3286 = vmatpush1.bf16.msra.mxu1 %v3198_v54  ;;  %3214 = vmatprep.subr.bf16.mxu0 %v3193_v32  ;;  %v3132_v33 = vmax.f32 %v2945_v37, 0.0  ;;  %v3134_v22 = vmax.f32 %v3058_v28, 0.0  ;;  %v3128_v40 = vmax.f32 %v2941_v34, 0.0  ;;  %v3130_v21 = vmax.f32 %v3054_v44, 0.0  ;;  %v4008_v54 = vld [vmem:[%s6556_s6 + $0x10] sm:$0xff]   ;;  %v7325_v6 = vld [vmem:[#allocation65_spill] sm:$0xff] }
 0x7d2   :  { %3287 = vmatprep.subr.bf16.mxu1 %v3195_v35  ;;  %v3188_v17 = vpack.c.bf16 %v3140_v52, %v3136_v29  ;;  %v3190_v57 = vpack.c.bf16 %v3142_v61, %v3138_v19  ;;  %v3185_v8 = vpack.c.bf16 %v3133_v49, %v3129_v13  ;;  %v3187_v62 = vpack.c.bf16 %v3135_v31, %v3131_v2  ;;  %v7322_v31 = vld [vmem:[#allocation66_spill] sm:$0xff] }
 0x7d3   :  { %v3184_v0 = vpack.c.bf16 %v3132_v33, %v3128_v40  ;;  %v3186_v42 = vpack.c.bf16 %v3134_v22, %v3130_v21  ;;  %v7321_v51 = vmov 0   ;;  %v7324_v44 = vld [vmem:[#allocation98_spill] sm:$0xff]  ;;  %v7326_v22 = vld [vmem:[#allocation97_spill] sm:$0xff] }
 0x7d4   :  { %3215 = vmatpush1.bf16.msra.mxu0 %v3192_v11  ;;  %v7327_v40 = vld [vmem:[#allocation34_spill] sm:$0xff] }
 0x7d5   :  { %3288 = vmatpush1.bf16.msra.mxu1 %v3194_v48  ;;  %3216 = vmatprep.subr.bf16.mxu0 %v3189_v25 }
 0x7d6   :  { %3289 = vmatprep.subr.bf16.mxu1 %v3191_v15 }
 0x7d8   :  { %3217 = vmatpush1.bf16.msra.mxu0 %v3188_v17 }
 0x7d9   :  { %3290 = vmatpush1.bf16.msra.mxu1 %v3190_v57  ;;  %3218 = vmatprep.subr.bf16.mxu0 %v3185_v8 }
 0x7da   :  { %3291 = vmatprep.subr.bf16.mxu1 %v3187_v62 }
 0x7dc   :  { %3219 = vmatpush1.bf16.msra.mxu0 %v3184_v0 }
 0x7dd   :  { %3292 = vmatpush1.bf16.msra.mxu1 %v3186_v42  ;;  %3220 = vmatprep.subr.bf16.mxu0 %v7313_v20  ;;  %v7328_v42 = vld [vmem:[#allocation35_spill] sm:$0xff] }
 0x7de   :  { %3293 = vmatprep.subr.bf16.mxu1 %v7314_v7 }
 0x7e0   :  { %3221 = vmatpush1.bf16.msra.mxu0 %v7315_v41  ;;  %v7329_v41 = vld [vmem:[#allocation36_spill] sm:$0xff] }
 0x7e1   :  { %3294 = vmatpush1.bf16.msra.mxu1 %v7316_v45  ;;  %3222 = vmatprep.subr.bf16.mxu0 %v7317_v14 }
 0x7e2   :  { %3295 = vmatprep.subr.bf16.mxu1 %v7318_v43 }
 0x7e4   :  { %3223 = vmatpush1.bf16.msra.mxu0 %v7319_v4 }
 0x7e5   :  { %3296 = vmatpush1.bf16.msra.mxu1 %v7320_v1 }
 0x7e7   :  { %3241 = vmatmul.mubr.bf16.vlgmr.msra.gmra.mxu0 %v4006_v59 }
 0x7e8   :  { %3314 = vmatmul.mubr.bf16.vlgmr.msra.gmra.mxu1 %v4006_v59  ;;  %3250 = vmatprep.mubr.bf16.mxu0 %v7321_v51 }
 0x7e9   :  { %3323 = vmatprep.mubr.bf16.mxu1 %v7321_v51 }
 0x7ef   :  { %3251 = vmatmul.mubr.bf16.gmra.mxu0 %v4007_v56 }
 0x7f0   :  { %3324 = vmatmul.mubr.bf16.gmra.mxu1 %v4007_v56  ;;  %3260 = vmatprep.mubr.bf16.mxu0 %v7321_v51 }
 0x7f1   :  { %3333 = vmatprep.mubr.bf16.mxu1 %v7321_v51 }
 0x7f7   :  { %3261 = vmatmul.mubr.bf16.gmra.mxu0 %v4008_v54 }
 0x7f8   :  { %3334 = vmatmul.mubr.bf16.gmra.mxu1 %v4008_v54  ;;  %3270 = vmatprep.mubr.bf16.mxu0 %v7321_v51 }
 0x7f9   :  { %3343 = vmatprep.mubr.bf16.mxu1 %v7321_v51 }
 0x7ff   :  { %3271 = vmatmul.mubr.bf16.gmra.mxu0 %v4009_v60 }
 0x800   :  { %3344 = vmatmul.mubr.bf16.gmra.mxu1 %v4009_v60  ;;  %3434 = vmatprep.mubr.bf16.mxu0 %v7321_v51 }
 0x801   :  { %3475 = vmatprep.mubr.bf16.mxu1 %v7321_v51 }
 0x8a7   :  { %v6434_v55 = vpop.f32.mrf.mxu0 }
 0x8a8   :  { %v6436_v32 = vpop.f32.mrf.mxu1 }
 0x8a9   :  { %v3244_v35 = vpop.f32.mrf.mxu0 }
 0x8aa   :  { %v3317_v10 = vpop.f32.mrf.mxu1  ;;  %v6447_v25 = vadd.f32 %v3244_v35, %v7322_v31 }
 0x8ab   :  { %v6438_v27 = vpop.f32.mrf.mxu0  ;;  %v6450_v15 = vadd.f32 %v3317_v10, %v7322_v31 }
 0x8ac   :  { %v6440_v53 = vpop.f32.mrf.mxu1 }
 0x8ad   :  { %v3248_v50 = vpop.f32.mrf.mxu0 }
 0x8ae   :  { %v3321_v16 = vpop.f32.mrf.mxu1  ;;  %v6453_v3 = vadd.f32 %v3248_v50, %v7323_v58 }
 0x8af   :  { %v6442_v30 = vpop.f32.mrf.mxu0  ;;  %v6456_v34 = vadd.f32 %v3321_v16, %v7323_v58 }
 0x8b0   :  { %v6444_v9 = vpop.f32.mrf.mxu1 }
 0x8b1   :  { %v3254_v5 = vpop.f32.mrf.mxu0 }
 0x8b2   :  { %v3327_v37 = vpop.f32.mrf.mxu1  ;;  %v6459_v29 = vadd.f32 %v3254_v5, %v7324_v44 }
 0x8b3   :  { %v3256_v39 = vpop.f32.mrf.mxu0  ;;  %v6462_v19 = vadd.f32 %v3327_v37, %v7324_v44 }
 0x8b4   :  { %v3329_v26 = vpop.f32.mrf.mxu1  ;;  %v6465_v13 = vadd.f32 %v3256_v39, %v7325_v6 }
 0x8b5   :  { %v3258_v28 = vpop.f32.mrf.mxu0  ;;  %v6468_v47 = vadd.f32 %v3329_v26, %v7325_v6 }
 0x8b6   :  { %v3331_v36 = vpop.f32.mrf.mxu1  ;;  %v6471_v2 = vadd.f32 %v3258_v28, %v7325_v6 }
 0x8b7   :  { %v3262_v46 = vpop.f32.mrf.mxu0  ;;  %v6474_v33 = vadd.f32 %v3331_v36, %v7325_v6 }
 0x8b8   :  { %v3335_v38 = vpop.f32.mrf.mxu1  ;;  %v3263_v28 = vadd.f32 %v3262_v46, %v7329_v41  ;;  %v3367_v6 = vmax.f32 %v6471_v2, 0.0  ;;  %v3253_v46 = vadd.f32 %v6442_v30, %v7324_v44  ;;  %v3320_v2 = vadd.f32 %v6440_v53, %v7323_v58 }
 0x8b9   :  { %v3264_v63 = vpop.f32.mrf.mxu0  ;;  %v3336_v36 = vadd.f32 %v3335_v38, %v7329_v41  ;;  %v3326_v38 = vadd.f32 %v6444_v9, %v7324_v44  ;;  %v3366_v30 = vmax.f32 %v6465_v13, 0.0  ;;  %v3368_v9 = vmax.f32 %v6468_v47, 0.0 }
 0x8ba   :  { %v3337_v52 = vpop.f32.mrf.mxu1  ;;  %v3265_v45 = vadd.f32 %v3264_v63, %v7329_v41  ;;  %v3243_v53 = vadd.f32 %v6434_v55, %v7322_v31  ;;  %v3355_v13 = vmax.f32 %v6447_v25, 0.0  ;;  %v3357_v47 = vmax.f32 %v6450_v15, 0.0  ;;  %v4010_v25 = vld [vmem:[%s6558_s8] sm:$0x1] }
 0x8bb   :  { %v3266_v61 = vpop.f32.mrf.mxu0  ;;  %v3338_v14 = vadd.f32 %v3337_v52, %v7329_v41 }
 0x8bc   :  { %v3339_v11 = vpop.f32.mrf.mxu1  ;;  %v3267_v51 = vadd.f32 %v3266_v61, %v7326_v22  ;;  %v3371_v61 = vmax.f32 %v3265_v45, 0.0  ;;  %v3354_v55 = vmax.f32 %v3243_v53, 0.0 }
 0x8bd   :  { %v3268_v48 = vpop.f32.mrf.mxu0  ;;  %v3340_v56 = vadd.f32 %v3339_v11, %v7326_v22  ;;  %v3373_v11 = vmax.f32 %v3338_v14, 0.0 }
 0x8be   :  { %v3341_v23 = vpop.f32.mrf.mxu1  ;;  %v3269_v17 = vadd.f32 %v3268_v48, %v7326_v22 }
 0x8bf   :  { %v3272_v49 = vpop.f32.mrf.mxu0  ;;  %v3342_v57 = vadd.f32 %v3341_v23, %v7326_v22  ;;  %v3369_v22 = vmax.f32 %v6474_v33, 0.0  ;;  %v3363_v33 = vmax.f32 %v6459_v29, 0.0  ;;  %v3362_v29 = vmax.f32 %v3253_v46, 0.0 }
 0x8c0   :  { %v3345_v18 = vpop.f32.mrf.mxu1  ;;  %v3273_v43 = vadd.f32 %v3272_v49, %v7327_v40  ;;  %v3375_v35 = vmax.f32 %v3269_v17, 0.0  ;;  %v3374_v49 = vmax.f32 %v3267_v51, 0.0 }
 0x8c1   :  { %v3274_v24 = vpop.f32.mrf.mxu0  ;;  %v3346_v4 = vadd.f32 %v3345_v18, %v7327_v40  ;;  %v3377_v10 = vmax.f32 %v3342_v57, 0.0  ;;  %v3376_v18 = vmax.f32 %v3340_v56, 0.0  ;;  %v3390_v41 = vpack.c.bf16 %v3366_v30, %v3362_v29  ;;  %v7337_v29 = vld [vmem:[#allocation7_spill] sm:$0xff] }
 0x8c2   :  { %v3347_v12 = vpop.f32.mrf.mxu1  ;;  %v3275_v21 = vadd.f32 %v3274_v24, %v7327_v40  ;;  %v3378_v63 = vmax.f32 %v3273_v43, 0.0  ;;  %v3395_v17 = vpack.c.bf16 %v3375_v35, %v3371_v61  ;;  %v7331_v35 = vld [vmem:[#allocation60_spill] sm:$0xff]  ;;  %v7333_v61 = vld [vmem:[#allocation58_spill] sm:$0xff] }
 0x8c3   :  { %v3276_v8 = vpop.f32.mrf.mxu0  ;;  %v3348_v0 = vadd.f32 %v3347_v12, %v7327_v40  ;;  %v3380_v52 = vmax.f32 %v3346_v4, 0.0  ;;  %v3397_v57 = vpack.c.bf16 %v3377_v10, %v3373_v11  ;;  %v3247_v40 = vadd.f32 %v6438_v27, %v7323_v58 }
 0x8c4   :  { %v3349_v62 = vpop.f32.mrf.mxu1  ;;  %v3277_v20 = vadd.f32 %v3276_v8, %v7328_v42  ;;  %v3379_v5 = vmax.f32 %v3275_v21, 0.0  ;;  %v3370_v8 = vmax.f32 %v3263_v28, 0.0  ;;  %v3365_v21 = vmax.f32 %v6462_v19, 0.0 }
 0x8c5   :  { %v3350_v7 = vadd.f32 %v3349_v62, %v7328_v42  ;;  %v3278_v1 = vpop.f32.mrf.mxu0  ;;  %v3381_v37 = vmax.f32 %v3348_v0, 0.0  ;;  %v3372_v62 = vmax.f32 %v3336_v36, 0.0  ;;  %v3391_v27 = vpack.c.bf16 %v3367_v6, %v3363_v33 }
 0x8c6   :  { %v3351_v59 = vpop.f32.mrf.mxu1  ;;  %v3279_v54 = vadd.f32 %v3278_v1, %v7328_v42  ;;  %v3382_v50 = vmax.f32 %v3277_v20, 0.0  ;;  %v3394_v44 = vpack.c.bf16 %v3374_v49, %v3370_v8  ;;  %v3361_v20 = vmax.f32 %v6456_v34, 0.0 }
 0x8c7   :  { %v3352_v60 = vadd.f32 %v3351_v59, %v7328_v42  ;;  %v3384_v16 = vmax.f32 %v3350_v7, 0.0  ;;  %v3396_v0 = vpack.c.bf16 %v3376_v18, %v3372_v62  ;;  %v3359_v42 = vmax.f32 %v6453_v3, 0.0  ;;  %v7330_v59 = vld [vmem:[#allocation19_spill] sm:$0xff] }
 0x8c8   :  { %v3383_v39 = vmax.f32 %v3279_v54, 0.0  ;;  %v3398_v24 = vpack.c.bf16 %v3382_v50, %v3378_v63  ;;  %v3393_v7 = vpack.c.bf16 %v3369_v22, %v3365_v21  ;;  %v3316_v58 = vadd.f32 %v6436_v32, %v7322_v31  ;;  %v7332_v50 = vld [vmem:[#allocation57_spill] sm:$0xff] }
 0x8c9   :  { %v3385_v26 = vmax.f32 %v3352_v60, 0.0  ;;  %v3400_v12 = vpack.c.bf16 %v3384_v16, %v3380_v52  ;;  %v3364_v19 = vmax.f32 %v3326_v38, 0.0  ;;  %v3358_v3 = vmax.f32 %v3247_v40, 0.0 }
 0x8ca   :  { %v3399_v48 = vpack.c.bf16 %v3383_v39, %v3379_v5  ;;  %v3360_v34 = vmax.f32 %v3320_v2, 0.0  ;;  %v3387_v14 = vpack.c.bf16 %v3359_v42, %v3355_v13  ;;  %v3389_v43 = vpack.c.bf16 %v3361_v20, %v3357_v47 }
 0x8cb   :  { %v3401_v23 = vpack.c.bf16 %v3385_v26, %v3381_v37  ;;  %v3392_v45 = vpack.c.bf16 %v3368_v9, %v3364_v19  ;;  %v3356_v4 = vmax.f32 %v3316_v58, 0.0  ;;  %v3386_v32 = vpack.c.bf16 %v3358_v3, %v3354_v55  ;;  %v7335_v9 = vld [vmem:[#allocation32_spill] sm:$0xff] }
 0x8cc   :  { %3410 = vmatprep.subr.bf16.mxu0 %v3399_v48  ;;  %v7334_v48 = vld [vmem:[#allocation55_spill] sm:$0xff] }
 0x8cd   :  { %3451 = vmatprep.subr.bf16.mxu1 %v3401_v23  ;;  %3411 = vmatpush1.bf16.msra.mxu0 %v3398_v24  ;;  %v3388_v31 = vpack.c.bf16 %v3360_v34, %v3356_v4 }
 0x8ce   :  { %3452 = vmatpush1.bf16.msra.mxu1 %v3400_v12  ;;  %3412 = vmatprep.subr.bf16.mxu0 %v3395_v17 }
 0x8cf   :  { %3453 = vmatprep.subr.bf16.mxu1 %v3397_v57 }
 0x8d1   :  { %3413 = vmatpush1.bf16.msra.mxu0 %v3394_v44 }
 0x8d2   :  { %3454 = vmatpush1.bf16.msra.mxu1 %v3396_v0  ;;  %3414 = vmatprep.subr.bf16.mxu0 %v3391_v27  ;;  %v7336_v27 = vld [vmem:[#allocation48_spill] sm:$0xff] }
 0x8d3   :  { %3455 = vmatprep.subr.bf16.mxu1 %v3393_v7 }
 0x8d5   :  { %3415 = vmatpush1.bf16.msra.mxu0 %v3390_v41  ;;  %v7338_v41 = vld [vmem:[#allocation96_spill] sm:$0xff] }
 0x8d6   :  { %3456 = vmatpush1.bf16.msra.mxu1 %v3392_v45  ;;  %3416 = vmatprep.subr.bf16.mxu0 %v3387_v14 }
 0x8d7   :  { %3457 = vmatprep.subr.bf16.mxu1 %v3389_v43 }
 0x8d9   :  { %3417 = vmatpush1.bf16.msra.mxu0 %v3386_v32 }
 0x8da   :  { %3458 = vmatpush1.bf16.msra.mxu1 %v3388_v31 }
 0x8dc   :  { %3826 = vmatmul.mubr.msk.bf16.vlgmr.msra.gmra.mxu0 %vm1245_vm3, %v4010_v25 }
 0x8dd   :  { %3827 = vmatmul.mubr.msk.bf16.vlgmr.msra.gmra.mxu1 %vm1245_vm3, %v4010_v25  ;;  %v7339_v25 = vld [vmem:[#allocation102_spill] sm:$0xff] }
 0x99c   :  { %v3436_v15 = vpop.f32.mrf.mxu0 }
 0x99d   :  { %v3477_v1 = vpop.f32.mrf.mxu1  ;;  %v3437_v51 = vadd.f32 %v3436_v15, %v7330_v59 }
 0x99e   :  { %v3478_v56 = vadd.f32 %v3477_v1, %v7330_v59  ;;  %v3438_v54 = vpop.f32.mrf.mxu0 }
 0x99f   :  { %v3479_v60 = vpop.f32.mrf.mxu1  ;;  %v3484_v10 = vmax.f32 %v7331_v35, %v3437_v51  ;;  %v3439_v5 = vadd.f32 %v3438_v54, %v7330_v59 }
 0x9a0   :  { %v3486_v16 = vmax.f32 %v7332_v50, %v3478_v56  ;;  %v6525_v37 = vadd.f32 %v3479_v60, %v7330_v59  ;;  %v3440_v39 = vpop.f32.mrf.mxu0  ;;  %v7340_v59 = vld [vmem:[#allocation62_spill] sm:$0xff] }
 0x9a1   :  { %v3481_v26 = vpop.f32.mrf.mxu1  ;;  %v3488_v28 = vsub.f32 %v7331_v35, %v3484_v10  ;;  %v3500_v36 = vsub.f32 %v3437_v51, %v3484_v10  ;;  %v3485_v11 = vmax.f32 %v7333_v61, %v3439_v5  ;;  %v7341_v35 = vld [vmem:[#allocation53_spill] sm:$0xff] }
 0x9a2   :  { %v3490_v63 = vsub.f32 %v7332_v50, %v3486_v16  ;;  %v3502_v52 = vsub.f32 %v3478_v56, %v3486_v16  ;;  %v3487_v23 = vmax.f32 %v7334_v48, %v6525_v37  ;;  %v3441_v49 = vpop.f32.mrf.mxu0  ;;  %v7342_v26 = vld [vmem:[#allocation33_spill] sm:$0xff] }
 0x9a3   :  { %v3482_v18 = vpop.f32.mrf.mxu1  ;;  %v3492_v24 = vmul.f32 1.442695, %v3488_v28  ;;  %v3504_v12 = vmul.f32 1.442695, %v3500_v36  ;;  %v3489_v17 = vsub.f32 %v7333_v61, %v3485_v11  ;;  %v3501_v57 = vsub.f32 %v3439_v5, %v3485_v11 }
 0x9a4   :  { %v3496_v6 = vmul.f32 1.442695, %v3490_v63  ;;  %v3508_v22 = vmul.f32 1.442695, %v3502_v52  ;;  %v3491_v46 = vsub.f32 %v7334_v48, %v3487_v23  ;;  %v3503_v38 = vsub.f32 %v6525_v37, %v3487_v23 }
 0x9a5   :  { %3961 = vpow2.f32 %v3492_v24  ;;  %v3494_v8 = vmul.f32 1.442695, %v3489_v17  ;;  %v3506_v62 = vmul.f32 1.442695, %v3501_v57  ;;  %v4034_v11 = vmov 1966171168  }
 0x9a6   :  { %3963 = vpow2.f32 %v3504_v12  ;;  %v3498_v40 = vmul.f32 1.442695, %v3491_v46  ;;  %v3510_v2 = vmul.f32 1.442695, %v3503_v38  ;;  %v3584_v48 = vunpack.c.l.s4 %v4034_v11 }
 0x9a7   :  { %3965 = vpow2.f32 %v3496_v6  ;;  %v3586_v23 = vlaneseq }
 0x9a8   :  { %3967 = vpow2.f32 %v3508_v22 }
 0x9a9   :  { %3969 = vpow2.f32 %v3494_v8  ;;  %v3587_v6 = vshrl.u32 %v3586_v23, 7  ;;  %vm3609_vm4 = vcmp.lt.s32.totalorder %v3586_v23, 512 }
 0x9aa   :  { %3971 = vpow2.f32 %v3506_v62 }
 0x9ab   :  { %3973 = vpow2.f32 %v3498_v40 }
 0x9ac   :  { %3975 = vpow2.f32 %v3510_v2 }
 0x9b2   :  { %v3962_v33 = vpop.eup %3961 }
 0x9b3   :  { %v3964_v21 = vpop.eup %3963  ;;  %v3516_v30 = vrot.slane %v3962_v33, 1  ;;  %v3548_v44 = vmul.f32 %v3962_v33, %v7335_v9  ;;  %v3556_v9 = vld [vmem:[%s6552_s2] sm:$0xf] }
 0x9b4   :  { %v3966_v0 = vpop.eup %3965  ;;  %v3532_v42 = vrot.slane %v3964_v21, 1 }
 0x9b5   :  { %v3968_v20 = vpop.eup %3967  ;;  %v3524_v7 = vmul.f32 %v3516_v30, %v7336_v27  ;;  %v3552_v53 = vadd.f32 %v3964_v21, %v3548_v44  ;;  %v3518_v58 = vrot.slane %v3966_v0, 1  ;;  %v3550_v19 = vmul.f32 %v3966_v0, %v7337_v29 }
 0x9b6   :  { %v3970_v13 = vpop.eup %3969  ;;  %v3540_v47 = vmul.f32 %v3532_v42, %v3437_v51  ;;  %v3534_v3 = vrot.slane %v3968_v20, 1 }
 0x9b7   :  { %v3972_v34 = vpop.eup %3971  ;;  %3977 = vrcp.f32 %v3552_v53  ;;  %v3526_v45 = vmul.f32 %v3518_v58, %v7338_v41  ;;  %v3554_v14 = vadd.f32 %v3968_v20, %v3550_v19  ;;  %v3517_v43 = vrot.slane %v3970_v13, 1 }
 0x9b8   :  { %v3974_v55 = vpop.eup %3973  ;;  %v3544_v4 = vadd.f32 %v3540_v47, %v3524_v7  ;;  %v3542_v32 = vmul.f32 %v3534_v3, %v3478_v56  ;;  %v3533_v31 = vrot.slane %v3972_v34, 1  ;;  %v3549_v15 = vmul.f32 %v3970_v13, %v7339_v25 }
 0x9b9   :  { %v3976_v1 = vpop.eup %3975  ;;  %3979 = vrcp.f32 %v3554_v14  ;;  %v3525_v54 = vmul.f32 %v3517_v43, %v7340_v59  ;;  %v3519_v60 = vrot.slane %v3974_v55, 1  ;;  %v3551_v51 = vmul.f32 %v3974_v55, %v7341_v35 }
 0x9ba   :  { %v3546_v10 = vadd.f32 %v3542_v32, %v3526_v45  ;;  %v3541_v50 = vmul.f32 %v3533_v31, %v3439_v5  ;;  %v3553_v16 = vadd.f32 %v3972_v34, %v3549_v15  ;;  %v3535_v39 = vrot.slane %v3976_v1, 1 }
 0x9bb   :  { %v3527_v28 = vmul.f32 %v3519_v60, %v7342_v26  ;;  %v3555_v36 = vadd.f32 %v3976_v1, %v3551_v51  ;;  %v3585_v5 = vunpack.c.0.s8 %v3584_v48 }
 0x9bc   :  { %v3545_v63 = vadd.f32 %v3541_v50, %v3525_v54  ;;  %3981 = vrcp.f32 %v3553_v16  ;;  %v3543_v56 = vmul.f32 %v3535_v39, %v6525_v37 }
 0x9bd   :  { %3983 = vrcp.f32 %v3555_v36  ;;  %v3588_v62 = vsub.s32 %v3585_v5, %v3587_v6 }
 0x9be   :  { %v3547_v52 = vadd.f32 %v3543_v56, %v3527_v28 }
 0x9c4   :  { %v3978_v61 = vpop.eup %3977 }
 0x9c5   :  { %v3565_v49 = vrot.slane %v3978_v61, 1 }
 0x9c6   :  { %v3980_v18 = vpop.eup %3979 }
 0x9c7   :  { %v3573_v24 = vmul.f32 %v3565_v49, %v3544_v4  ;;  %v3567_v12 = vrot.slane %v3980_v18, 1 }
 0x9c9   :  { %v3982_v22 = vpop.eup %3981  ;;  %v3575_v17 = vmul.f32 %v3567_v12, %v3546_v10 }
 0x9ca   :  { %v3984_v57 = vpop.eup %3983  ;;  %v3566_v46 = vrot.slane %v3982_v22, 1 }
 0x9cb   :  { %v3568_v38 = vrot.slane %v3984_v57, 1 }
 0x9cc   :  { %v3574_v8 = vmul.f32 %v3566_v46, %v3545_v63 }
 0x9cd   :  { %v3576_v37 = vmul.f32 %v3568_v38, %v3547_v52 }
 0x9ce   :  { %v3581_v40 = vcombine.low %v3573_v24, %v3574_v8 }
 0x9cf   :  { %v3582_v2 = vcombine.low %v3575_v17, %v3576_v37 }
 0x9d0   :  { %v3589_v33 = vrot.slane %v3581_v40, %v3588_v62 }
 0x9d1   :  { %v3596_v21 = vrot.slane %v3582_v2, %v3588_v62 }
 0x9d3   :  { %v3597_v30 = vcombine.low %v3589_v33, %v3596_v21 }
 0x9d5   :  { %v3604_v44 = vrot.slane %v3597_v30, %v3588_v62 }
 0x9d7   :  { %v3606_v0 = vadd.f32 %v3604_v44, %v3556_v9 }
 0x9d9   :  { %3611 = vst.msk [vmem:[#allocation2] sm:$0xf] %vm3609_vm4, %v3606_v0 }
 0x9da   :  { %4022 = shalt.err (!%p4019_p4)
}
 0x9db   :  { %3621 = dma.vmem_to_hbm [thread:$0]  %s3619_s17, 64, %s6560_s10, [#allocation3]  }
 0x9dc   :  { %4031 = dma.done.wait [#allocation3], 64  }
 0x9dd   :  { %4032 = vsyncadd [#allocation3], 4294967232 }
 0x9de   :  { %3625 = vsyncpa [#allocation3], 1 }

</bundles_post_ra>
